<compile_context>
chip_gen: v5e
topology: v5e:2x2
jax: 0.10.0
libtpu: 0.0.40
codegen_flags: <defaults>
</compile_context>

<pallas_src>
import jax
import jax.numpy as jnp
from jax.experimental import pallas as pl
from jax.experimental.pallas import tpu as pltpu  # noqa: F401  (TPU-specific tuning hooks)

# ----------------------- model hyper-parameters -----------------------------
D_MODEL     = 32   # C
NHEAD       = 4
HEAD_DIM    = D_MODEL // NHEAD
DIM_FF      = 64
NUM_LAYERS  = 2
NUM_QUERIES = 8    # tgt length (disease queries)
MEM_LEN     = 16   # memory length T
BATCH       = 2
EPS         = 1e-5  # PyTorch LayerNorm default eps


# ----------------------- in-kernel helpers (pure jnp) -----------------------
def _layernorm(x, g, b):
    mu = jnp.mean(x, axis=-1, keepdims=True)
    xc = x - mu
    var = jnp.mean(xc * xc, axis=-1, keepdims=True)
    return xc * jax.lax.rsqrt(var + EPS) * g + b


def _attn_core(q, k, v, w_out_t, lq, lk, need_weights):
    """Multi-head attention core with the batch folded into rows.

    q: (B*lq, C), k/v: (B*lk, C), w_out_t: (C, C) in (in,out) layout.
    Heads are statically unrolled; per head the batch dimension is handled by a
    batched 3-D einsum ('bqd,bkd->bqk'), so no per-batch grid/loop is needed.
    Returns (attn_out (B*lq, C) without out-proj bias,
             head-averaged weights (B, lq, lk) or None).
    """
    scale = 1.0 / (HEAD_DIM ** 0.5)          # PyTorch scales q by head_dim**-0.5
    acc = jnp.zeros((BATCH * lq, D_MODEL), jnp.float32)
    wsum = jnp.zeros((BATCH, lq, lk), jnp.float32) if need_weights else None
    for h in range(NHEAD):                   # static unroll over heads
        sl = slice(h * HEAD_DIM, (h + 1) * HEAD_DIM)
        qh = (q[:, sl] * scale).reshape(BATCH, lq, HEAD_DIM)
        kh = k[:, sl].reshape(BATCH, lk, HEAD_DIM)
        vh = v[:, sl].reshape(BATCH, lk, HEAD_DIM)
        s = jnp.einsum('bqd,bkd->bqk', qh, kh, preferred_element_type=jnp.float32)
        s = s - jnp.max(s, axis=-1, keepdims=True)
        e = jnp.exp(s)
        p = e / jnp.sum(e, axis=-1, keepdims=True)
        oh = jnp.einsum('bqk,bkd->bqd', p, vh, preferred_element_type=jnp.float32)
        # concat_h(o_h) @ W_out.T == sum_h o_h @ W_out.T[head-rows]
        acc = acc + jnp.dot(oh.reshape(BATCH * lq, HEAD_DIM), w_out_t[sl, :],
                            preferred_element_type=jnp.float32)
        if need_weights:
            wsum = wsum + p
    ws = wsum * (1.0 / NHEAD) if need_weights else None   # head-avg (PyTorch default)
    return acc, ws


# ----------------------- single fused decoder kernel -------------------------
def decoder_kernel(tgt_ref, mem_ref, qp_ref, pos_ref,
                   wis_ref, bis_ref, wos_ref, bos_ref, wqps_ref,
                   wqc_ref, bqc_ref, woc_ref, boc_ref, wqpc_ref,
                   wkc_ref, bkc_ref, wvc_ref, bvc_ref,
                   g1_ref, be1_ref, g2_ref, be2_ref, g3_ref, be3_ref,
                   w1_ref, bl1_ref, w2_ref, bl2_ref,
                   ng_ref, nbe_ref,
                   out_ref, attn_ref):
    C = D_MODEL
    t = tgt_ref[...]           # (B*Q, C)
    mem = mem_ref[...]         # (B*T, C)
    qp = qp_ref[...]           # (B*Q, C)
    memp = mem + pos_ref[...]  # (B*T, C)

    # ---------------- layer-invariant prologue (hoisted) ----------------
    # query_pos contribution to self-attn q/k projections, all layers at once:
    #   (B*Q, C) @ (C, L*2C) -> (B*Q, 128)   (lane-dense)
    qp_s = jnp.dot(qp, wqps_ref[...], preferred_element_type=jnp.float32)
    # query_pos contribution to cross-attn q projection, all layers:
    qp_c = jnp.dot(qp, wqpc_ref[...], preferred_element_type=jnp.float32)
    # cross-attn K / V depend only on memory -> project once for all layers:
    kc = jnp.dot(memp, wkc_ref[...], preferred_element_type=jnp.float32) + bkc_ref[...]
    vc = jnp.dot(mem, wvc_ref[...], preferred_element_type=jnp.float32) + bvc_ref[...]

    for l in range(NUM_LAYERS):            # static unroll over layers
        # ----- self-attention: q = k = t + query_pos, value = t -----
        proj = jnp.dot(t, wis_ref[l], preferred_element_type=jnp.float32) + bis_ref[l]
        q = proj[:, :C] + qp_s[:, l * 2 * C: l * 2 * C + C]
        k = proj[:, C:2 * C] + qp_s[:, l * 2 * C + C: (l + 1) * 2 * C]
        v = proj[:, 2 * C:]
        sa, _ = _attn_core(q, k, v, wos_ref[l],
                           NUM_QUERIES, NUM_QUERIES, need_weights=False)
        t = _layernorm(t + sa + bos_ref[l], g1_ref[l], be1_ref[l])

        # ----- cross-attention: q = t + query_pos, k = mem + pos, v = mem -----
        q = (jnp.dot(t, wqc_ref[l], preferred_element_type=jnp.float32)
             + bqc_ref[l] + qp_c[:, l * C:(l + 1) * C])
        k = kc[:, l * C:(l + 1) * C]
        v = vc[:, l * C:(l + 1) * C]
        ca, ws = _attn_core(q, k, v, woc_ref[l],
                            NUM_QUERIES, MEM_LEN, need_weights=True)
        t = _layernorm(t + ca + boc_ref[l], g2_ref[l], be2_ref[l])  # residual=True path
        attn_ref[l] = ws                                            # (B, Q, T)

        # ----- feed-forward: linear2(relu(linear1(t))) -----
        ff = jnp.dot(t, w1_ref[l], preferred_element_type=jnp.float32) + bl1_ref[l]
        ff = jnp.maximum(ff, 0.0)
        ff = jnp.dot(ff, w2_ref[l], preferred_element_type=jnp.float32) + bl2_ref[l]
        t = _layernorm(t + ff, g3_ref[l], be3_ref[l])

    # ----- final self.norm -----
    out_ref[...] = _layernorm(t, ng_ref[...], nbe_ref[...])


def decoder_call(tgt2, mem2, qp2, pos2, pp):
    """tgt2/qp2: (B*Q, C), mem2/pos2: (B*T, C); pp: prepared (stacked) params.
    Single pallas_call, whole arrays resident in VMEM (no grid)."""
    BQ, C = tgt2.shape
    inputs = (tgt2, mem2, qp2, pos2,
              pp["wis"], pp["bis"], pp["wos"], pp["bos"], pp["wqps"],
              pp["wqc"], pp["bqc"], pp["woc"], pp["boc"], pp["wqpc"],
              pp["wkc"], pp["bkc"], pp["wvc"], pp["bvc"],
              pp["g1"], pp["be1"], pp["g2"], pp["be2"], pp["g3"], pp["be3"],
              pp["w1"], pp["bl1"], pp["w2"], pp["bl2"],
              pp["norm_g"], pp["norm_be"])
    out_shape = (jax.ShapeDtypeStruct((BQ, C), jnp.float32),
                 jax.ShapeDtypeStruct((NUM_LAYERS, BATCH, NUM_QUERIES, MEM_LEN),
                                      jnp.float32))
    return pl.pallas_call(decoder_kernel, out_shape=out_shape)(*inputs)


# ----------------------- parameter init (deterministic) ----------------------
def init_layer_params(key):
    ks = jax.random.split(key, 6)
    s = 0.02
    C, F = D_MODEL, DIM_FF
    return dict(
        # self-attention (nn.MultiheadAttention): in_proj (3C,C)+bias, out_proj (C,C)+bias
        w_in_s=jax.random.normal(ks[0], (3 * C, C), jnp.float32) * s,
        b_in_s=jnp.zeros((1, 3 * C), jnp.float32),
        w_out_s=jax.random.normal(ks[1], (C, C), jnp.float32) * s,
        b_out_s=jnp.zeros((1, C), jnp.float32),
        # cross-attention
        w_in_c=jax.random.normal(ks[2], (3 * C, C), jnp.float32) * s,
        b_in_c=jnp.zeros((1, 3 * C), jnp.float32),
        w_out_c=jax.random.normal(ks[3], (C, C), jnp.float32) * s,
        b_out_c=jnp.zeros((1, C), jnp.float32),
        # layernorms
        g1=jnp.ones((1, C), jnp.float32), be1=jnp.zeros((1, C), jnp.float32),
        g2=jnp.ones((1, C), jnp.float32), be2=jnp.zeros((1, C), jnp.float32),
        g3=jnp.ones((1, C), jnp.float32), be3=jnp.zeros((1, C), jnp.float32),
        # FFN
        w1=jax.random.normal(ks[4], (F, C), jnp.float32) * s,
        bl1=jnp.zeros((1, F), jnp.float32),
        w2=jax.random.normal(ks[5], (C, F), jnp.float32) * s,
        bl2=jnp.zeros((1, C), jnp.float32),
    )


def init_params(key):
    layer = init_layer_params(key)
    return dict(
        # _get_clones deep-copies one layer -> identical initial weights per layer
        layers=[layer for _ in range(NUM_LAYERS)],
        norm_g=jnp.ones((1, D_MODEL), jnp.float32),
        norm_be=jnp.zeros((1, D_MODEL), jnp.float32),
    )


def prepare_params(params):
    """One-time host prep (hoisted out of the forward pass):
      * transpose PyTorch (out,in) weights to (in,out),
      * stack per-layer weights along a leading NUM_LAYERS axis,
      * concat the layer-invariant projections (cross K/V, query_pos pieces)
        along the lane dimension so the kernel can compute them for all layers
        with a single matmul each."""
    layers = params["layers"]
    C = D_MODEL

    def st(f):
        return jnp.stack([f(lp) for lp in layers], axis=0)

    def cat(f):
        return jnp.concatenate([f(lp) for lp in layers], axis=1)

    return dict(
        # self-attention
        wis=st(lambda lp: lp["w_in_s"].T),            # (L, C, 3C)
        bis=st(lambda lp: lp["b_in_s"]),              # (L, 1, 3C)
        wos=st(lambda lp: lp["w_out_s"].T),           # (L, C, C)
        bos=st(lambda lp: lp["b_out_s"]),             # (L, 1, C)
        wqps=cat(lambda lp: lp["w_in_s"].T[:, :2 * C]),   # (C, L*2C) == (32, 128)
        # cross-attention
        wqc=st(lambda lp: lp["w_in_c"].T[:, :C]),     # (L, C, C)
        bqc=st(lambda lp: lp["b_in_c"][:, :C]),       # (L, 1, C)
        woc=st(lambda lp: lp["w_out_c"].T),           # (L, C, C)
        boc=st(lambda lp: lp["b_out_c"]),             # (L, 1, C)
        wqpc=cat(lambda lp: lp["w_in_c"].T[:, :C]),           # (C, L*C)
        wkc=cat(lambda lp: lp["w_in_c"].T[:, C:2 * C]),       # (C, L*C)
        bkc=cat(lambda lp: lp["b_in_c"][:, C:2 * C]),         # (1, L*C)
        wvc=cat(lambda lp: lp["w_in_c"].T[:, 2 * C:]),        # (C, L*C)
        bvc=cat(lambda lp: lp["b_in_c"][:, 2 * C:]),          # (1, L*C)
        # layernorms
        g1=st(lambda lp: lp["g1"]), be1=st(lambda lp: lp["be1"]),
        g2=st(lambda lp: lp["g2"]), be2=st(lambda lp: lp["be2"]),
        g3=st(lambda lp: lp["g3"]), be3=st(lambda lp: lp["be3"]),
        # FFN
        w1=st(lambda lp: lp["w1"].T), bl1=st(lambda lp: lp["bl1"]),
        w2=st(lambda lp: lp["w2"].T), bl2=st(lambda lp: lp["bl2"]),
        # final norm
        norm_g=params["norm_g"], norm_be=params["norm_be"],
    )


# ----------------------- TransformerDecoder.forward --------------------------
def transformer_decoder(tgt, memory, prepared, query_pos=None, pos=None):
    """tgt: (Q, B, C), memory: (T, B, C).  return_intermediate=False path:
    returns (output (Q, B, C), atten_layers: list of (B, Q, T))."""
    Q, B, C = tgt.shape
    T = memory.shape[0]
    if query_pos is None:
        query_pos = jnp.zeros_like(tgt)
    if pos is None:
        pos = jnp.zeros_like(memory)

    # glue: (L, B, C) -> (B*L, C) slabs for the fused kernel
    def to2d(x, L):
        return jnp.transpose(x, (1, 0, 2)).reshape(B * L, C)

    tgt2 = to2d(tgt, Q)
    qp2 = to2d(query_pos, Q)
    mem2 = to2d(memory, T)
    pos2 = to2d(pos, T)

    out2, attn = decoder_call(tgt2, mem2, qp2, pos2, prepared)

    output = jnp.transpose(out2.reshape(B, Q, C), (1, 0, 2))      # (Q, B, C)
    atten_layers = [attn[l] for l in range(NUM_LAYERS)]            # list of (B, Q, T)
    return output, atten_layers


# ----------------------------------- main ------------------------------------
if __name__ == "__main__":
    key = jax.random.PRNGKey(0)
    k1, k2, k3, k4, k5 = jax.random.split(key, 5)

    tgt = jax.random.normal(k1, (NUM_QUERIES, BATCH, D_MODEL), jnp.float32)
    memory = jax.random.normal(k2, (MEM_LEN, BATCH, D_MODEL), jnp.float32)
    query_pos = jax.random.normal(k3, (NUM_QUERIES, BATCH, D_MODEL), jnp.float32)
    pos = jax.random.normal(k4, (MEM_LEN, BATCH, D_MODEL), jnp.float32)

    params = init_params(k5)
    prepared = prepare_params(params)   # one-time: transposes + stacking/concat hoisted here

    fwd = jax.jit(transformer_decoder)
    output, atten_layers = fwd(tgt, memory, prepared, query_pos, pos)
    output = jax.block_until_ready(output)
    atten_layers = [jax.block_until_ready(a) for a in atten_layers]

    assert output.shape == (NUM_QUERIES, BATCH, D_MODEL)
    assert len(atten_layers) == NUM_LAYERS
    assert atten_layers[0].shape == (BATCH, NUM_QUERIES, MEM_LEN)
    assert bool(jnp.all(jnp.isfinite(output)))
    assert bool(jnp.all(jnp.isfinite(atten_layers[0])))

    print("KERNEL_OK")
</pallas_src>

<mosaic_0001>
module attributes {stable_mosaic.version = 11 : i64} {
  func.func @decoder_kernel(%arg0: memref<16x32xf32, #tpu.memory_space<vmem>>, %arg1: memref<32x32xf32, #tpu.memory_space<vmem>>, %arg2: memref<16x32xf32, #tpu.memory_space<vmem>>, %arg3: memref<32x32xf32, #tpu.memory_space<vmem>>, %arg4: memref<2x32x96xf32, #tpu.memory_space<vmem>>, %arg5: memref<2x1x96xf32, #tpu.memory_space<vmem>>, %arg6: memref<2x32x32xf32, #tpu.memory_space<vmem>>, %arg7: memref<2x1x32xf32, #tpu.memory_space<vmem>>, %arg8: memref<32x128xf32, #tpu.memory_space<vmem>>, %arg9: memref<2x32x32xf32, #tpu.memory_space<vmem>>, %arg10: memref<2x1x32xf32, #tpu.memory_space<vmem>>, %arg11: memref<2x32x32xf32, #tpu.memory_space<vmem>>, %arg12: memref<2x1x32xf32, #tpu.memory_space<vmem>>, %arg13: memref<32x64xf32, #tpu.memory_space<vmem>>, %arg14: memref<32x64xf32, #tpu.memory_space<vmem>>, %arg15: memref<1x64xf32, #tpu.memory_space<vmem>>, %arg16: memref<32x64xf32, #tpu.memory_space<vmem>>, %arg17: memref<1x64xf32, #tpu.memory_space<vmem>>, %arg18: memref<2x1x32xf32, #tpu.memory_space<vmem>>, %arg19: memref<2x1x32xf32, #tpu.memory_space<vmem>>, %arg20: memref<2x1x32xf32, #tpu.memory_space<vmem>>, %arg21: memref<2x1x32xf32, #tpu.memory_space<vmem>>, %arg22: memref<2x1x32xf32, #tpu.memory_space<vmem>>, %arg23: memref<2x1x32xf32, #tpu.memory_space<vmem>>, %arg24: memref<2x32x64xf32, #tpu.memory_space<vmem>>, %arg25: memref<2x1x64xf32, #tpu.memory_space<vmem>>, %arg26: memref<2x64x32xf32, #tpu.memory_space<vmem>>, %arg27: memref<2x1x32xf32, #tpu.memory_space<vmem>>, %arg28: memref<1x32xf32, #tpu.memory_space<vmem>>, %arg29: memref<1x32xf32, #tpu.memory_space<vmem>>, %arg30: memref<16x32xf32, #tpu.memory_space<vmem>>, %arg31: memref<2x2x8x16xf32, #tpu.memory_space<vmem>>) attributes {dimension_semantics = [], scalar_prefetch = 0 : i64, scratch_operands = 0 : i64, tpu.core_type = #tpu.core_type<tc>} {
    %c0 = arith.constant 0 : index
    %c0_0 = arith.constant 0 : index
    %0 = vector.load %arg0[%c0, %c0_0] : memref<16x32xf32, #tpu.memory_space<vmem>>, vector<16x32xf32>
    %c0_1 = arith.constant 0 : index
    %c0_2 = arith.constant 0 : index
    %1 = vector.load %arg1[%c0_1, %c0_2] : memref<32x32xf32, #tpu.memory_space<vmem>>, vector<32x32xf32>
    %c0_3 = arith.constant 0 : index
    %c0_4 = arith.constant 0 : index
    %2 = vector.load %arg2[%c0_3, %c0_4] : memref<16x32xf32, #tpu.memory_space<vmem>>, vector<16x32xf32>
    %c0_5 = arith.constant 0 : index
    %c0_6 = arith.constant 0 : index
    %3 = vector.load %arg3[%c0_5, %c0_6] : memref<32x32xf32, #tpu.memory_space<vmem>>, vector<32x32xf32>
    %4 = arith.addf %1, %3 : vector<32x32xf32>
    %c0_7 = arith.constant 0 : index
    %c0_8 = arith.constant 0 : index
    %5 = vector.load %arg8[%c0_7, %c0_8] : memref<32x128xf32, #tpu.memory_space<vmem>>, vector<32x128xf32>
    %cst = arith.constant dense<0.000000e+00> : vector<16x128xf32>
    %6 = tpu.matmul %2, %5, %cst {dimension_numbers = #tpu.dot_dimension_numbers<[1], [0], [0], [1], [0, 0, 1, 1], [], []>} : vector<16x32xf32>, vector<32x128xf32>, vector<16x128xf32> -> vector<16x128xf32>
    %c0_9 = arith.constant 0 : index
    %c0_10 = arith.constant 0 : index
    %7 = vector.load %arg13[%c0_9, %c0_10] : memref<32x64xf32, #tpu.memory_space<vmem>>, vector<32x64xf32>
    %cst_11 = arith.constant dense<0.000000e+00> : vector<16x64xf32>
    %8 = tpu.matmul %2, %7, %cst_11 {dimension_numbers = #tpu.dot_dimension_numbers<[1], [0], [0], [1], [0, 0, 1, 1], [], []>} : vector<16x32xf32>, vector<32x64xf32>, vector<16x64xf32> -> vector<16x64xf32>
    %c0_12 = arith.constant 0 : index
    %c0_13 = arith.constant 0 : index
    %9 = vector.load %arg14[%c0_12, %c0_13] : memref<32x64xf32, #tpu.memory_space<vmem>>, vector<32x64xf32>
    %cst_14 = arith.constant dense<0.000000e+00> : vector<32x64xf32>
    %10 = tpu.matmul %4, %9, %cst_14 {dimension_numbers = #tpu.dot_dimension_numbers<[1], [0], [0], [1], [0, 0, 1, 1], [], []>} : vector<32x32xf32>, vector<32x64xf32>, vector<32x64xf32> -> vector<32x64xf32>
    %c0_15 = arith.constant 0 : index
    %c0_16 = arith.constant 0 : index
    %11 = vector.load %arg15[%c0_15, %c0_16] : memref<1x64xf32, #tpu.memory_space<vmem>>, vector<1x64xf32>
    %12 = vector.broadcast %11 : vector<1x64xf32> to vector<32x64xf32>
    %13 = arith.addf %10, %12 : vector<32x64xf32>
    %c0_17 = arith.constant 0 : index
    %c0_18 = arith.constant 0 : index
    %14 = vector.load %arg16[%c0_17, %c0_18] : memref<32x64xf32, #tpu.memory_space<vmem>>, vector<32x64xf32>
    %cst_19 = arith.constant dense<0.000000e+00> : vector<32x64xf32>
    %15 = tpu.matmul %1, %14, %cst_19 {dimension_numbers = #tpu.dot_dimension_numbers<[1], [0], [0], [1], [0, 0, 1, 1], [], []>} : vector<32x32xf32>, vector<32x64xf32>, vector<32x64xf32> -> vector<32x64xf32>
    %c0_20 = arith.constant 0 : index
    %c0_21 = arith.constant 0 : index
    %16 = vector.load %arg17[%c0_20, %c0_21] : memref<1x64xf32, #tpu.memory_space<vmem>>, vector<1x64xf32>
    %17 = vector.broadcast %16 : vector<1x64xf32> to vector<32x64xf32>
    %18 = arith.addf %15, %17 : vector<32x64xf32>
    %c0_22 = arith.constant 0 : index
    %c0_23 = arith.constant 0 : index
    %c0_24 = arith.constant 0 : index
    %19 = vector.load %arg4[%c0_22, %c0_23, %c0_24] : memref<2x32x96xf32, #tpu.memory_space<vmem>>, vector<1x32x96xf32>
    %20 = vector.shape_cast %19 : vector<1x32x96xf32> to vector<32x96xf32>
    %cst_25 = arith.constant dense<0.000000e+00> : vector<16x96xf32>
    %21 = tpu.matmul %0, %20, %cst_25 {dimension_numbers = #tpu.dot_dimension_numbers<[1], [0], [0], [1], [0, 0, 1, 1], [], []>} : vector<16x32xf32>, vector<32x96xf32>, vector<16x96xf32> -> vector<16x96xf32>
    %c0_26 = arith.constant 0 : index
    %c0_27 = arith.constant 0 : index
    %c0_28 = arith.constant 0 : index
    %22 = vector.load %arg5[%c0_26, %c0_27, %c0_28] : memref<2x1x96xf32, #tpu.memory_space<vmem>>, vector<1x1x96xf32>
    %23 = vector.shape_cast %22 : vector<1x1x96xf32> to vector<1x96xf32>
    %24 = vector.broadcast %23 : vector<1x96xf32> to vector<16x96xf32>
    %25 = arith.addf %21, %24 : vector<16x96xf32>
    %26 = vector.extract_strided_slice %25 {offsets = [0, 0], sizes = [16, 32], strides = [1, 1]} : vector<16x96xf32> to vector<16x32xf32>
    %27 = vector.extract_strided_slice %6 {offsets = [0, 0], sizes = [16, 32], strides = [1, 1]} : vector<16x128xf32> to vector<16x32xf32>
    %28 = arith.addf %26, %27 : vector<16x32xf32>
    %29 = vector.extract_strided_slice %25 {offsets = [0, 32], sizes = [16, 32], strides = [1, 1]} : vector<16x96xf32> to vector<16x32xf32>
    %30 = vector.extract_strided_slice %6 {offsets = [0, 32], sizes = [16, 32], strides = [1, 1]} : vector<16x128xf32> to vector<16x32xf32>
    %31 = arith.addf %29, %30 : vector<16x32xf32>
    %32 = vector.extract_strided_slice %25 {offsets = [0, 64], sizes = [16, 32], strides = [1, 1]} : vector<16x96xf32> to vector<16x32xf32>
    %c0_29 = arith.constant 0 : index
    %c0_30 = arith.constant 0 : index
    %c0_31 = arith.constant 0 : index
    %33 = vector.load %arg6[%c0_29, %c0_30, %c0_31] : memref<2x32x32xf32, #tpu.memory_space<vmem>>, vector<1x32x32xf32>
    %34 = vector.shape_cast %33 : vector<1x32x32xf32> to vector<32x32xf32>
    %cst_32 = arith.constant 0.000000e+00 : f32
    %35 = vector.broadcast %cst_32 : f32 to vector<16x32xf32>
    %36 = vector.extract_strided_slice %28 {offsets = [0, 0], sizes = [16, 8], strides = [1, 1]} : vector<16x32xf32> to vector<16x8xf32>
    %cst_33 = arith.constant 0.353553385 : f32
    %37 = vector.broadcast %cst_33 : f32 to vector<16x8xf32>
    %38 = arith.mulf %36, %37 : vector<16x8xf32>
    %39 = vector.shape_cast %38 : vector<16x8xf32> to vector<2x8x8xf32>
    %40 = vector.extract_strided_slice %31 {offsets = [0, 0], sizes = [16, 8], strides = [1, 1]} : vector<16x32xf32> to vector<16x8xf32>
    %41 = vector.shape_cast %40 : vector<16x8xf32> to vector<2x8x8xf32>
    %42 = vector.extract_strided_slice %32 {offsets = [0, 0], sizes = [16, 8], strides = [1, 1]} : vector<16x32xf32> to vector<16x8xf32>
    %43 = vector.shape_cast %42 : vector<16x8xf32> to vector<2x8x8xf32>
    "tpu.trace_start"() <{level = 10 : i32, message = "bqd,bkd->bqk"}> : () -> ()
    %cst_34 = arith.constant dense<0.000000e+00> : vector<2x8x8xf32>
    %44 = tpu.matmul %39, %41, %cst_34 {dimension_numbers = #tpu.dot_dimension_numbers<[2], [2], [1], [1], [0, 0, 0, 1, 1, 1], [0], [0]>} : vector<2x8x8xf32>, vector<2x8x8xf32>, vector<2x8x8xf32> -> vector<2x8x8xf32>
    "tpu.trace_stop"() : () -> ()
    %cst_35 = arith.constant dense<0xFF800000> : vector<2x8xf32>
    %45 = vector.multi_reduction <maximumf>, %44, %cst_35 [2] : vector<2x8x8xf32> to vector<2x8xf32>
    %46 = vector.shape_cast %45 : vector<2x8xf32> to vector<2x8x1xf32>
    %47 = vector.broadcast %46 : vector<2x8x1xf32> to vector<2x8x8xf32>
    %48 = arith.subf %44, %47 : vector<2x8x8xf32>
    %49 = math.exp %48 : vector<2x8x8xf32>
    %cst_36 = arith.constant dense<0.000000e+00> : vector<2x8xf32>
    %50 = vector.multi_reduction <add>, %49, %cst_36 [2] : vector<2x8x8xf32> to vector<2x8xf32>
    %51 = vector.shape_cast %50 : vector<2x8xf32> to vector<2x8x1xf32>
    %52 = vector.broadcast %51 : vector<2x8x1xf32> to vector<2x8x8xf32>
    %53 = arith.divf %49, %52 : vector<2x8x8xf32>
    "tpu.trace_start"() <{level = 10 : i32, message = "bqk,bkd->bqd"}> : () -> ()
    %cst_37 = arith.constant dense<0.000000e+00> : vector<2x8x8xf32>
    %54 = tpu.matmul %53, %43, %cst_37 {dimension_numbers = #tpu.dot_dimension_numbers<[2], [1], [1], [2], [0, 0, 0, 1, 1, 2], [0], [0]>} : vector<2x8x8xf32>, vector<2x8x8xf32>, vector<2x8x8xf32> -> vector<2x8x8xf32>
    "tpu.trace_stop"() : () -> ()
    %55 = vector.shape_cast %54 : vector<2x8x8xf32> to vector<16x8xf32>
    %56 = vector.extract_strided_slice %34 {offsets = [0, 0], sizes = [8, 32], strides = [1, 1]} : vector<32x32xf32> to vector<8x32xf32>
    %cst_38 = arith.constant dense<0.000000e+00> : vector<16x32xf32>
    %57 = tpu.matmul %55, %56, %cst_38 {dimension_numbers = #tpu.dot_dimension_numbers<[1], [0], [0], [1], [0, 0, 1, 1], [], []>} : vector<16x8xf32>, vector<8x32xf32>, vector<16x32xf32> -> vector<16x32xf32>
    %58 = arith.addf %35, %57 : vector<16x32xf32>
    %59 = vector.extract_strided_slice %28 {offsets = [0, 8], sizes = [16, 8], strides = [1, 1]} : vector<16x32xf32> to vector<16x8xf32>
    %cst_39 = arith.constant 0.353553385 : f32
    %60 = vector.broadcast %cst_39 : f32 to vector<16x8xf32>
    %61 = arith.mulf %59, %60 : vector<16x8xf32>
    %62 = vector.shape_cast %61 : vector<16x8xf32> to vector<2x8x8xf32>
    %63 = vector.extract_strided_slice %31 {offsets = [0, 8], sizes = [16, 8], strides = [1, 1]} : vector<16x32xf32> to vector<16x8xf32>
    %64 = vector.shape_cast %63 : vector<16x8xf32> to vector<2x8x8xf32>
    %65 = vector.extract_strided_slice %32 {offsets = [0, 8], sizes = [16, 8], strides = [1, 1]} : vector<16x32xf32> to vector<16x8xf32>
    %66 = vector.shape_cast %65 : vector<16x8xf32> to vector<2x8x8xf32>
    "tpu.trace_start"() <{level = 10 : i32, message = "bqd,bkd->bqk"}> : () -> ()
    %cst_40 = arith.constant dense<0.000000e+00> : vector<2x8x8xf32>
    %67 = tpu.matmul %62, %64, %cst_40 {dimension_numbers = #tpu.dot_dimension_numbers<[2], [2], [1], [1], [0, 0, 0, 1, 1, 1], [0], [0]>} : vector<2x8x8xf32>, vector<2x8x8xf32>, vector<2x8x8xf32> -> vector<2x8x8xf32>
    "tpu.trace_stop"() : () -> ()
    %cst_41 = arith.constant dense<0xFF800000> : vector<2x8xf32>
    %68 = vector.multi_reduction <maximumf>, %67, %cst_41 [2] : vector<2x8x8xf32> to vector<2x8xf32>
    %69 = vector.shape_cast %68 : vector<2x8xf32> to vector<2x8x1xf32>
    %70 = vector.broadcast %69 : vector<2x8x1xf32> to vector<2x8x8xf32>
    %71 = arith.subf %67, %70 : vector<2x8x8xf32>
    %72 = math.exp %71 : vector<2x8x8xf32>
    %cst_42 = arith.constant dense<0.000000e+00> : vector<2x8xf32>
    %73 = vector.multi_reduction <add>, %72, %cst_42 [2] : vector<2x8x8xf32> to vector<2x8xf32>
    %74 = vector.shape_cast %73 : vector<2x8xf32> to vector<2x8x1xf32>
    %75 = vector.broadcast %74 : vector<2x8x1xf32> to vector<2x8x8xf32>
    %76 = arith.divf %72, %75 : vector<2x8x8xf32>
    "tpu.trace_start"() <{level = 10 : i32, message = "bqk,bkd->bqd"}> : () -> ()
    %cst_43 = arith.constant dense<0.000000e+00> : vector<2x8x8xf32>
    %77 = tpu.matmul %76, %66, %cst_43 {dimension_numbers = #tpu.dot_dimension_numbers<[2], [1], [1], [2], [0, 0, 0, 1, 1, 2], [0], [0]>} : vector<2x8x8xf32>, vector<2x8x8xf32>, vector<2x8x8xf32> -> vector<2x8x8xf32>
    "tpu.trace_stop"() : () -> ()
    %78 = vector.shape_cast %77 : vector<2x8x8xf32> to vector<16x8xf32>
    %79 = vector.extract_strided_slice %34 {offsets = [8, 0], sizes = [8, 32], strides = [1, 1]} : vector<32x32xf32> to vector<8x32xf32>
    %cst_44 = arith.constant dense<0.000000e+00> : vector<16x32xf32>
    %80 = tpu.matmul %78, %79, %cst_44 {dimension_numbers = #tpu.dot_dimension_numbers<[1], [0], [0], [1], [0, 0, 1, 1], [], []>} : vector<16x8xf32>, vector<8x32xf32>, vector<16x32xf32> -> vector<16x32xf32>
    %81 = arith.addf %58, %80 : vector<16x32xf32>
    %82 = vector.extract_strided_slice %28 {offsets = [0, 16], sizes = [16, 8], strides = [1, 1]} : vector<16x32xf32> to vector<16x8xf32>
    %cst_45 = arith.constant 0.353553385 : f32
    %83 = vector.broadcast %cst_45 : f32 to vector<16x8xf32>
    %84 = arith.mulf %82, %83 : vector<16x8xf32>
    %85 = vector.shape_cast %84 : vector<16x8xf32> to vector<2x8x8xf32>
    %86 = vector.extract_strided_slice %31 {offsets = [0, 16], sizes = [16, 8], strides = [1, 1]} : vector<16x32xf32> to vector<16x8xf32>
    %87 = vector.shape_cast %86 : vector<16x8xf32> to vector<2x8x8xf32>
    %88 = vector.extract_strided_slice %32 {offsets = [0, 16], sizes = [16, 8], strides = [1, 1]} : vector<16x32xf32> to vector<16x8xf32>
    %89 = vector.shape_cast %88 : vector<16x8xf32> to vector<2x8x8xf32>
    "tpu.trace_start"() <{level = 10 : i32, message = "bqd,bkd->bqk"}> : () -> ()
    %cst_46 = arith.constant dense<0.000000e+00> : vector<2x8x8xf32>
    %90 = tpu.matmul %85, %87, %cst_46 {dimension_numbers = #tpu.dot_dimension_numbers<[2], [2], [1], [1], [0, 0, 0, 1, 1, 1], [0], [0]>} : vector<2x8x8xf32>, vector<2x8x8xf32>, vector<2x8x8xf32> -> vector<2x8x8xf32>
    "tpu.trace_stop"() : () -> ()
    %cst_47 = arith.constant dense<0xFF800000> : vector<2x8xf32>
    %91 = vector.multi_reduction <maximumf>, %90, %cst_47 [2] : vector<2x8x8xf32> to vector<2x8xf32>
    %92 = vector.shape_cast %91 : vector<2x8xf32> to vector<2x8x1xf32>
    %93 = vector.broadcast %92 : vector<2x8x1xf32> to vector<2x8x8xf32>
    %94 = arith.subf %90, %93 : vector<2x8x8xf32>
    %95 = math.exp %94 : vector<2x8x8xf32>
    %cst_48 = arith.constant dense<0.000000e+00> : vector<2x8xf32>
    %96 = vector.multi_reduction <add>, %95, %cst_48 [2] : vector<2x8x8xf32> to vector<2x8xf32>
    %97 = vector.shape_cast %96 : vector<2x8xf32> to vector<2x8x1xf32>
    %98 = vector.broadcast %97 : vector<2x8x1xf32> to vector<2x8x8xf32>
    %99 = arith.divf %95, %98 : vector<2x8x8xf32>
    "tpu.trace_start"() <{level = 10 : i32, message = "bqk,bkd->bqd"}> : () -> ()
    %cst_49 = arith.constant dense<0.000000e+00> : vector<2x8x8xf32>
    %100 = tpu.matmul %99, %89, %cst_49 {dimension_numbers = #tpu.dot_dimension_numbers<[2], [1], [1], [2], [0, 0, 0, 1, 1, 2], [0], [0]>} : vector<2x8x8xf32>, vector<2x8x8xf32>, vector<2x8x8xf32> -> vector<2x8x8xf32>
    "tpu.trace_stop"() : () -> ()
    %101 = vector.shape_cast %100 : vector<2x8x8xf32> to vector<16x8xf32>
    %102 = vector.extract_strided_slice %34 {offsets = [16, 0], sizes = [8, 32], strides = [1, 1]} : vector<32x32xf32> to vector<8x32xf32>
    %cst_50 = arith.constant dense<0.000000e+00> : vector<16x32xf32>
    %103 = tpu.matmul %101, %102, %cst_50 {dimension_numbers = #tpu.dot_dimension_numbers<[1], [0], [0], [1], [0, 0, 1, 1], [], []>} : vector<16x8xf32>, vector<8x32xf32>, vector<16x32xf32> -> vector<16x32xf32>
    %104 = arith.addf %81, %103 : vector<16x32xf32>
    %105 = vector.extract_strided_slice %28 {offsets = [0, 24], sizes = [16, 8], strides = [1, 1]} : vector<16x32xf32> to vector<16x8xf32>
    %cst_51 = arith.constant 0.353553385 : f32
    %106 = vector.broadcast %cst_51 : f32 to vector<16x8xf32>
    %107 = arith.mulf %105, %106 : vector<16x8xf32>
    %108 = vector.shape_cast %107 : vector<16x8xf32> to vector<2x8x8xf32>
    %109 = vector.extract_strided_slice %31 {offsets = [0, 24], sizes = [16, 8], strides = [1, 1]} : vector<16x32xf32> to vector<16x8xf32>
    %110 = vector.shape_cast %109 : vector<16x8xf32> to vector<2x8x8xf32>
    %111 = vector.extract_strided_slice %32 {offsets = [0, 24], sizes = [16, 8], strides = [1, 1]} : vector<16x32xf32> to vector<16x8xf32>
    %112 = vector.shape_cast %111 : vector<16x8xf32> to vector<2x8x8xf32>
    "tpu.trace_start"() <{level = 10 : i32, message = "bqd,bkd->bqk"}> : () -> ()
    %cst_52 = arith.constant dense<0.000000e+00> : vector<2x8x8xf32>
    %113 = tpu.matmul %108, %110, %cst_52 {dimension_numbers = #tpu.dot_dimension_numbers<[2], [2], [1], [1], [0, 0, 0, 1, 1, 1], [0], [0]>} : vector<2x8x8xf32>, vector<2x8x8xf32>, vector<2x8x8xf32> -> vector<2x8x8xf32>
    "tpu.trace_stop"() : () -> ()
    %cst_53 = arith.constant dense<0xFF800000> : vector<2x8xf32>
    %114 = vector.multi_reduction <maximumf>, %113, %cst_53 [2] : vector<2x8x8xf32> to vector<2x8xf32>
    %115 = vector.shape_cast %114 : vector<2x8xf32> to vector<2x8x1xf32>
    %116 = vector.broadcast %115 : vector<2x8x1xf32> to vector<2x8x8xf32>
    %117 = arith.subf %113, %116 : vector<2x8x8xf32>
    %118 = math.exp %117 : vector<2x8x8xf32>
    %cst_54 = arith.constant dense<0.000000e+00> : vector<2x8xf32>
    %119 = vector.multi_reduction <add>, %118, %cst_54 [2] : vector<2x8x8xf32> to vector<2x8xf32>
    %120 = vector.shape_cast %119 : vector<2x8xf32> to vector<2x8x1xf32>
    %121 = vector.broadcast %120 : vector<2x8x1xf32> to vector<2x8x8xf32>
    %122 = arith.divf %118, %121 : vector<2x8x8xf32>
    "tpu.trace_start"() <{level = 10 : i32, message = "bqk,bkd->bqd"}> : () -> ()
    %cst_55 = arith.constant dense<0.000000e+00> : vector<2x8x8xf32>
    %123 = tpu.matmul %122, %112, %cst_55 {dimension_numbers = #tpu.dot_dimension_numbers<[2], [1], [1], [2], [0, 0, 0, 1, 1, 2], [0], [0]>} : vector<2x8x8xf32>, vector<2x8x8xf32>, vector<2x8x8xf32> -> vector<2x8x8xf32>
    "tpu.trace_stop"() : () -> ()
    %124 = vector.shape_cast %123 : vector<2x8x8xf32> to vector<16x8xf32>
    %125 = vector.extract_strided_slice %34 {offsets = [24, 0], sizes = [8, 32], strides = [1, 1]} : vector<32x32xf32> to vector<8x32xf32>
    %cst_56 = arith.constant dense<0.000000e+00> : vector<16x32xf32>
    %126 = tpu.matmul %124, %125, %cst_56 {dimension_numbers = #tpu.dot_dimension_numbers<[1], [0], [0], [1], [0, 0, 1, 1], [], []>} : vector<16x8xf32>, vector<8x32xf32>, vector<16x32xf32> -> vector<16x32xf32>
    %127 = arith.addf %104, %126 : vector<16x32xf32>
    %128 = arith.addf %0, %127 : vector<16x32xf32>
    %c0_57 = arith.constant 0 : index
    %c0_58 = arith.constant 0 : index
    %c0_59 = arith.constant 0 : index
    %129 = vector.load %arg7[%c0_57, %c0_58, %c0_59] : memref<2x1x32xf32, #tpu.memory_space<vmem>>, vector<1x1x32xf32>
    %130 = vector.shape_cast %129 : vector<1x1x32xf32> to vector<1x32xf32>
    %131 = vector.broadcast %130 : vector<1x32xf32> to vector<16x32xf32>
    %132 = arith.addf %128, %131 : vector<16x32xf32>
    %c0_60 = arith.constant 0 : index
    %c0_61 = arith.constant 0 : index
    %c0_62 = arith.constant 0 : index
    %133 = vector.load %arg18[%c0_60, %c0_61, %c0_62] : memref<2x1x32xf32, #tpu.memory_space<vmem>>, vector<1x1x32xf32>
    %134 = vector.shape_cast %133 : vector<1x1x32xf32> to vector<1x32xf32>
    %c0_63 = arith.constant 0 : index
    %c0_64 = arith.constant 0 : index
    %c0_65 = arith.constant 0 : index
    %135 = vector.load %arg19[%c0_63, %c0_64, %c0_65] : memref<2x1x32xf32, #tpu.memory_space<vmem>>, vector<1x1x32xf32>
    %136 = vector.shape_cast %135 : vector<1x1x32xf32> to vector<1x32xf32>
    %cst_66 = arith.constant dense<0.000000e+00> : vector<16xf32>
    %137 = vector.multi_reduction <add>, %132, %cst_66 [1] : vector<16x32xf32> to vector<16xf32>
    %138 = vector.shape_cast %137 : vector<16xf32> to vector<16x1xf32>
    %cst_67 = arith.constant 3.200000e+01 : f32
    %139 = vector.broadcast %cst_67 : f32 to vector<16x1xf32>
    %140 = arith.divf %138, %139 : vector<16x1xf32>
    %141 = vector.broadcast %140 : vector<16x1xf32> to vector<16x32xf32>
    %142 = arith.subf %132, %141 : vector<16x32xf32>
    %143 = arith.mulf %142, %142 : vector<16x32xf32>
    %cst_68 = arith.constant dense<0.000000e+00> : vector<16xf32>
    %144 = vector.multi_reduction <add>, %143, %cst_68 [1] : vector<16x32xf32> to vector<16xf32>
    %145 = vector.shape_cast %144 : vector<16xf32> to vector<16x1xf32>
    %cst_69 = arith.constant 3.200000e+01 : f32
    %146 = vector.broadcast %cst_69 : f32 to vector<16x1xf32>
    %147 = arith.divf %145, %146 : vector<16x1xf32>
    %cst_70 = arith.constant 9.99999974E-6 : f32
    %148 = vector.broadcast %cst_70 : f32 to vector<16x1xf32>
    %149 = arith.addf %147, %148 : vector<16x1xf32>
    %150 = math.rsqrt %149 : vector<16x1xf32>
    %151 = vector.broadcast %150 : vector<16x1xf32> to vector<16x32xf32>
    %152 = arith.mulf %142, %151 : vector<16x32xf32>
    %153 = vector.broadcast %134 : vector<1x32xf32> to vector<16x32xf32>
    %154 = arith.mulf %152, %153 : vector<16x32xf32>
    %155 = vector.broadcast %136 : vector<1x32xf32> to vector<16x32xf32>
    %156 = arith.addf %154, %155 : vector<16x32xf32>
    %c0_71 = arith.constant 0 : index
    %c0_72 = arith.constant 0 : index
    %c0_73 = arith.constant 0 : index
    %157 = vector.load %arg9[%c0_71, %c0_72, %c0_73] : memref<2x32x32xf32, #tpu.memory_space<vmem>>, vector<1x32x32xf32>
    %158 = vector.shape_cast %157 : vector<1x32x32xf32> to vector<32x32xf32>
    %cst_74 = arith.constant dense<0.000000e+00> : vector<16x32xf32>
    %159 = tpu.matmul %156, %158, %cst_74 {dimension_numbers = #tpu.dot_dimension_numbers<[1], [0], [0], [1], [0, 0, 1, 1], [], []>} : vector<16x32xf32>, vector<32x32xf32>, vector<16x32xf32> -> vector<16x32xf32>
    %c0_75 = arith.constant 0 : index
    %c0_76 = arith.constant 0 : index
    %c0_77 = arith.constant 0 : index
    %160 = vector.load %arg10[%c0_75, %c0_76, %c0_77] : memref<2x1x32xf32, #tpu.memory_space<vmem>>, vector<1x1x32xf32>
    %161 = vector.shape_cast %160 : vector<1x1x32xf32> to vector<1x32xf32>
    %162 = vector.broadcast %161 : vector<1x32xf32> to vector<16x32xf32>
    %163 = arith.addf %159, %162 : vector<16x32xf32>
    %164 = vector.extract_strided_slice %8 {offsets = [0, 0], sizes = [16, 32], strides = [1, 1]} : vector<16x64xf32> to vector<16x32xf32>
    %165 = arith.addf %163, %164 : vector<16x32xf32>
    %166 = vector.extract_strided_slice %13 {offsets = [0, 0], sizes = [32, 32], strides = [1, 1]} : vector<32x64xf32> to vector<32x32xf32>
    %167 = vector.extract_strided_slice %18 {offsets = [0, 0], sizes = [32, 32], strides = [1, 1]} : vector<32x64xf32> to vector<32x32xf32>
    %c0_78 = arith.constant 0 : index
    %c0_79 = arith.constant 0 : index
    %c0_80 = arith.constant 0 : index
    %168 = vector.load %arg11[%c0_78, %c0_79, %c0_80] : memref<2x32x32xf32, #tpu.memory_space<vmem>>, vector<1x32x32xf32>
    %169 = vector.shape_cast %168 : vector<1x32x32xf32> to vector<32x32xf32>
    %cst_81 = arith.constant 0.000000e+00 : f32
    %170 = vector.broadcast %cst_81 : f32 to vector<16x32xf32>
    %cst_82 = arith.constant 0.000000e+00 : f32
    %171 = vector.broadcast %cst_82 : f32 to vector<2x8x16xf32>
    %172 = vector.extract_strided_slice %165 {offsets = [0, 0], sizes = [16, 8], strides = [1, 1]} : vector<16x32xf32> to vector<16x8xf32>
    %cst_83 = arith.constant 0.353553385 : f32
    %173 = vector.broadcast %cst_83 : f32 to vector<16x8xf32>
    %174 = arith.mulf %172, %173 : vector<16x8xf32>
    %175 = vector.shape_cast %174 : vector<16x8xf32> to vector<2x8x8xf32>
    %176 = vector.extract_strided_slice %166 {offsets = [0, 0], sizes = [32, 8], strides = [1, 1]} : vector<32x32xf32> to vector<32x8xf32>
    %177 = vector.shape_cast %176 : vector<32x8xf32> to vector<2x16x8xf32>
    %178 = vector.extract_strided_slice %167 {offsets = [0, 0], sizes = [32, 8], strides = [1, 1]} : vector<32x32xf32> to vector<32x8xf32>
    %179 = vector.shape_cast %178 : vector<32x8xf32> to vector<2x16x8xf32>
    "tpu.trace_start"() <{level = 10 : i32, message = "bqd,bkd->bqk"}> : () -> ()
    %cst_84 = arith.constant dense<0.000000e+00> : vector<2x8x16xf32>
    %180 = tpu.matmul %175, %177, %cst_84 {dimension_numbers = #tpu.dot_dimension_numbers<[2], [2], [1], [1], [0, 0, 0, 1, 1, 1], [0], [0]>} : vector<2x8x8xf32>, vector<2x16x8xf32>, vector<2x8x16xf32> -> vector<2x8x16xf32>
    "tpu.trace_stop"() : () -> ()
    %cst_85 = arith.constant dense<0xFF800000> : vector<2x8xf32>
    %181 = vector.multi_reduction <maximumf>, %180, %cst_85 [2] : vector<2x8x16xf32> to vector<2x8xf32>
    %182 = vector.shape_cast %181 : vector<2x8xf32> to vector<2x8x1xf32>
    %183 = vector.broadcast %182 : vector<2x8x1xf32> to vector<2x8x16xf32>
    %184 = arith.subf %180, %183 : vector<2x8x16xf32>
    %185 = math.exp %184 : vector<2x8x16xf32>
    %cst_86 = arith.constant dense<0.000000e+00> : vector<2x8xf32>
    %186 = vector.multi_reduction <add>, %185, %cst_86 [2] : vector<2x8x16xf32> to vector<2x8xf32>
    %187 = vector.shape_cast %186 : vector<2x8xf32> to vector<2x8x1xf32>
    %188 = vector.broadcast %187 : vector<2x8x1xf32> to vector<2x8x16xf32>
    %189 = arith.divf %185, %188 : vector<2x8x16xf32>
    "tpu.trace_start"() <{level = 10 : i32, message = "bqk,bkd->bqd"}> : () -> ()
    %cst_87 = arith.constant dense<0.000000e+00> : vector<2x8x8xf32>
    %190 = tpu.matmul %189, %179, %cst_87 {dimension_numbers = #tpu.dot_dimension_numbers<[2], [1], [1], [2], [0, 0, 0, 1, 1, 2], [0], [0]>} : vector<2x8x16xf32>, vector<2x16x8xf32>, vector<2x8x8xf32> -> vector<2x8x8xf32>
    "tpu.trace_stop"() : () -> ()
    %191 = vector.shape_cast %190 : vector<2x8x8xf32> to vector<16x8xf32>
    %192 = vector.extract_strided_slice %169 {offsets = [0, 0], sizes = [8, 32], strides = [1, 1]} : vector<32x32xf32> to vector<8x32xf32>
    %cst_88 = arith.constant dense<0.000000e+00> : vector<16x32xf32>
    %193 = tpu.matmul %191, %192, %cst_88 {dimension_numbers = #tpu.dot_dimension_numbers<[1], [0], [0], [1], [0, 0, 1, 1], [], []>} : vector<16x8xf32>, vector<8x32xf32>, vector<16x32xf32> -> vector<16x32xf32>
    %194 = arith.addf %170, %193 : vector<16x32xf32>
    %195 = arith.addf %171, %189 : vector<2x8x16xf32>
    %196 = vector.extract_strided_slice %165 {offsets = [0, 8], sizes = [16, 8], strides = [1, 1]} : vector<16x32xf32> to vector<16x8xf32>
    %cst_89 = arith.constant 0.353553385 : f32
    %197 = vector.broadcast %cst_89 : f32 to vector<16x8xf32>
    %198 = arith.mulf %196, %197 : vector<16x8xf32>
    %199 = vector.shape_cast %198 : vector<16x8xf32> to vector<2x8x8xf32>
    %200 = vector.extract_strided_slice %166 {offsets = [0, 8], sizes = [32, 8], strides = [1, 1]} : vector<32x32xf32> to vector<32x8xf32>
    %201 = vector.shape_cast %200 : vector<32x8xf32> to vector<2x16x8xf32>
    %202 = vector.extract_strided_slice %167 {offsets = [0, 8], sizes = [32, 8], strides = [1, 1]} : vector<32x32xf32> to vector<32x8xf32>
    %203 = vector.shape_cast %202 : vector<32x8xf32> to vector<2x16x8xf32>
    "tpu.trace_start"() <{level = 10 : i32, message = "bqd,bkd->bqk"}> : () -> ()
    %cst_90 = arith.constant dense<0.000000e+00> : vector<2x8x16xf32>
    %204 = tpu.matmul %199, %201, %cst_90 {dimension_numbers = #tpu.dot_dimension_numbers<[2], [2], [1], [1], [0, 0, 0, 1, 1, 1], [0], [0]>} : vector<2x8x8xf32>, vector<2x16x8xf32>, vector<2x8x16xf32> -> vector<2x8x16xf32>
    "tpu.trace_stop"() : () -> ()
    %cst_91 = arith.constant dense<0xFF800000> : vector<2x8xf32>
    %205 = vector.multi_reduction <maximumf>, %204, %cst_91 [2] : vector<2x8x16xf32> to vector<2x8xf32>
    %206 = vector.shape_cast %205 : vector<2x8xf32> to vector<2x8x1xf32>
    %207 = vector.broadcast %206 : vector<2x8x1xf32> to vector<2x8x16xf32>
    %208 = arith.subf %204, %207 : vector<2x8x16xf32>
    %209 = math.exp %208 : vector<2x8x16xf32>
    %cst_92 = arith.constant dense<0.000000e+00> : vector<2x8xf32>
    %210 = vector.multi_reduction <add>, %209, %cst_92 [2] : vector<2x8x16xf32> to vector<2x8xf32>
    %211 = vector.shape_cast %210 : vector<2x8xf32> to vector<2x8x1xf32>
    %212 = vector.broadcast %211 : vector<2x8x1xf32> to vector<2x8x16xf32>
    %213 = arith.divf %209, %212 : vector<2x8x16xf32>
    "tpu.trace_start"() <{level = 10 : i32, message = "bqk,bkd->bqd"}> : () -> ()
    %cst_93 = arith.constant dense<0.000000e+00> : vector<2x8x8xf32>
    %214 = tpu.matmul %213, %203, %cst_93 {dimension_numbers = #tpu.dot_dimension_numbers<[2], [1], [1], [2], [0, 0, 0, 1, 1, 2], [0], [0]>} : vector<2x8x16xf32>, vector<2x16x8xf32>, vector<2x8x8xf32> -> vector<2x8x8xf32>
    "tpu.trace_stop"() : () -> ()
    %215 = vector.shape_cast %214 : vector<2x8x8xf32> to vector<16x8xf32>
    %216 = vector.extract_strided_slice %169 {offsets = [8, 0], sizes = [8, 32], strides = [1, 1]} : vector<32x32xf32> to vector<8x32xf32>
    %cst_94 = arith.constant dense<0.000000e+00> : vector<16x32xf32>
    %217 = tpu.matmul %215, %216, %cst_94 {dimension_numbers = #tpu.dot_dimension_numbers<[1], [0], [0], [1], [0, 0, 1, 1], [], []>} : vector<16x8xf32>, vector<8x32xf32>, vector<16x32xf32> -> vector<16x32xf32>
    %218 = arith.addf %194, %217 : vector<16x32xf32>
    %219 = arith.addf %195, %213 : vector<2x8x16xf32>
    %220 = vector.extract_strided_slice %165 {offsets = [0, 16], sizes = [16, 8], strides = [1, 1]} : vector<16x32xf32> to vector<16x8xf32>
    %cst_95 = arith.constant 0.353553385 : f32
    %221 = vector.broadcast %cst_95 : f32 to vector<16x8xf32>
    %222 = arith.mulf %220, %221 : vector<16x8xf32>
    %223 = vector.shape_cast %222 : vector<16x8xf32> to vector<2x8x8xf32>
    %224 = vector.extract_strided_slice %166 {offsets = [0, 16], sizes = [32, 8], strides = [1, 1]} : vector<32x32xf32> to vector<32x8xf32>
    %225 = vector.shape_cast %224 : vector<32x8xf32> to vector<2x16x8xf32>
    %226 = vector.extract_strided_slice %167 {offsets = [0, 16], sizes = [32, 8], strides = [1, 1]} : vector<32x32xf32> to vector<32x8xf32>
    %227 = vector.shape_cast %226 : vector<32x8xf32> to vector<2x16x8xf32>
    "tpu.trace_start"() <{level = 10 : i32, message = "bqd,bkd->bqk"}> : () -> ()
    %cst_96 = arith.constant dense<0.000000e+00> : vector<2x8x16xf32>
    %228 = tpu.matmul %223, %225, %cst_96 {dimension_numbers = #tpu.dot_dimension_numbers<[2], [2], [1], [1], [0, 0, 0, 1, 1, 1], [0], [0]>} : vector<2x8x8xf32>, vector<2x16x8xf32>, vector<2x8x16xf32> -> vector<2x8x16xf32>
    "tpu.trace_stop"() : () -> ()
    %cst_97 = arith.constant dense<0xFF800000> : vector<2x8xf32>
    %229 = vector.multi_reduction <maximumf>, %228, %cst_97 [2] : vector<2x8x16xf32> to vector<2x8xf32>
    %230 = vector.shape_cast %229 : vector<2x8xf32> to vector<2x8x1xf32>
    %231 = vector.broadcast %230 : vector<2x8x1xf32> to vector<2x8x16xf32>
    %232 = arith.subf %228, %231 : vector<2x8x16xf32>
    %233 = math.exp %232 : vector<2x8x16xf32>
    %cst_98 = arith.constant dense<0.000000e+00> : vector<2x8xf32>
    %234 = vector.multi_reduction <add>, %233, %cst_98 [2] : vector<2x8x16xf32> to vector<2x8xf32>
    %235 = vector.shape_cast %234 : vector<2x8xf32> to vector<2x8x1xf32>
    %236 = vector.broadcast %235 : vector<2x8x1xf32> to vector<2x8x16xf32>
    %237 = arith.divf %233, %236 : vector<2x8x16xf32>
    "tpu.trace_start"() <{level = 10 : i32, message = "bqk,bkd->bqd"}> : () -> ()
    %cst_99 = arith.constant dense<0.000000e+00> : vector<2x8x8xf32>
    %238 = tpu.matmul %237, %227, %cst_99 {dimension_numbers = #tpu.dot_dimension_numbers<[2], [1], [1], [2], [0, 0, 0, 1, 1, 2], [0], [0]>} : vector<2x8x16xf32>, vector<2x16x8xf32>, vector<2x8x8xf32> -> vector<2x8x8xf32>
    "tpu.trace_stop"() : () -> ()
    %239 = vector.shape_cast %238 : vector<2x8x8xf32> to vector<16x8xf32>
    %240 = vector.extract_strided_slice %169 {offsets = [16, 0], sizes = [8, 32], strides = [1, 1]} : vector<32x32xf32> to vector<8x32xf32>
    %cst_100 = arith.constant dense<0.000000e+00> : vector<16x32xf32>
    %241 = tpu.matmul %239, %240, %cst_100 {dimension_numbers = #tpu.dot_dimension_numbers<[1], [0], [0], [1], [0, 0, 1, 1], [], []>} : vector<16x8xf32>, vector<8x32xf32>, vector<16x32xf32> -> vector<16x32xf32>
    %242 = arith.addf %218, %241 : vector<16x32xf32>
    %243 = arith.addf %219, %237 : vector<2x8x16xf32>
    %244 = vector.extract_strided_slice %165 {offsets = [0, 24], sizes = [16, 8], strides = [1, 1]} : vector<16x32xf32> to vector<16x8xf32>
    %cst_101 = arith.constant 0.353553385 : f32
    %245 = vector.broadcast %cst_101 : f32 to vector<16x8xf32>
    %246 = arith.mulf %244, %245 : vector<16x8xf32>
    %247 = vector.shape_cast %246 : vector<16x8xf32> to vector<2x8x8xf32>
    %248 = vector.extract_strided_slice %166 {offsets = [0, 24], sizes = [32, 8], strides = [1, 1]} : vector<32x32xf32> to vector<32x8xf32>
    %249 = vector.shape_cast %248 : vector<32x8xf32> to vector<2x16x8xf32>
    %250 = vector.extract_strided_slice %167 {offsets = [0, 24], sizes = [32, 8], strides = [1, 1]} : vector<32x32xf32> to vector<32x8xf32>
    %251 = vector.shape_cast %250 : vector<32x8xf32> to vector<2x16x8xf32>
    "tpu.trace_start"() <{level = 10 : i32, message = "bqd,bkd->bqk"}> : () -> ()
    %cst_102 = arith.constant dense<0.000000e+00> : vector<2x8x16xf32>
    %252 = tpu.matmul %247, %249, %cst_102 {dimension_numbers = #tpu.dot_dimension_numbers<[2], [2], [1], [1], [0, 0, 0, 1, 1, 1], [0], [0]>} : vector<2x8x8xf32>, vector<2x16x8xf32>, vector<2x8x16xf32> -> vector<2x8x16xf32>
    "tpu.trace_stop"() : () -> ()
    %cst_103 = arith.constant dense<0xFF800000> : vector<2x8xf32>
    %253 = vector.multi_reduction <maximumf>, %252, %cst_103 [2] : vector<2x8x16xf32> to vector<2x8xf32>
    %254 = vector.shape_cast %253 : vector<2x8xf32> to vector<2x8x1xf32>
    %255 = vector.broadcast %254 : vector<2x8x1xf32> to vector<2x8x16xf32>
    %256 = arith.subf %252, %255 : vector<2x8x16xf32>
    %257 = math.exp %256 : vector<2x8x16xf32>
    %cst_104 = arith.constant dense<0.000000e+00> : vector<2x8xf32>
    %258 = vector.multi_reduction <add>, %257, %cst_104 [2] : vector<2x8x16xf32> to vector<2x8xf32>
    %259 = vector.shape_cast %258 : vector<2x8xf32> to vector<2x8x1xf32>
    %260 = vector.broadcast %259 : vector<2x8x1xf32> to vector<2x8x16xf32>
    %261 = arith.divf %257, %260 : vector<2x8x16xf32>
    "tpu.trace_start"() <{level = 10 : i32, message = "bqk,bkd->bqd"}> : () -> ()
    %cst_105 = arith.constant dense<0.000000e+00> : vector<2x8x8xf32>
    %262 = tpu.matmul %261, %251, %cst_105 {dimension_numbers = #tpu.dot_dimension_numbers<[2], [1], [1], [2], [0, 0, 0, 1, 1, 2], [0], [0]>} : vector<2x8x16xf32>, vector<2x16x8xf32>, vector<2x8x8xf32> -> vector<2x8x8xf32>
    "tpu.trace_stop"() : () -> ()
    %263 = vector.shape_cast %262 : vector<2x8x8xf32> to vector<16x8xf32>
    %264 = vector.extract_strided_slice %169 {offsets = [24, 0], sizes = [8, 32], strides = [1, 1]} : vector<32x32xf32> to vector<8x32xf32>
    %cst_106 = arith.constant dense<0.000000e+00> : vector<16x32xf32>
    %265 = tpu.matmul %263, %264, %cst_106 {dimension_numbers = #tpu.dot_dimension_numbers<[1], [0], [0], [1], [0, 0, 1, 1], [], []>} : vector<16x8xf32>, vector<8x32xf32>, vector<16x32xf32> -> vector<16x32xf32>
    %266 = arith.addf %242, %265 : vector<16x32xf32>
    %267 = arith.addf %243, %261 : vector<2x8x16xf32>
    %cst_107 = arith.constant 2.500000e-01 : f32
    %268 = vector.broadcast %cst_107 : f32 to vector<2x8x16xf32>
    %269 = arith.mulf %267, %268 : vector<2x8x16xf32>
    %270 = arith.addf %156, %266 : vector<16x32xf32>
    %c0_108 = arith.constant 0 : index
    %c0_109 = arith.constant 0 : index
    %c0_110 = arith.constant 0 : index
    %271 = vector.load %arg12[%c0_108, %c0_109, %c0_110] : memref<2x1x32xf32, #tpu.memory_space<vmem>>, vector<1x1x32xf32>
    %272 = vector.shape_cast %271 : vector<1x1x32xf32> to vector<1x32xf32>
    %273 = vector.broadcast %272 : vector<1x32xf32> to vector<16x32xf32>
    %274 = arith.addf %270, %273 : vector<16x32xf32>
    %c0_111 = arith.constant 0 : index
    %c0_112 = arith.constant 0 : index
    %c0_113 = arith.constant 0 : index
    %275 = vector.load %arg20[%c0_111, %c0_112, %c0_113] : memref<2x1x32xf32, #tpu.memory_space<vmem>>, vector<1x1x32xf32>
    %276 = vector.shape_cast %275 : vector<1x1x32xf32> to vector<1x32xf32>
    %c0_114 = arith.constant 0 : index
    %c0_115 = arith.constant 0 : index
    %c0_116 = arith.constant 0 : index
    %277 = vector.load %arg21[%c0_114, %c0_115, %c0_116] : memref<2x1x32xf32, #tpu.memory_space<vmem>>, vector<1x1x32xf32>
    %278 = vector.shape_cast %277 : vector<1x1x32xf32> to vector<1x32xf32>
    %cst_117 = arith.constant dense<0.000000e+00> : vector<16xf32>
    %279 = vector.multi_reduction <add>, %274, %cst_117 [1] : vector<16x32xf32> to vector<16xf32>
    %280 = vector.shape_cast %279 : vector<16xf32> to vector<16x1xf32>
    %cst_118 = arith.constant 3.200000e+01 : f32
    %281 = vector.broadcast %cst_118 : f32 to vector<16x1xf32>
    %282 = arith.divf %280, %281 : vector<16x1xf32>
    %283 = vector.broadcast %282 : vector<16x1xf32> to vector<16x32xf32>
    %284 = arith.subf %274, %283 : vector<16x32xf32>
    %285 = arith.mulf %284, %284 : vector<16x32xf32>
    %cst_119 = arith.constant dense<0.000000e+00> : vector<16xf32>
    %286 = vector.multi_reduction <add>, %285, %cst_119 [1] : vector<16x32xf32> to vector<16xf32>
    %287 = vector.shape_cast %286 : vector<16xf32> to vector<16x1xf32>
    %cst_120 = arith.constant 3.200000e+01 : f32
    %288 = vector.broadcast %cst_120 : f32 to vector<16x1xf32>
    %289 = arith.divf %287, %288 : vector<16x1xf32>
    %cst_121 = arith.constant 9.99999974E-6 : f32
    %290 = vector.broadcast %cst_121 : f32 to vector<16x1xf32>
    %291 = arith.addf %289, %290 : vector<16x1xf32>
    %292 = math.rsqrt %291 : vector<16x1xf32>
    %293 = vector.broadcast %292 : vector<16x1xf32> to vector<16x32xf32>
    %294 = arith.mulf %284, %293 : vector<16x32xf32>
    %295 = vector.broadcast %276 : vector<1x32xf32> to vector<16x32xf32>
    %296 = arith.mulf %294, %295 : vector<16x32xf32>
    %297 = vector.broadcast %278 : vector<1x32xf32> to vector<16x32xf32>
    %298 = arith.addf %296, %297 : vector<16x32xf32>
    %c0_122 = arith.constant 0 : index
    %c0_123 = arith.constant 0 : index
    %c0_124 = arith.constant 0 : index
    %c0_125 = arith.constant 0 : index
    %299 = vector.load %arg31[%c0_122, %c0_123, %c0_124, %c0_125] : memref<2x2x8x16xf32, #tpu.memory_space<vmem>>, vector<1x2x8x16xf32>
    %300 = vector.shape_cast %299 : vector<1x2x8x16xf32> to vector<2x8x16xf32>
    %301 = vector.shape_cast %269 : vector<2x8x16xf32> to vector<1x2x8x16xf32>
    tpu.vector_store %arg31[%c0_122, %c0_123, %c0_124, %c0_125], %301 {strides = array<i32>} : memref<2x2x8x16xf32, #tpu.memory_space<vmem>>, vector<1x2x8x16xf32>,
    %c0_126 = arith.constant 0 : index
    %c0_127 = arith.constant 0 : index
    %c0_128 = arith.constant 0 : index
    %302 = vector.load %arg24[%c0_126, %c0_127, %c0_128] : memref<2x32x64xf32, #tpu.memory_space<vmem>>, vector<1x32x64xf32>
    %303 = vector.shape_cast %302 : vector<1x32x64xf32> to vector<32x64xf32>
    %cst_129 = arith.constant dense<0.000000e+00> : vector<16x64xf32>
    %304 = tpu.matmul %298, %303, %cst_129 {dimension_numbers = #tpu.dot_dimension_numbers<[1], [0], [0], [1], [0, 0, 1, 1], [], []>} : vector<16x32xf32>, vector<32x64xf32>, vector<16x64xf32> -> vector<16x64xf32>
    %c0_130 = arith.constant 0 : index
    %c0_131 = arith.constant 0 : index
    %c0_132 = arith.constant 0 : index
    %305 = vector.load %arg25[%c0_130, %c0_131, %c0_132] : memref<2x1x64xf32, #tpu.memory_space<vmem>>, vector<1x1x64xf32>
    %306 = vector.shape_cast %305 : vector<1x1x64xf32> to vector<1x64xf32>
    %307 = vector.broadcast %306 : vector<1x64xf32> to vector<16x64xf32>
    %308 = arith.addf %304, %307 : vector<16x64xf32>
    %cst_133 = arith.constant 0.000000e+00 : f32
    %309 = vector.broadcast %cst_133 : f32 to vector<16x64xf32>
    %310 = arith.maximumf %308, %309 : vector<16x64xf32>
    %c0_134 = arith.constant 0 : index
    %c0_135 = arith.constant 0 : index
    %c0_136 = arith.constant 0 : index
    %311 = vector.load %arg26[%c0_134, %c0_135, %c0_136] : memref<2x64x32xf32, #tpu.memory_space<vmem>>, vector<1x64x32xf32>
    %312 = vector.shape_cast %311 : vector<1x64x32xf32> to vector<64x32xf32>
    %cst_137 = arith.constant dense<0.000000e+00> : vector<16x32xf32>
    %313 = tpu.matmul %310, %312, %cst_137 {dimension_numbers = #tpu.dot_dimension_numbers<[1], [0], [0], [1], [0, 0, 1, 1], [], []>} : vector<16x64xf32>, vector<64x32xf32>, vector<16x32xf32> -> vector<16x32xf32>
    %c0_138 = arith.constant 0 : index
    %c0_139 = arith.constant 0 : index
    %c0_140 = arith.constant 0 : index
    %314 = vector.load %arg27[%c0_138, %c0_139, %c0_140] : memref<2x1x32xf32, #tpu.memory_space<vmem>>, vector<1x1x32xf32>
    %315 = vector.shape_cast %314 : vector<1x1x32xf32> to vector<1x32xf32>
    %316 = vector.broadcast %315 : vector<1x32xf32> to vector<16x32xf32>
    %317 = arith.addf %313, %316 : vector<16x32xf32>
    %318 = arith.addf %298, %317 : vector<16x32xf32>
    %c0_141 = arith.constant 0 : index
    %c0_142 = arith.constant 0 : index
    %c0_143 = arith.constant 0 : index
    %319 = vector.load %arg22[%c0_141, %c0_142, %c0_143] : memref<2x1x32xf32, #tpu.memory_space<vmem>>, vector<1x1x32xf32>
    %320 = vector.shape_cast %319 : vector<1x1x32xf32> to vector<1x32xf32>
    %c0_144 = arith.constant 0 : index
    %c0_145 = arith.constant 0 : index
    %c0_146 = arith.constant 0 : index
    %321 = vector.load %arg23[%c0_144, %c0_145, %c0_146] : memref<2x1x32xf32, #tpu.memory_space<vmem>>, vector<1x1x32xf32>
    %322 = vector.shape_cast %321 : vector<1x1x32xf32> to vector<1x32xf32>
    %cst_147 = arith.constant dense<0.000000e+00> : vector<16xf32>
    %323 = vector.multi_reduction <add>, %318, %cst_147 [1] : vector<16x32xf32> to vector<16xf32>
    %324 = vector.shape_cast %323 : vector<16xf32> to vector<16x1xf32>
    %cst_148 = arith.constant 3.200000e+01 : f32
    %325 = vector.broadcast %cst_148 : f32 to vector<16x1xf32>
    %326 = arith.divf %324, %325 : vector<16x1xf32>
    %327 = vector.broadcast %326 : vector<16x1xf32> to vector<16x32xf32>
    %328 = arith.subf %318, %327 : vector<16x32xf32>
    %329 = arith.mulf %328, %328 : vector<16x32xf32>
    %cst_149 = arith.constant dense<0.000000e+00> : vector<16xf32>
    %330 = vector.multi_reduction <add>, %329, %cst_149 [1] : vector<16x32xf32> to vector<16xf32>
    %331 = vector.shape_cast %330 : vector<16xf32> to vector<16x1xf32>
    %cst_150 = arith.constant 3.200000e+01 : f32
    %332 = vector.broadcast %cst_150 : f32 to vector<16x1xf32>
    %333 = arith.divf %331, %332 : vector<16x1xf32>
    %cst_151 = arith.constant 9.99999974E-6 : f32
    %334 = vector.broadcast %cst_151 : f32 to vector<16x1xf32>
    %335 = arith.addf %333, %334 : vector<16x1xf32>
    %336 = math.rsqrt %335 : vector<16x1xf32>
    %337 = vector.broadcast %336 : vector<16x1xf32> to vector<16x32xf32>
    %338 = arith.mulf %328, %337 : vector<16x32xf32>
    %339 = vector.broadcast %320 : vector<1x32xf32> to vector<16x32xf32>
    %340 = arith.mulf %338, %339 : vector<16x32xf32>
    %341 = vector.broadcast %322 : vector<1x32xf32> to vector<16x32xf32>
    %342 = arith.addf %340, %341 : vector<16x32xf32>
    %c1 = arith.constant 1 : index
    %c0_152 = arith.constant 0 : index
    %c0_153 = arith.constant 0 : index
    %343 = vector.load %arg4[%c1, %c0_152, %c0_153] : memref<2x32x96xf32, #tpu.memory_space<vmem>>, vector<1x32x96xf32>
    %344 = vector.shape_cast %343 : vector<1x32x96xf32> to vector<32x96xf32>
    %cst_154 = arith.constant dense<0.000000e+00> : vector<16x96xf32>
    %345 = tpu.matmul %342, %344, %cst_154 {dimension_numbers = #tpu.dot_dimension_numbers<[1], [0], [0], [1], [0, 0, 1, 1], [], []>} : vector<16x32xf32>, vector<32x96xf32>, vector<16x96xf32> -> vector<16x96xf32>
    %c1_155 = arith.constant 1 : index
    %c0_156 = arith.constant 0 : index
    %c0_157 = arith.constant 0 : index
    %346 = vector.load %arg5[%c1_155, %c0_156, %c0_157] : memref<2x1x96xf32, #tpu.memory_space<vmem>>, vector<1x1x96xf32>
    %347 = vector.shape_cast %346 : vector<1x1x96xf32> to vector<1x96xf32>
    %348 = vector.broadcast %347 : vector<1x96xf32> to vector<16x96xf32>
    %349 = arith.addf %345, %348 : vector<16x96xf32>
    %350 = vector.extract_strided_slice %349 {offsets = [0, 0], sizes = [16, 32], strides = [1, 1]} : vector<16x96xf32> to vector<16x32xf32>
    %351 = vector.extract_strided_slice %6 {offsets = [0, 64], sizes = [16, 32], strides = [1, 1]} : vector<16x128xf32> to vector<16x32xf32>
    %352 = arith.addf %350, %351 : vector<16x32xf32>
    %353 = vector.extract_strided_slice %349 {offsets = [0, 32], sizes = [16, 32], strides = [1, 1]} : vector<16x96xf32> to vector<16x32xf32>
    %354 = vector.extract_strided_slice %6 {offsets = [0, 96], sizes = [16, 32], strides = [1, 1]} : vector<16x128xf32> to vector<16x32xf32>
    %355 = arith.addf %353, %354 : vector<16x32xf32>
    %356 = vector.extract_strided_slice %349 {offsets = [0, 64], sizes = [16, 32], strides = [1, 1]} : vector<16x96xf32> to vector<16x32xf32>
    %c1_158 = arith.constant 1 : index
    %c0_159 = arith.constant 0 : index
    %c0_160 = arith.constant 0 : index
    %357 = vector.load %arg6[%c1_158, %c0_159, %c0_160] : memref<2x32x32xf32, #tpu.memory_space<vmem>>, vector<1x32x32xf32>
    %358 = vector.shape_cast %357 : vector<1x32x32xf32> to vector<32x32xf32>
    %cst_161 = arith.constant 0.000000e+00 : f32
    %359 = vector.broadcast %cst_161 : f32 to vector<16x32xf32>
    %360 = vector.extract_strided_slice %352 {offsets = [0, 0], sizes = [16, 8], strides = [1, 1]} : vector<16x32xf32> to vector<16x8xf32>
    %cst_162 = arith.constant 0.353553385 : f32
    %361 = vector.broadcast %cst_162 : f32 to vector<16x8xf32>
    %362 = arith.mulf %360, %361 : vector<16x8xf32>
    %363 = vector.shape_cast %362 : vector<16x8xf32> to vector<2x8x8xf32>
    %364 = vector.extract_strided_slice %355 {offsets = [0, 0], sizes = [16, 8], strides = [1, 1]} : vector<16x32xf32> to vector<16x8xf32>
    %365 = vector.shape_cast %364 : vector<16x8xf32> to vector<2x8x8xf32>
    %366 = vector.extract_strided_slice %356 {offsets = [0, 0], sizes = [16, 8], strides = [1, 1]} : vector<16x32xf32> to vector<16x8xf32>
    %367 = vector.shape_cast %366 : vector<16x8xf32> to vector<2x8x8xf32>
    "tpu.trace_start"() <{level = 10 : i32, message = "bqd,bkd->bqk"}> : () -> ()
    %cst_163 = arith.constant dense<0.000000e+00> : vector<2x8x8xf32>
    %368 = tpu.matmul %363, %365, %cst_163 {dimension_numbers = #tpu.dot_dimension_numbers<[2], [2], [1], [1], [0, 0, 0, 1, 1, 1], [0], [0]>} : vector<2x8x8xf32>, vector<2x8x8xf32>, vector<2x8x8xf32> -> vector<2x8x8xf32>
    "tpu.trace_stop"() : () -> ()
    %cst_164 = arith.constant dense<0xFF800000> : vector<2x8xf32>
    %369 = vector.multi_reduction <maximumf>, %368, %cst_164 [2] : vector<2x8x8xf32> to vector<2x8xf32>
    %370 = vector.shape_cast %369 : vector<2x8xf32> to vector<2x8x1xf32>
    %371 = vector.broadcast %370 : vector<2x8x1xf32> to vector<2x8x8xf32>
    %372 = arith.subf %368, %371 : vector<2x8x8xf32>
    %373 = math.exp %372 : vector<2x8x8xf32>
    %cst_165 = arith.constant dense<0.000000e+00> : vector<2x8xf32>
    %374 = vector.multi_reduction <add>, %373, %cst_165 [2] : vector<2x8x8xf32> to vector<2x8xf32>
    %375 = vector.shape_cast %374 : vector<2x8xf32> to vector<2x8x1xf32>
    %376 = vector.broadcast %375 : vector<2x8x1xf32> to vector<2x8x8xf32>
    %377 = arith.divf %373, %376 : vector<2x8x8xf32>
    "tpu.trace_start"() <{level = 10 : i32, message = "bqk,bkd->bqd"}> : () -> ()
    %cst_166 = arith.constant dense<0.000000e+00> : vector<2x8x8xf32>
    %378 = tpu.matmul %377, %367, %cst_166 {dimension_numbers = #tpu.dot_dimension_numbers<[2], [1], [1], [2], [0, 0, 0, 1, 1, 2], [0], [0]>} : vector<2x8x8xf32>, vector<2x8x8xf32>, vector<2x8x8xf32> -> vector<2x8x8xf32>
    "tpu.trace_stop"() : () -> ()
    %379 = vector.shape_cast %378 : vector<2x8x8xf32> to vector<16x8xf32>
    %380 = vector.extract_strided_slice %358 {offsets = [0, 0], sizes = [8, 32], strides = [1, 1]} : vector<32x32xf32> to vector<8x32xf32>
    %cst_167 = arith.constant dense<0.000000e+00> : vector<16x32xf32>
    %381 = tpu.matmul %379, %380, %cst_167 {dimension_numbers = #tpu.dot_dimension_numbers<[1], [0], [0], [1], [0, 0, 1, 1], [], []>} : vector<16x8xf32>, vector<8x32xf32>, vector<16x32xf32> -> vector<16x32xf32>
    %382 = arith.addf %359, %381 : vector<16x32xf32>
    %383 = vector.extract_strided_slice %352 {offsets = [0, 8], sizes = [16, 8], strides = [1, 1]} : vector<16x32xf32> to vector<16x8xf32>
    %cst_168 = arith.constant 0.353553385 : f32
    %384 = vector.broadcast %cst_168 : f32 to vector<16x8xf32>
    %385 = arith.mulf %383, %384 : vector<16x8xf32>
    %386 = vector.shape_cast %385 : vector<16x8xf32> to vector<2x8x8xf32>
    %387 = vector.extract_strided_slice %355 {offsets = [0, 8], sizes = [16, 8], strides = [1, 1]} : vector<16x32xf32> to vector<16x8xf32>
    %388 = vector.shape_cast %387 : vector<16x8xf32> to vector<2x8x8xf32>
    %389 = vector.extract_strided_slice %356 {offsets = [0, 8], sizes = [16, 8], strides = [1, 1]} : vector<16x32xf32> to vector<16x8xf32>
    %390 = vector.shape_cast %389 : vector<16x8xf32> to vector<2x8x8xf32>
    "tpu.trace_start"() <{level = 10 : i32, message = "bqd,bkd->bqk"}> : () -> ()
    %cst_169 = arith.constant dense<0.000000e+00> : vector<2x8x8xf32>
    %391 = tpu.matmul %386, %388, %cst_169 {dimension_numbers = #tpu.dot_dimension_numbers<[2], [2], [1], [1], [0, 0, 0, 1, 1, 1], [0], [0]>} : vector<2x8x8xf32>, vector<2x8x8xf32>, vector<2x8x8xf32> -> vector<2x8x8xf32>
    "tpu.trace_stop"() : () -> ()
    %cst_170 = arith.constant dense<0xFF800000> : vector<2x8xf32>
    %392 = vector.multi_reduction <maximumf>, %391, %cst_170 [2] : vector<2x8x8xf32> to vector<2x8xf32>
    %393 = vector.shape_cast %392 : vector<2x8xf32> to vector<2x8x1xf32>
    %394 = vector.broadcast %393 : vector<2x8x1xf32> to vector<2x8x8xf32>
    %395 = arith.subf %391, %394 : vector<2x8x8xf32>
    %396 = math.exp %395 : vector<2x8x8xf32>
    %cst_171 = arith.constant dense<0.000000e+00> : vector<2x8xf32>
    %397 = vector.multi_reduction <add>, %396, %cst_171 [2] : vector<2x8x8xf32> to vector<2x8xf32>
    %398 = vector.shape_cast %397 : vector<2x8xf32> to vector<2x8x1xf32>
    %399 = vector.broadcast %398 : vector<2x8x1xf32> to vector<2x8x8xf32>
    %400 = arith.divf %396, %399 : vector<2x8x8xf32>
    "tpu.trace_start"() <{level = 10 : i32, message = "bqk,bkd->bqd"}> : () -> ()
    %cst_172 = arith.constant dense<0.000000e+00> : vector<2x8x8xf32>
    %401 = tpu.matmul %400, %390, %cst_172 {dimension_numbers = #tpu.dot_dimension_numbers<[2], [1], [1], [2], [0, 0, 0, 1, 1, 2], [0], [0]>} : vector<2x8x8xf32>, vector<2x8x8xf32>, vector<2x8x8xf32> -> vector<2x8x8xf32>
    "tpu.trace_stop"() : () -> ()
    %402 = vector.shape_cast %401 : vector<2x8x8xf32> to vector<16x8xf32>
    %403 = vector.extract_strided_slice %358 {offsets = [8, 0], sizes = [8, 32], strides = [1, 1]} : vector<32x32xf32> to vector<8x32xf32>
    %cst_173 = arith.constant dense<0.000000e+00> : vector<16x32xf32>
    %404 = tpu.matmul %402, %403, %cst_173 {dimension_numbers = #tpu.dot_dimension_numbers<[1], [0], [0], [1], [0, 0, 1, 1], [], []>} : vector<16x8xf32>, vector<8x32xf32>, vector<16x32xf32> -> vector<16x32xf32>
    %405 = arith.addf %382, %404 : vector<16x32xf32>
    %406 = vector.extract_strided_slice %352 {offsets = [0, 16], sizes = [16, 8], strides = [1, 1]} : vector<16x32xf32> to vector<16x8xf32>
    %cst_174 = arith.constant 0.353553385 : f32
    %407 = vector.broadcast %cst_174 : f32 to vector<16x8xf32>
    %408 = arith.mulf %406, %407 : vector<16x8xf32>
    %409 = vector.shape_cast %408 : vector<16x8xf32> to vector<2x8x8xf32>
    %410 = vector.extract_strided_slice %355 {offsets = [0, 16], sizes = [16, 8], strides = [1, 1]} : vector<16x32xf32> to vector<16x8xf32>
    %411 = vector.shape_cast %410 : vector<16x8xf32> to vector<2x8x8xf32>
    %412 = vector.extract_strided_slice %356 {offsets = [0, 16], sizes = [16, 8], strides = [1, 1]} : vector<16x32xf32> to vector<16x8xf32>
    %413 = vector.shape_cast %412 : vector<16x8xf32> to vector<2x8x8xf32>
    "tpu.trace_start"() <{level = 10 : i32, message = "bqd,bkd->bqk"}> : () -> ()
    %cst_175 = arith.constant dense<0.000000e+00> : vector<2x8x8xf32>
    %414 = tpu.matmul %409, %411, %cst_175 {dimension_numbers = #tpu.dot_dimension_numbers<[2], [2], [1], [1], [0, 0, 0, 1, 1, 1], [0], [0]>} : vector<2x8x8xf32>, vector<2x8x8xf32>, vector<2x8x8xf32> -> vector<2x8x8xf32>
    "tpu.trace_stop"() : () -> ()
    %cst_176 = arith.constant dense<0xFF800000> : vector<2x8xf32>
    %415 = vector.multi_reduction <maximumf>, %414, %cst_176 [2] : vector<2x8x8xf32> to vector<2x8xf32>
    %416 = vector.shape_cast %415 : vector<2x8xf32> to vector<2x8x1xf32>
    %417 = vector.broadcast %416 : vector<2x8x1xf32> to vector<2x8x8xf32>
    %418 = arith.subf %414, %417 : vector<2x8x8xf32>
    %419 = math.exp %418 : vector<2x8x8xf32>
    %cst_177 = arith.constant dense<0.000000e+00> : vector<2x8xf32>
    %420 = vector.multi_reduction <add>, %419, %cst_177 [2] : vector<2x8x8xf32> to vector<2x8xf32>
    %421 = vector.shape_cast %420 : vector<2x8xf32> to vector<2x8x1xf32>
    %422 = vector.broadcast %421 : vector<2x8x1xf32> to vector<2x8x8xf32>
    %423 = arith.divf %419, %422 : vector<2x8x8xf32>
    "tpu.trace_start"() <{level = 10 : i32, message = "bqk,bkd->bqd"}> : () -> ()
    %cst_178 = arith.constant dense<0.000000e+00> : vector<2x8x8xf32>
    %424 = tpu.matmul %423, %413, %cst_178 {dimension_numbers = #tpu.dot_dimension_numbers<[2], [1], [1], [2], [0, 0, 0, 1, 1, 2], [0], [0]>} : vector<2x8x8xf32>, vector<2x8x8xf32>, vector<2x8x8xf32> -> vector<2x8x8xf32>
    "tpu.trace_stop"() : () -> ()
    %425 = vector.shape_cast %424 : vector<2x8x8xf32> to vector<16x8xf32>
    %426 = vector.extract_strided_slice %358 {offsets = [16, 0], sizes = [8, 32], strides = [1, 1]} : vector<32x32xf32> to vector<8x32xf32>
    %cst_179 = arith.constant dense<0.000000e+00> : vector<16x32xf32>
    %427 = tpu.matmul %425, %426, %cst_179 {dimension_numbers = #tpu.dot_dimension_numbers<[1], [0], [0], [1], [0, 0, 1, 1], [], []>} : vector<16x8xf32>, vector<8x32xf32>, vector<16x32xf32> -> vector<16x32xf32>
    %428 = arith.addf %405, %427 : vector<16x32xf32>
    %429 = vector.extract_strided_slice %352 {offsets = [0, 24], sizes = [16, 8], strides = [1, 1]} : vector<16x32xf32> to vector<16x8xf32>
    %cst_180 = arith.constant 0.353553385 : f32
    %430 = vector.broadcast %cst_180 : f32 to vector<16x8xf32>
    %431 = arith.mulf %429, %430 : vector<16x8xf32>
    %432 = vector.shape_cast %431 : vector<16x8xf32> to vector<2x8x8xf32>
    %433 = vector.extract_strided_slice %355 {offsets = [0, 24], sizes = [16, 8], strides = [1, 1]} : vector<16x32xf32> to vector<16x8xf32>
    %434 = vector.shape_cast %433 : vector<16x8xf32> to vector<2x8x8xf32>
    %435 = vector.extract_strided_slice %356 {offsets = [0, 24], sizes = [16, 8], strides = [1, 1]} : vector<16x32xf32> to vector<16x8xf32>
    %436 = vector.shape_cast %435 : vector<16x8xf32> to vector<2x8x8xf32>
    "tpu.trace_start"() <{level = 10 : i32, message = "bqd,bkd->bqk"}> : () -> ()
    %cst_181 = arith.constant dense<0.000000e+00> : vector<2x8x8xf32>
    %437 = tpu.matmul %432, %434, %cst_181 {dimension_numbers = #tpu.dot_dimension_numbers<[2], [2], [1], [1], [0, 0, 0, 1, 1, 1], [0], [0]>} : vector<2x8x8xf32>, vector<2x8x8xf32>, vector<2x8x8xf32> -> vector<2x8x8xf32>
    "tpu.trace_stop"() : () -> ()
    %cst_182 = arith.constant dense<0xFF800000> : vector<2x8xf32>
    %438 = vector.multi_reduction <maximumf>, %437, %cst_182 [2] : vector<2x8x8xf32> to vector<2x8xf32>
    %439 = vector.shape_cast %438 : vector<2x8xf32> to vector<2x8x1xf32>
    %440 = vector.broadcast %439 : vector<2x8x1xf32> to vector<2x8x8xf32>
    %441 = arith.subf %437, %440 : vector<2x8x8xf32>
    %442 = math.exp %441 : vector<2x8x8xf32>
    %cst_183 = arith.constant dense<0.000000e+00> : vector<2x8xf32>
    %443 = vector.multi_reduction <add>, %442, %cst_183 [2] : vector<2x8x8xf32> to vector<2x8xf32>
    %444 = vector.shape_cast %443 : vector<2x8xf32> to vector<2x8x1xf32>
    %445 = vector.broadcast %444 : vector<2x8x1xf32> to vector<2x8x8xf32>
    %446 = arith.divf %442, %445 : vector<2x8x8xf32>
    "tpu.trace_start"() <{level = 10 : i32, message = "bqk,bkd->bqd"}> : () -> ()
    %cst_184 = arith.constant dense<0.000000e+00> : vector<2x8x8xf32>
    %447 = tpu.matmul %446, %436, %cst_184 {dimension_numbers = #tpu.dot_dimension_numbers<[2], [1], [1], [2], [0, 0, 0, 1, 1, 2], [0], [0]>} : vector<2x8x8xf32>, vector<2x8x8xf32>, vector<2x8x8xf32> -> vector<2x8x8xf32>
    "tpu.trace_stop"() : () -> ()
    %448 = vector.shape_cast %447 : vector<2x8x8xf32> to vector<16x8xf32>
    %449 = vector.extract_strided_slice %358 {offsets = [24, 0], sizes = [8, 32], strides = [1, 1]} : vector<32x32xf32> to vector<8x32xf32>
    %cst_185 = arith.constant dense<0.000000e+00> : vector<16x32xf32>
    %450 = tpu.matmul %448, %449, %cst_185 {dimension_numbers = #tpu.dot_dimension_numbers<[1], [0], [0], [1], [0, 0, 1, 1], [], []>} : vector<16x8xf32>, vector<8x32xf32>, vector<16x32xf32> -> vector<16x32xf32>
    %451 = arith.addf %428, %450 : vector<16x32xf32>
    %452 = arith.addf %342, %451 : vector<16x32xf32>
    %c1_186 = arith.constant 1 : index
    %c0_187 = arith.constant 0 : index
    %c0_188 = arith.constant 0 : index
    %453 = vector.load %arg7[%c1_186, %c0_187, %c0_188] : memref<2x1x32xf32, #tpu.memory_space<vmem>>, vector<1x1x32xf32>
    %454 = vector.shape_cast %453 : vector<1x1x32xf32> to vector<1x32xf32>
    %455 = vector.broadcast %454 : vector<1x32xf32> to vector<16x32xf32>
    %456 = arith.addf %452, %455 : vector<16x32xf32>
    %c1_189 = arith.constant 1 : index
    %c0_190 = arith.constant 0 : index
    %c0_191 = arith.constant 0 : index
    %457 = vector.load %arg18[%c1_189, %c0_190, %c0_191] : memref<2x1x32xf32, #tpu.memory_space<vmem>>, vector<1x1x32xf32>
    %458 = vector.shape_cast %457 : vector<1x1x32xf32> to vector<1x32xf32>
    %c1_192 = arith.constant 1 : index
    %c0_193 = arith.constant 0 : index
    %c0_194 = arith.constant 0 : index
    %459 = vector.load %arg19[%c1_192, %c0_193, %c0_194] : memref<2x1x32xf32, #tpu.memory_space<vmem>>, vector<1x1x32xf32>
    %460 = vector.shape_cast %459 : vector<1x1x32xf32> to vector<1x32xf32>
    %cst_195 = arith.constant dense<0.000000e+00> : vector<16xf32>
    %461 = vector.multi_reduction <add>, %456, %cst_195 [1] : vector<16x32xf32> to vector<16xf32>
    %462 = vector.shape_cast %461 : vector<16xf32> to vector<16x1xf32>
    %cst_196 = arith.constant 3.200000e+01 : f32
    %463 = vector.broadcast %cst_196 : f32 to vector<16x1xf32>
    %464 = arith.divf %462, %463 : vector<16x1xf32>
    %465 = vector.broadcast %464 : vector<16x1xf32> to vector<16x32xf32>
    %466 = arith.subf %456, %465 : vector<16x32xf32>
    %467 = arith.mulf %466, %466 : vector<16x32xf32>
    %cst_197 = arith.constant dense<0.000000e+00> : vector<16xf32>
    %468 = vector.multi_reduction <add>, %467, %cst_197 [1] : vector<16x32xf32> to vector<16xf32>
    %469 = vector.shape_cast %468 : vector<16xf32> to vector<16x1xf32>
    %cst_198 = arith.constant 3.200000e+01 : f32
    %470 = vector.broadcast %cst_198 : f32 to vector<16x1xf32>
    %471 = arith.divf %469, %470 : vector<16x1xf32>
    %cst_199 = arith.constant 9.99999974E-6 : f32
    %472 = vector.broadcast %cst_199 : f32 to vector<16x1xf32>
    %473 = arith.addf %471, %472 : vector<16x1xf32>
    %474 = math.rsqrt %473 : vector<16x1xf32>
    %475 = vector.broadcast %474 : vector<16x1xf32> to vector<16x32xf32>
    %476 = arith.mulf %466, %475 : vector<16x32xf32>
    %477 = vector.broadcast %458 : vector<1x32xf32> to vector<16x32xf32>
    %478 = arith.mulf %476, %477 : vector<16x32xf32>
    %479 = vector.broadcast %460 : vector<1x32xf32> to vector<16x32xf32>
    %480 = arith.addf %478, %479 : vector<16x32xf32>
    %c1_200 = arith.constant 1 : index
    %c0_201 = arith.constant 0 : index
    %c0_202 = arith.constant 0 : index
    %481 = vector.load %arg9[%c1_200, %c0_201, %c0_202] : memref<2x32x32xf32, #tpu.memory_space<vmem>>, vector<1x32x32xf32>
    %482 = vector.shape_cast %481 : vector<1x32x32xf32> to vector<32x32xf32>
    %cst_203 = arith.constant dense<0.000000e+00> : vector<16x32xf32>
    %483 = tpu.matmul %480, %482, %cst_203 {dimension_numbers = #tpu.dot_dimension_numbers<[1], [0], [0], [1], [0, 0, 1, 1], [], []>} : vector<16x32xf32>, vector<32x32xf32>, vector<16x32xf32> -> vector<16x32xf32>
    %c1_204 = arith.constant 1 : index
    %c0_205 = arith.constant 0 : index
    %c0_206 = arith.constant 0 : index
    %484 = vector.load %arg10[%c1_204, %c0_205, %c0_206] : memref<2x1x32xf32, #tpu.memory_space<vmem>>, vector<1x1x32xf32>
    %485 = vector.shape_cast %484 : vector<1x1x32xf32> to vector<1x32xf32>
    %486 = vector.broadcast %485 : vector<1x32xf32> to vector<16x32xf32>
    %487 = arith.addf %483, %486 : vector<16x32xf32>
    %488 = vector.extract_strided_slice %8 {offsets = [0, 32], sizes = [16, 32], strides = [1, 1]} : vector<16x64xf32> to vector<16x32xf32>
    %489 = arith.addf %487, %488 : vector<16x32xf32>
    %490 = vector.extract_strided_slice %13 {offsets = [0, 32], sizes = [32, 32], strides = [1, 1]} : vector<32x64xf32> to vector<32x32xf32>
    %491 = vector.extract_strided_slice %18 {offsets = [0, 32], sizes = [32, 32], strides = [1, 1]} : vector<32x64xf32> to vector<32x32xf32>
    %c1_207 = arith.constant 1 : index
    %c0_208 = arith.constant 0 : index
    %c0_209 = arith.constant 0 : index
    %492 = vector.load %arg11[%c1_207, %c0_208, %c0_209] : memref<2x32x32xf32, #tpu.memory_space<vmem>>, vector<1x32x32xf32>
    %493 = vector.shape_cast %492 : vector<1x32x32xf32> to vector<32x32xf32>
    %cst_210 = arith.constant 0.000000e+00 : f32
    %494 = vector.broadcast %cst_210 : f32 to vector<16x32xf32>
    %cst_211 = arith.constant 0.000000e+00 : f32
    %495 = vector.broadcast %cst_211 : f32 to vector<2x8x16xf32>
    %496 = vector.extract_strided_slice %489 {offsets = [0, 0], sizes = [16, 8], strides = [1, 1]} : vector<16x32xf32> to vector<16x8xf32>
    %cst_212 = arith.constant 0.353553385 : f32
    %497 = vector.broadcast %cst_212 : f32 to vector<16x8xf32>
    %498 = arith.mulf %496, %497 : vector<16x8xf32>
    %499 = vector.shape_cast %498 : vector<16x8xf32> to vector<2x8x8xf32>
    %500 = vector.extract_strided_slice %490 {offsets = [0, 0], sizes = [32, 8], strides = [1, 1]} : vector<32x32xf32> to vector<32x8xf32>
    %501 = vector.shape_cast %500 : vector<32x8xf32> to vector<2x16x8xf32>
    %502 = vector.extract_strided_slice %491 {offsets = [0, 0], sizes = [32, 8], strides = [1, 1]} : vector<32x32xf32> to vector<32x8xf32>
    %503 = vector.shape_cast %502 : vector<32x8xf32> to vector<2x16x8xf32>
    "tpu.trace_start"() <{level = 10 : i32, message = "bqd,bkd->bqk"}> : () -> ()
    %cst_213 = arith.constant dense<0.000000e+00> : vector<2x8x16xf32>
    %504 = tpu.matmul %499, %501, %cst_213 {dimension_numbers = #tpu.dot_dimension_numbers<[2], [2], [1], [1], [0, 0, 0, 1, 1, 1], [0], [0]>} : vector<2x8x8xf32>, vector<2x16x8xf32>, vector<2x8x16xf32> -> vector<2x8x16xf32>
    "tpu.trace_stop"() : () -> ()
    %cst_214 = arith.constant dense<0xFF800000> : vector<2x8xf32>
    %505 = vector.multi_reduction <maximumf>, %504, %cst_214 [2] : vector<2x8x16xf32> to vector<2x8xf32>
    %506 = vector.shape_cast %505 : vector<2x8xf32> to vector<2x8x1xf32>
    %507 = vector.broadcast %506 : vector<2x8x1xf32> to vector<2x8x16xf32>
    %508 = arith.subf %504, %507 : vector<2x8x16xf32>
    %509 = math.exp %508 : vector<2x8x16xf32>
    %cst_215 = arith.constant dense<0.000000e+00> : vector<2x8xf32>
    %510 = vector.multi_reduction <add>, %509, %cst_215 [2] : vector<2x8x16xf32> to vector<2x8xf32>
    %511 = vector.shape_cast %510 : vector<2x8xf32> to vector<2x8x1xf32>
    %512 = vector.broadcast %511 : vector<2x8x1xf32> to vector<2x8x16xf32>
    %513 = arith.divf %509, %512 : vector<2x8x16xf32>
    "tpu.trace_start"() <{level = 10 : i32, message = "bqk,bkd->bqd"}> : () -> ()
    %cst_216 = arith.constant dense<0.000000e+00> : vector<2x8x8xf32>
    %514 = tpu.matmul %513, %503, %cst_216 {dimension_numbers = #tpu.dot_dimension_numbers<[2], [1], [1], [2], [0, 0, 0, 1, 1, 2], [0], [0]>} : vector<2x8x16xf32>, vector<2x16x8xf32>, vector<2x8x8xf32> -> vector<2x8x8xf32>
    "tpu.trace_stop"() : () -> ()
    %515 = vector.shape_cast %514 : vector<2x8x8xf32> to vector<16x8xf32>
    %516 = vector.extract_strided_slice %493 {offsets = [0, 0], sizes = [8, 32], strides = [1, 1]} : vector<32x32xf32> to vector<8x32xf32>
    %cst_217 = arith.constant dense<0.000000e+00> : vector<16x32xf32>
    %517 = tpu.matmul %515, %516, %cst_217 {dimension_numbers = #tpu.dot_dimension_numbers<[1], [0], [0], [1], [0, 0, 1, 1], [], []>} : vector<16x8xf32>, vector<8x32xf32>, vector<16x32xf32> -> vector<16x32xf32>
    %518 = arith.addf %494, %517 : vector<16x32xf32>
    %519 = arith.addf %495, %513 : vector<2x8x16xf32>
    %520 = vector.extract_strided_slice %489 {offsets = [0, 8], sizes = [16, 8], strides = [1, 1]} : vector<16x32xf32> to vector<16x8xf32>
    %cst_218 = arith.constant 0.353553385 : f32
    %521 = vector.broadcast %cst_218 : f32 to vector<16x8xf32>
    %522 = arith.mulf %520, %521 : vector<16x8xf32>
    %523 = vector.shape_cast %522 : vector<16x8xf32> to vector<2x8x8xf32>
    %524 = vector.extract_strided_slice %490 {offsets = [0, 8], sizes = [32, 8], strides = [1, 1]} : vector<32x32xf32> to vector<32x8xf32>
    %525 = vector.shape_cast %524 : vector<32x8xf32> to vector<2x16x8xf32>
    %526 = vector.extract_strided_slice %491 {offsets = [0, 8], sizes = [32, 8], strides = [1, 1]} : vector<32x32xf32> to vector<32x8xf32>
    %527 = vector.shape_cast %526 : vector<32x8xf32> to vector<2x16x8xf32>
    "tpu.trace_start"() <{level = 10 : i32, message = "bqd,bkd->bqk"}> : () -> ()
    %cst_219 = arith.constant dense<0.000000e+00> : vector<2x8x16xf32>
    %528 = tpu.matmul %523, %525, %cst_219 {dimension_numbers = #tpu.dot_dimension_numbers<[2], [2], [1], [1], [0, 0, 0, 1, 1, 1], [0], [0]>} : vector<2x8x8xf32>, vector<2x16x8xf32>, vector<2x8x16xf32> -> vector<2x8x16xf32>
    "tpu.trace_stop"() : () -> ()
    %cst_220 = arith.constant dense<0xFF800000> : vector<2x8xf32>
    %529 = vector.multi_reduction <maximumf>, %528, %cst_220 [2] : vector<2x8x16xf32> to vector<2x8xf32>
    %530 = vector.shape_cast %529 : vector<2x8xf32> to vector<2x8x1xf32>
    %531 = vector.broadcast %530 : vector<2x8x1xf32> to vector<2x8x16xf32>
    %532 = arith.subf %528, %531 : vector<2x8x16xf32>
    %533 = math.exp %532 : vector<2x8x16xf32>
    %cst_221 = arith.constant dense<0.000000e+00> : vector<2x8xf32>
    %534 = vector.multi_reduction <add>, %533, %cst_221 [2] : vector<2x8x16xf32> to vector<2x8xf32>
    %535 = vector.shape_cast %534 : vector<2x8xf32> to vector<2x8x1xf32>
    %536 = vector.broadcast %535 : vector<2x8x1xf32> to vector<2x8x16xf32>
    %537 = arith.divf %533, %536 : vector<2x8x16xf32>
    "tpu.trace_start"() <{level = 10 : i32, message = "bqk,bkd->bqd"}> : () -> ()
    %cst_222 = arith.constant dense<0.000000e+00> : vector<2x8x8xf32>
    %538 = tpu.matmul %537, %527, %cst_222 {dimension_numbers = #tpu.dot_dimension_numbers<[2], [1], [1], [2], [0, 0, 0, 1, 1, 2], [0], [0]>} : vector<2x8x16xf32>, vector<2x16x8xf32>, vector<2x8x8xf32> -> vector<2x8x8xf32>
    "tpu.trace_stop"() : () -> ()
    %539 = vector.shape_cast %538 : vector<2x8x8xf32> to vector<16x8xf32>
    %540 = vector.extract_strided_slice %493 {offsets = [8, 0], sizes = [8, 32], strides = [1, 1]} : vector<32x32xf32> to vector<8x32xf32>
    %cst_223 = arith.constant dense<0.000000e+00> : vector<16x32xf32>
    %541 = tpu.matmul %539, %540, %cst_223 {dimension_numbers = #tpu.dot_dimension_numbers<[1], [0], [0], [1], [0, 0, 1, 1], [], []>} : vector<16x8xf32>, vector<8x32xf32>, vector<16x32xf32> -> vector<16x32xf32>
    %542 = arith.addf %518, %541 : vector<16x32xf32>
    %543 = arith.addf %519, %537 : vector<2x8x16xf32>
    %544 = vector.extract_strided_slice %489 {offsets = [0, 16], sizes = [16, 8], strides = [1, 1]} : vector<16x32xf32> to vector<16x8xf32>
    %cst_224 = arith.constant 0.353553385 : f32
    %545 = vector.broadcast %cst_224 : f32 to vector<16x8xf32>
    %546 = arith.mulf %544, %545 : vector<16x8xf32>
    %547 = vector.shape_cast %546 : vector<16x8xf32> to vector<2x8x8xf32>
    %548 = vector.extract_strided_slice %490 {offsets = [0, 16], sizes = [32, 8], strides = [1, 1]} : vector<32x32xf32> to vector<32x8xf32>
    %549 = vector.shape_cast %548 : vector<32x8xf32> to vector<2x16x8xf32>
    %550 = vector.extract_strided_slice %491 {offsets = [0, 16], sizes = [32, 8], strides = [1, 1]} : vector<32x32xf32> to vector<32x8xf32>
    %551 = vector.shape_cast %550 : vector<32x8xf32> to vector<2x16x8xf32>
    "tpu.trace_start"() <{level = 10 : i32, message = "bqd,bkd->bqk"}> : () -> ()
    %cst_225 = arith.constant dense<0.000000e+00> : vector<2x8x16xf32>
    %552 = tpu.matmul %547, %549, %cst_225 {dimension_numbers = #tpu.dot_dimension_numbers<[2], [2], [1], [1], [0, 0, 0, 1, 1, 1], [0], [0]>} : vector<2x8x8xf32>, vector<2x16x8xf32>, vector<2x8x16xf32> -> vector<2x8x16xf32>
    "tpu.trace_stop"() : () -> ()
    %cst_226 = arith.constant dense<0xFF800000> : vector<2x8xf32>
    %553 = vector.multi_reduction <maximumf>, %552, %cst_226 [2] : vector<2x8x16xf32> to vector<2x8xf32>
    %554 = vector.shape_cast %553 : vector<2x8xf32> to vector<2x8x1xf32>
    %555 = vector.broadcast %554 : vector<2x8x1xf32> to vector<2x8x16xf32>
    %556 = arith.subf %552, %555 : vector<2x8x16xf32>
    %557 = math.exp %556 : vector<2x8x16xf32>
    %cst_227 = arith.constant dense<0.000000e+00> : vector<2x8xf32>
    %558 = vector.multi_reduction <add>, %557, %cst_227 [2] : vector<2x8x16xf32> to vector<2x8xf32>
    %559 = vector.shape_cast %558 : vector<2x8xf32> to vector<2x8x1xf32>
    %560 = vector.broadcast %559 : vector<2x8x1xf32> to vector<2x8x16xf32>
    %561 = arith.divf %557, %560 : vector<2x8x16xf32>
    "tpu.trace_start"() <{level = 10 : i32, message = "bqk,bkd->bqd"}> : () -> ()
    %cst_228 = arith.constant dense<0.000000e+00> : vector<2x8x8xf32>
    %562 = tpu.matmul %561, %551, %cst_228 {dimension_numbers = #tpu.dot_dimension_numbers<[2], [1], [1], [2], [0, 0, 0, 1, 1, 2], [0], [0]>} : vector<2x8x16xf32>, vector<2x16x8xf32>, vector<2x8x8xf32> -> vector<2x8x8xf32>
    "tpu.trace_stop"() : () -> ()
    %563 = vector.shape_cast %562 : vector<2x8x8xf32> to vector<16x8xf32>
    %564 = vector.extract_strided_slice %493 {offsets = [16, 0], sizes = [8, 32], strides = [1, 1]} : vector<32x32xf32> to vector<8x32xf32>
    %cst_229 = arith.constant dense<0.000000e+00> : vector<16x32xf32>
    %565 = tpu.matmul %563, %564, %cst_229 {dimension_numbers = #tpu.dot_dimension_numbers<[1], [0], [0], [1], [0, 0, 1, 1], [], []>} : vector<16x8xf32>, vector<8x32xf32>, vector<16x32xf32> -> vector<16x32xf32>
    %566 = arith.addf %542, %565 : vector<16x32xf32>
    %567 = arith.addf %543, %561 : vector<2x8x16xf32>
    %568 = vector.extract_strided_slice %489 {offsets = [0, 24], sizes = [16, 8], strides = [1, 1]} : vector<16x32xf32> to vector<16x8xf32>
    %cst_230 = arith.constant 0.353553385 : f32
    %569 = vector.broadcast %cst_230 : f32 to vector<16x8xf32>
    %570 = arith.mulf %568, %569 : vector<16x8xf32>
    %571 = vector.shape_cast %570 : vector<16x8xf32> to vector<2x8x8xf32>
    %572 = vector.extract_strided_slice %490 {offsets = [0, 24], sizes = [32, 8], strides = [1, 1]} : vector<32x32xf32> to vector<32x8xf32>
    %573 = vector.shape_cast %572 : vector<32x8xf32> to vector<2x16x8xf32>
    %574 = vector.extract_strided_slice %491 {offsets = [0, 24], sizes = [32, 8], strides = [1, 1]} : vector<32x32xf32> to vector<32x8xf32>
    %575 = vector.shape_cast %574 : vector<32x8xf32> to vector<2x16x8xf32>
    "tpu.trace_start"() <{level = 10 : i32, message = "bqd,bkd->bqk"}> : () -> ()
    %cst_231 = arith.constant dense<0.000000e+00> : vector<2x8x16xf32>
    %576 = tpu.matmul %571, %573, %cst_231 {dimension_numbers = #tpu.dot_dimension_numbers<[2], [2], [1], [1], [0, 0, 0, 1, 1, 1], [0], [0]>} : vector<2x8x8xf32>, vector<2x16x8xf32>, vector<2x8x16xf32> -> vector<2x8x16xf32>
    "tpu.trace_stop"() : () -> ()
    %cst_232 = arith.constant dense<0xFF800000> : vector<2x8xf32>
    %577 = vector.multi_reduction <maximumf>, %576, %cst_232 [2] : vector<2x8x16xf32> to vector<2x8xf32>
    %578 = vector.shape_cast %577 : vector<2x8xf32> to vector<2x8x1xf32>
    %579 = vector.broadcast %578 : vector<2x8x1xf32> to vector<2x8x16xf32>
    %580 = arith.subf %576, %579 : vector<2x8x16xf32>
    %581 = math.exp %580 : vector<2x8x16xf32>
    %cst_233 = arith.constant dense<0.000000e+00> : vector<2x8xf32>
    %582 = vector.multi_reduction <add>, %581, %cst_233 [2] : vector<2x8x16xf32> to vector<2x8xf32>
    %583 = vector.shape_cast %582 : vector<2x8xf32> to vector<2x8x1xf32>
    %584 = vector.broadcast %583 : vector<2x8x1xf32> to vector<2x8x16xf32>
    %585 = arith.divf %581, %584 : vector<2x8x16xf32>
    "tpu.trace_start"() <{level = 10 : i32, message = "bqk,bkd->bqd"}> : () -> ()
    %cst_234 = arith.constant dense<0.000000e+00> : vector<2x8x8xf32>
    %586 = tpu.matmul %585, %575, %cst_234 {dimension_numbers = #tpu.dot_dimension_numbers<[2], [1], [1], [2], [0, 0, 0, 1, 1, 2], [0], [0]>} : vector<2x8x16xf32>, vector<2x16x8xf32>, vector<2x8x8xf32> -> vector<2x8x8xf32>
    "tpu.trace_stop"() : () -> ()
    %587 = vector.shape_cast %586 : vector<2x8x8xf32> to vector<16x8xf32>
    %588 = vector.extract_strided_slice %493 {offsets = [24, 0], sizes = [8, 32], strides = [1, 1]} : vector<32x32xf32> to vector<8x32xf32>
    %cst_235 = arith.constant dense<0.000000e+00> : vector<16x32xf32>
    %589 = tpu.matmul %587, %588, %cst_235 {dimension_numbers = #tpu.dot_dimension_numbers<[1], [0], [0], [1], [0, 0, 1, 1], [], []>} : vector<16x8xf32>, vector<8x32xf32>, vector<16x32xf32> -> vector<16x32xf32>
    %590 = arith.addf %566, %589 : vector<16x32xf32>
    %591 = arith.addf %567, %585 : vector<2x8x16xf32>
    %cst_236 = arith.constant 2.500000e-01 : f32
    %592 = vector.broadcast %cst_236 : f32 to vector<2x8x16xf32>
    %593 = arith.mulf %591, %592 : vector<2x8x16xf32>
    %594 = arith.addf %480, %590 : vector<16x32xf32>
    %c1_237 = arith.constant 1 : index
    %c0_238 = arith.constant 0 : index
    %c0_239 = arith.constant 0 : index
    %595 = vector.load %arg12[%c1_237, %c0_238, %c0_239] : memref<2x1x32xf32, #tpu.memory_space<vmem>>, vector<1x1x32xf32>
    %596 = vector.shape_cast %595 : vector<1x1x32xf32> to vector<1x32xf32>
    %597 = vector.broadcast %596 : vector<1x32xf32> to vector<16x32xf32>
    %598 = arith.addf %594, %597 : vector<16x32xf32>
    %c1_240 = arith.constant 1 : index
    %c0_241 = arith.constant 0 : index
    %c0_242 = arith.constant 0 : index
    %599 = vector.load %arg20[%c1_240, %c0_241, %c0_242] : memref<2x1x32xf32, #tpu.memory_space<vmem>>, vector<1x1x32xf32>
    %600 = vector.shape_cast %599 : vector<1x1x32xf32> to vector<1x32xf32>
    %c1_243 = arith.constant 1 : index
    %c0_244 = arith.constant 0 : index
    %c0_245 = arith.constant 0 : index
    %601 = vector.load %arg21[%c1_243, %c0_244, %c0_245] : memref<2x1x32xf32, #tpu.memory_space<vmem>>, vector<1x1x32xf32>
    %602 = vector.shape_cast %601 : vector<1x1x32xf32> to vector<1x32xf32>
    %cst_246 = arith.constant dense<0.000000e+00> : vector<16xf32>
    %603 = vector.multi_reduction <add>, %598, %cst_246 [1] : vector<16x32xf32> to vector<16xf32>
    %604 = vector.shape_cast %603 : vector<16xf32> to vector<16x1xf32>
    %cst_247 = arith.constant 3.200000e+01 : f32
    %605 = vector.broadcast %cst_247 : f32 to vector<16x1xf32>
    %606 = arith.divf %604, %605 : vector<16x1xf32>
    %607 = vector.broadcast %606 : vector<16x1xf32> to vector<16x32xf32>
    %608 = arith.subf %598, %607 : vector<16x32xf32>
    %609 = arith.mulf %608, %608 : vector<16x32xf32>
    %cst_248 = arith.constant dense<0.000000e+00> : vector<16xf32>
    %610 = vector.multi_reduction <add>, %609, %cst_248 [1] : vector<16x32xf32> to vector<16xf32>
    %611 = vector.shape_cast %610 : vector<16xf32> to vector<16x1xf32>
    %cst_249 = arith.constant 3.200000e+01 : f32
    %612 = vector.broadcast %cst_249 : f32 to vector<16x1xf32>
    %613 = arith.divf %611, %612 : vector<16x1xf32>
    %cst_250 = arith.constant 9.99999974E-6 : f32
    %614 = vector.broadcast %cst_250 : f32 to vector<16x1xf32>
    %615 = arith.addf %613, %614 : vector<16x1xf32>
    %616 = math.rsqrt %615 : vector<16x1xf32>
    %617 = vector.broadcast %616 : vector<16x1xf32> to vector<16x32xf32>
    %618 = arith.mulf %608, %617 : vector<16x32xf32>
    %619 = vector.broadcast %600 : vector<1x32xf32> to vector<16x32xf32>
    %620 = arith.mulf %618, %619 : vector<16x32xf32>
    %621 = vector.broadcast %602 : vector<1x32xf32> to vector<16x32xf32>
    %622 = arith.addf %620, %621 : vector<16x32xf32>
    %c1_251 = arith.constant 1 : index
    %c0_252 = arith.constant 0 : index
    %c0_253 = arith.constant 0 : index
    %c0_254 = arith.constant 0 : index
    %623 = vector.load %arg31[%c1_251, %c0_252, %c0_253, %c0_254] : memref<2x2x8x16xf32, #tpu.memory_space<vmem>>, vector<1x2x8x16xf32>
    %624 = vector.shape_cast %623 : vector<1x2x8x16xf32> to vector<2x8x16xf32>
    %625 = vector.shape_cast %593 : vector<2x8x16xf32> to vector<1x2x8x16xf32>
    tpu.vector_store %arg31[%c1_251, %c0_252, %c0_253, %c0_254], %625 {strides = array<i32>} : memref<2x2x8x16xf32, #tpu.memory_space<vmem>>, vector<1x2x8x16xf32>,
    %c1_255 = arith.constant 1 : index
    %c0_256 = arith.constant 0 : index
    %c0_257 = arith.constant 0 : index
    %626 = vector.load %arg24[%c1_255, %c0_256, %c0_257] : memref<2x32x64xf32, #tpu.memory_space<vmem>>, vector<1x32x64xf32>
    %627 = vector.shape_cast %626 : vector<1x32x64xf32> to vector<32x64xf32>
    %cst_258 = arith.constant dense<0.000000e+00> : vector<16x64xf32>
    %628 = tpu.matmul %622, %627, %cst_258 {dimension_numbers = #tpu.dot_dimension_numbers<[1], [0], [0], [1], [0, 0, 1, 1], [], []>} : vector<16x32xf32>, vector<32x64xf32>, vector<16x64xf32> -> vector<16x64xf32>
    %c1_259 = arith.constant 1 : index
    %c0_260 = arith.constant 0 : index
    %c0_261 = arith.constant 0 : index
    %629 = vector.load %arg25[%c1_259, %c0_260, %c0_261] : memref<2x1x64xf32, #tpu.memory_space<vmem>>, vector<1x1x64xf32>
    %630 = vector.shape_cast %629 : vector<1x1x64xf32> to vector<1x64xf32>
    %631 = vector.broadcast %630 : vector<1x64xf32> to vector<16x64xf32>
    %632 = arith.addf %628, %631 : vector<16x64xf32>
    %cst_262 = arith.constant 0.000000e+00 : f32
    %633 = vector.broadcast %cst_262 : f32 to vector<16x64xf32>
    %634 = arith.maximumf %632, %633 : vector<16x64xf32>
    %c1_263 = arith.constant 1 : index
    %c0_264 = arith.constant 0 : index
    %c0_265 = arith.constant 0 : index
    %635 = vector.load %arg26[%c1_263, %c0_264, %c0_265] : memref<2x64x32xf32, #tpu.memory_space<vmem>>, vector<1x64x32xf32>
    %636 = vector.shape_cast %635 : vector<1x64x32xf32> to vector<64x32xf32>
    %cst_266 = arith.constant dense<0.000000e+00> : vector<16x32xf32>
    %637 = tpu.matmul %634, %636, %cst_266 {dimension_numbers = #tpu.dot_dimension_numbers<[1], [0], [0], [1], [0, 0, 1, 1], [], []>} : vector<16x64xf32>, vector<64x32xf32>, vector<16x32xf32> -> vector<16x32xf32>
    %c1_267 = arith.constant 1 : index
    %c0_268 = arith.constant 0 : index
    %c0_269 = arith.constant 0 : index
    %638 = vector.load %arg27[%c1_267, %c0_268, %c0_269] : memref<2x1x32xf32, #tpu.memory_space<vmem>>, vector<1x1x32xf32>
    %639 = vector.shape_cast %638 : vector<1x1x32xf32> to vector<1x32xf32>
    %640 = vector.broadcast %639 : vector<1x32xf32> to vector<16x32xf32>
    %641 = arith.addf %637, %640 : vector<16x32xf32>
    %642 = arith.addf %622, %641 : vector<16x32xf32>
    %c1_270 = arith.constant 1 : index
    %c0_271 = arith.constant 0 : index
    %c0_272 = arith.constant 0 : index
    %643 = vector.load %arg22[%c1_270, %c0_271, %c0_272] : memref<2x1x32xf32, #tpu.memory_space<vmem>>, vector<1x1x32xf32>
    %644 = vector.shape_cast %643 : vector<1x1x32xf32> to vector<1x32xf32>
    %c1_273 = arith.constant 1 : index
    %c0_274 = arith.constant 0 : index
    %c0_275 = arith.constant 0 : index
    %645 = vector.load %arg23[%c1_273, %c0_274, %c0_275] : memref<2x1x32xf32, #tpu.memory_space<vmem>>, vector<1x1x32xf32>
    %646 = vector.shape_cast %645 : vector<1x1x32xf32> to vector<1x32xf32>
    %cst_276 = arith.constant dense<0.000000e+00> : vector<16xf32>
    %647 = vector.multi_reduction <add>, %642, %cst_276 [1] : vector<16x32xf32> to vector<16xf32>
    %648 = vector.shape_cast %647 : vector<16xf32> to vector<16x1xf32>
    %cst_277 = arith.constant 3.200000e+01 : f32
    %649 = vector.broadcast %cst_277 : f32 to vector<16x1xf32>
    %650 = arith.divf %648, %649 : vector<16x1xf32>
    %651 = vector.broadcast %650 : vector<16x1xf32> to vector<16x32xf32>
    %652 = arith.subf %642, %651 : vector<16x32xf32>
    %653 = arith.mulf %652, %652 : vector<16x32xf32>
    %cst_278 = arith.constant dense<0.000000e+00> : vector<16xf32>
    %654 = vector.multi_reduction <add>, %653, %cst_278 [1] : vector<16x32xf32> to vector<16xf32>
    %655 = vector.shape_cast %654 : vector<16xf32> to vector<16x1xf32>
    %cst_279 = arith.constant 3.200000e+01 : f32
    %656 = vector.broadcast %cst_279 : f32 to vector<16x1xf32>
    %657 = arith.divf %655, %656 : vector<16x1xf32>
    %cst_280 = arith.constant 9.99999974E-6 : f32
    %658 = vector.broadcast %cst_280 : f32 to vector<16x1xf32>
    %659 = arith.addf %657, %658 : vector<16x1xf32>
    %660 = math.rsqrt %659 : vector<16x1xf32>
    %661 = vector.broadcast %660 : vector<16x1xf32> to vector<16x32xf32>
    %662 = arith.mulf %652, %661 : vector<16x32xf32>
    %663 = vector.broadcast %644 : vector<1x32xf32> to vector<16x32xf32>
    %664 = arith.mulf %662, %663 : vector<16x32xf32>
    %665 = vector.broadcast %646 : vector<1x32xf32> to vector<16x32xf32>
    %666 = arith.addf %664, %665 : vector<16x32xf32>
    %c0_281 = arith.constant 0 : index
    %c0_282 = arith.constant 0 : index
    %667 = vector.load %arg28[%c0_281, %c0_282] : memref<1x32xf32, #tpu.memory_space<vmem>>, vector<1x32xf32>
    %c0_283 = arith.constant 0 : index
    %c0_284 = arith.constant 0 : index
    %668 = vector.load %arg29[%c0_283, %c0_284] : memref<1x32xf32, #tpu.memory_space<vmem>>, vector<1x32xf32>
    %cst_285 = arith.constant dense<0.000000e+00> : vector<16xf32>
    %669 = vector.multi_reduction <add>, %666, %cst_285 [1] : vector<16x32xf32> to vector<16xf32>
    %670 = vector.shape_cast %669 : vector<16xf32> to vector<16x1xf32>
    %cst_286 = arith.constant 3.200000e+01 : f32
    %671 = vector.broadcast %cst_286 : f32 to vector<16x1xf32>
    %672 = arith.divf %670, %671 : vector<16x1xf32>
    %673 = vector.broadcast %672 : vector<16x1xf32> to vector<16x32xf32>
    %674 = arith.subf %666, %673 : vector<16x32xf32>
    %675 = arith.mulf %674, %674 : vector<16x32xf32>
    %cst_287 = arith.constant dense<0.000000e+00> : vector<16xf32>
    %676 = vector.multi_reduction <add>, %675, %cst_287 [1] : vector<16x32xf32> to vector<16xf32>
    %677 = vector.shape_cast %676 : vector<16xf32> to vector<16x1xf32>
    %cst_288 = arith.constant 3.200000e+01 : f32
    %678 = vector.broadcast %cst_288 : f32 to vector<16x1xf32>
    %679 = arith.divf %677, %678 : vector<16x1xf32>
    %cst_289 = arith.constant 9.99999974E-6 : f32
    %680 = vector.broadcast %cst_289 : f32 to vector<16x1xf32>
    %681 = arith.addf %679, %680 : vector<16x1xf32>
    %682 = math.rsqrt %681 : vector<16x1xf32>
    %683 = vector.broadcast %682 : vector<16x1xf32> to vector<16x32xf32>
    %684 = arith.mulf %674, %683 : vector<16x32xf32>
    %685 = vector.broadcast %667 : vector<1x32xf32> to vector<16x32xf32>
    %686 = arith.mulf %684, %685 : vector<16x32xf32>
    %687 = vector.broadcast %668 : vector<1x32xf32> to vector<16x32xf32>
    %688 = arith.addf %686, %687 : vector<16x32xf32>
    %c0_290 = arith.constant 0 : index
    %c0_291 = arith.constant 0 : index
    %689 = vector.load %arg30[%c0_290, %c0_291] : memref<16x32xf32, #tpu.memory_space<vmem>>, vector<16x32xf32>
    tpu.vector_store %arg30[%c0_290, %c0_291], %688 {strides = array<i32>} : memref<16x32xf32, #tpu.memory_space<vmem>>, vector<16x32xf32>,
    return
  }
}

</mosaic_0001>

<bundles_post_ra>
// kernel: transformer_decoder.1
= control target key start
LH: loop header
LB: loop body
LE: loop exit
PB: predicated region body
PF: predicated region fallthrough
CT: control target
= control target key end

     0   :  { %s5481_s6 = smov 1   ;;  %s5482_s10 = smov 2   ;;  %s6678_s0 = inlined_call_operand.smem [shape: u32[32], index: -1, kind: input, shape index: {}] }
   0x1   :  { %s5553_s5 = sld [smem:[%s6678_s0]]   ;;  %s5483_s14 = smov 3  }
   0x2   :  { %s5558_s9 = sld [smem:[%s6678_s0 + %s5481_s6]]   ;;  %s5484_s18 = smov 4  }
   0x3   :  { %s5563_s13 = sld [smem:[%s6678_s0 + %s5482_s10]]   ;;  %s5485_s22 = smov 5  }
   0x4   :  { %s5568_s17 = sld [smem:[%s6678_s0 + %s5483_s14]]   ;;  %s5486_s26 = smov 6  }
   0x5   :  { %s5573_s21 = sld [smem:[%s6678_s0 + %s5484_s18]]   ;;  %s5487_s30 = smov 7  }
   0x6   :  { %s5578_s25 = sld [smem:[%s6678_s0 + %s5485_s22]]   ;;  %s5488_s4 = smov 8  }
   0x7   :  { %6692 = sst [smem:[#allocation37_spill]] %s5553_s5  ;;  %s5489_s10 = smov 9  }
   0x8   :  { %6693 = sst [smem:[#allocation38_spill]] %s5558_s9  ;;  %s5490_s15 = smov 10  }
   0x9   :  { %6694 = sst [smem:[#allocation39_spill]] %s5563_s13  ;;  %s5491_s20 = smov 11  }
   0xa   :  { %6695 = sst [smem:[#allocation40_spill]] %s5568_s17  ;;  %s5493_s1 = smov 13  }
   0xb   :  { %6696 = sst [smem:[#allocation41_spill]] %s5573_s21  ;;  %s5494_s7 = smov 14  }
   0xc   :  { %6697 = sst [smem:[#allocation42_spill]] %s5578_s25  ;;  %s5496_s22 = smov 16  }
   0xd   :  { %s5583_s29 = sld [smem:[%s6678_s0 + %s5486_s26]]   ;;  %s5492_s26 = smov 12  }
   0xe   :  { %s5588_s3 = sld [smem:[%s6678_s0 + %s5487_s30]]   ;;  %s5497_s28 = smov 17  }
   0xf   :  { %s5593_s8 = sld [smem:[%s6678_s0 + %s5488_s4]]  }
  0x10   :  { %s5598_s14 = sld [smem:[%s6678_s0 + %s5489_s10]]  }
  0x11   :  { %s5603_s19 = sld [smem:[%s6678_s0 + %s5490_s15]]   ;;  %s5495_s15 = smov 15  }
  0x12   :  { %s5608_s24 = sld [smem:[%s6678_s0 + %s5491_s20]]  }
  0x13   :  { %6698 = sst [smem:[#allocation43_spill]] %s5583_s29 }
  0x14   :  { %6699 = sst [smem:[#allocation44_spill]] %s5588_s3 }
  0x15   :  { %6700 = sst [smem:[#allocation45_spill]] %s5593_s8 }
  0x16   :  { %6701 = sst [smem:[#allocation46_spill]] %s5598_s14 }
  0x17   :  { %s5613_s30 = sld [smem:[%s6678_s0 + %s5492_s26]]  }
  0x18   :  { %s5618_s6 = sld [smem:[%s6678_s0 + %s5493_s1]]  }
  0x19   :  { %s5623_s12 = sld [smem:[%s6678_s0 + %s5494_s7]]   ;;  %s5498_s7 = smov 18  }
  0x1a   :  { %s5628_s20 = sld [smem:[%s6678_s0 + %s5495_s15]]   ;;  %s5499_s15 = smov 19  }
  0x1b   :  { %s5633_s27 = sld [smem:[%s6678_s0 + %s5496_s22]]   ;;  %s5500_s22 = smov 20  }
  0x1c   :  { %s5638_s4 = sld [smem:[%s6678_s0 + %s5497_s28]]   ;;  %s5501_s28 = smov 21  }
  0x1d   :  { %s5643_s14 = sld [smem:[%s6678_s0 + %s5498_s7]]   ;;  %s5502_s7 = smov 22  }
  0x1e   :  { %6702 = sst [smem:[#allocation47_spill]] %s5618_s6 }
  0x1f   :  { %s5648_s3 = sld [smem:[%s6678_s0 + %s5499_s15]]   ;;  %s5503_s15 = smov 23  }
  0x20   :  { %6703 = sst [smem:[#allocation48_spill]] %s5628_s20 }
  0x21   :  { %s5653_s20 = sld [smem:[%s6678_s0 + %s5500_s22]]   ;;  %s5504_s22 = smov 24  }
  0x22   :  { %s5658_s29 = sld [smem:[%s6678_s0 + %s5501_s28]]   ;;  %s5505_s28 = smov 25  }
  0x23   :  { %s5663_s25 = sld [smem:[%s6678_s0 + %s5502_s7]]   ;;  %s5506_s7 = smov 26  }
  0x24   :  { %s5668_s6 = sld [smem:[%s6678_s0 + %s5503_s15]]   ;;  %s5507_s15 = smov 27  }
  0x25   :  { %s5673_s9 = sld [smem:[%s6678_s0 + %s5504_s22]]   ;;  %s5508_s22 = smov 28  }
  0x26   :  { %s5678_s17 = sld [smem:[%s6678_s0 + %s5505_s28]]   ;;  %s5509_s28 = smov 29  }
  0x27   :  { %s5683_s5 = sld [smem:[%s6678_s0 + %s5506_s7]]   ;;  %s5510_s7 = smov 30  }
  0x28   :  { %s5688_s21 = sld [smem:[%s6678_s0 + %s5507_s15]]   ;;  %s5511_s15 = smov 31  }
  0x29   :  { %s5693_s13 = sld [smem:[%s6678_s0 + %s5508_s22]]  }
  0x2a   :  { %s5698_s8 = sld [smem:[%s6678_s0 + %s5509_s28]]  }
  0x2d   :  { %6704 = sst [smem:[#allocation49_spill]] %s5683_s5 }
  0x2e   :  { %6705 = sst [smem:[#allocation50_spill]] %s5688_s21 }
  0x2f   :  { %s5703_s5 = sld [smem:[%s6678_s0 + %s5510_s7]]  }
  0x30   :  { %s5708_s21 = sld [smem:[%s6678_s0 + %s5511_s15]]  }
  0x31   :  { %69 = vsyncpa [#allocation3], 0 }
  0x32   :  { %70 = vsyncpa [#allocation5], 0 }
  0x33   :  { %71 = vsyncpa [#allocation8], 0 }
  0x34   :  { %72 = vsyncpa [#allocation11], 0 }
  0x35   :  { %73 = vsyncpa [#allocation14], 0 }
  0x36   :  { %74 = vsyncpa [#allocation17], 0 }
  0x37   :  { %75 = vsyncpa [#allocation20], 0 }
  0x38   :  { %76 = vsyncpa [#allocation23], 0  ;;  %s115_s22 = sshll.u32 %s5608_s24, 4  ;;  %s116_s22 = int_to_ptr.hbm [resolvable:$true] %s115_s22 }
  0x39   :  { %77 = vsyncpa [#allocation26], 0  ;;  %s5512_s23 = smov [#allocation4]   ;;  %s143_s0 = sshll.u32 %s5623_s12, 4  ;;  %s144_s0 = int_to_ptr.hbm [resolvable:$true] %s143_s0 }
  0x3a   :  { %s117_s26 = sshll.u32 %s5512_s23, 4  ;;  %s5055_s28 = sshra.s32 %s116_s22, 4  ;;  %s118_s26 = int_to_ptr.vmem [resolvable:$true] %s117_s26  ;;  %s5056_s28 = int_to_ptr.hbm [resolvable:$true] %s5055_s28 }
  0x3b   :  { %s5057_s1 = scalar_lea.hbm %s5056_s28, 64  ;;  %s5059_s2 = scalar_lea.hbm %s5608_s24, 64 }
  0x3c   :  { %p5058_p0 = scmp.ne.s32.totalorder %s5056_s28, %s5057_s1  ;;  %p5060_p1 = scmp.lt.s32.totalorder %s5056_s28, %s5608_s24 }
  0x3d   :  { %p5061_p2 = scmp.lt.s32.totalorder %s5059_s2, %s5057_s1 }
  0x3f   :  { %p5062_p3 = por %p5061_p2, %p5060_p1 }
  0x41   :  { %p5063_p4 = pnand %p5062_p3, %p5058_p0 }
  0x43   :  { %5066 = shalt.err (!%p5063_p4)
}
  0x44   :  { %s5513_s7 = smov 128   ;;  %s5514_s10 = smov 8  }
  0x45   :  { %123 = dma.hbm_to_vmem [thread:$0]  %s116_s22, 1024, %s118_s26, [#allocation5], %s5513_s7, %s5513_s7, %s5514_s10  }
  0x46   :  { %s5515_s11 = smov [#allocation7]   ;;  %s172_s16 = sshll.u32 %s5638_s4, 4  ;;  %s173_s16 = int_to_ptr.hbm [resolvable:$true] %s172_s16 }
  0x47   :  { %s145_s15 = sshll.u32 %s5515_s11, 4  ;;  %s5079_s24 = sshra.s32 %s144_s0, 4  ;;  %s146_s15 = int_to_ptr.vmem [resolvable:$true] %s145_s15  ;;  %s5080_s24 = int_to_ptr.hbm [resolvable:$true] %s5079_s24 }
  0x48   :  { %s5081_s18 = scalar_lea.hbm %s5080_s24, 32  ;;  %s5083_s23 = scalar_lea.hbm %s5623_s12, 32 }
  0x49   :  { %p5082_p5 = scmp.ne.s32.totalorder %s5080_s24, %s5081_s18  ;;  %p5084_p6 = scmp.lt.s32.totalorder %s5080_s24, %s5623_s12 }
  0x4a   :  { %p5085_p7 = scmp.lt.s32.totalorder %s5083_s23, %s5081_s18 }
  0x4c   :  { %p5086_p8 = por %p5085_p7, %p5084_p6 }
  0x4e   :  { %p5087_p9 = pnand %p5086_p8, %p5082_p5 }
  0x50   :  { %5090 = shalt.err (!%p5087_p9)
}
  0x51   :  { %151 = dma.hbm_to_vmem [thread:$0]  %s144_s0, 512, %s146_s15, [#allocation8], %s5513_s7, %s5513_s7, %s5514_s10  }
  0x52   :  { %s5516_s22 = smov [#allocation10]   ;;  %s195_s28 = sshll.u32 %s5648_s3, 4  ;;  %s196_s28 = int_to_ptr.hbm [resolvable:$true] %s195_s28 }
  0x53   :  { %s174_s26 = sshll.u32 %s5516_s22, 4  ;;  %s5103_s1 = sshra.s32 %s173_s16, 4  ;;  %s175_s26 = int_to_ptr.vmem [resolvable:$true] %s174_s26  ;;  %s5104_s1 = int_to_ptr.hbm [resolvable:$true] %s5103_s1 }
  0x54   :  { %s5105_s2 = scalar_lea.hbm %s5104_s1, 1  ;;  %s5107_s12 = scalar_lea.hbm %s5638_s4, 1 }
  0x55   :  { %p5106_p10 = scmp.ne.s32.totalorder %s5104_s1, %s5105_s2  ;;  %p5108_p11 = scmp.lt.s32.totalorder %s5104_s1, %s5638_s4 }
  0x56   :  { %p5109_p12 = scmp.lt.s32.totalorder %s5107_s12, %s5105_s2 }
  0x58   :  { %p5110_p13 = por %p5109_p12, %p5108_p11 }
  0x5a   :  { %p5111_p0 = pnand %p5110_p13, %p5106_p10 }
  0x5c   :  { %5114 = shalt.err (!%p5111_p0)
}
  0x5d   :  { %177 = dma.hbm_to_vmem [thread:$0]  %s173_s16, 16, %s175_s26, [#allocation11]  }
  0x5e   :  { %s5517_s0 = smov [#allocation13]   ;;  %s221_s15 = sshll.u32 %s5658_s29, 4  ;;  %s5727_s15 = int_to_ptr.hbm [resolvable:$true] %s221_s15 }
  0x5f   :  { %s197_s11 = sshll.u32 %s5517_s0, 4  ;;  %s5127_s24 = sshra.s32 %s196_s28, 4  ;;  %s198_s11 = int_to_ptr.vmem [resolvable:$true] %s197_s11  ;;  %s5128_s24 = int_to_ptr.hbm [resolvable:$true] %s5127_s24 }
  0x60   :  { %s5129_s18 = scalar_lea.hbm %s5128_s24, 2  ;;  %s5131_s4 = scalar_lea.hbm %s5648_s3, 2 }
  0x61   :  { %p5130_p1 = scmp.ne.s32.totalorder %s5128_s24, %s5129_s18  ;;  %p5132_p2 = scmp.lt.s32.totalorder %s5128_s24, %s5648_s3 }
  0x62   :  { %p5133_p3 = scmp.lt.s32.totalorder %s5131_s4, %s5129_s18 }
  0x64   :  { %p5134_p4 = por %p5133_p3, %p5132_p2 }
  0x66   :  { %p5135_p5 = pnand %p5134_p4, %p5130_p1 }
  0x68   :  { %5138 = shalt.err (!%p5135_p5)
}
  0x69   :  { %s5518_s16 = smov 16   ;;  %s5519_s23 = smov 1  }
  0x6a   :  { %203 = dma.hbm_to_vmem [thread:$0]  %s196_s28, 32, %s198_s11, [#allocation14], %s5518_s16, %s5518_s16, %s5519_s23  }
  0x6b   :  { %s247_s22 = sshll.u32 %s5668_s6, 4  ;;  %s5520_s26 = smov [#allocation16]   ;;  %s5735_s22 = int_to_ptr.hbm [resolvable:$true] %s247_s22 }
  0x6c   :  { %s223_s1 = sshll.u32 %s5520_s26, 4  ;;  %s5151_s3 = sshra.s32 %s5727_s15, 4  ;;  %s224_s1 = int_to_ptr.vmem [resolvable:$true] %s223_s1  ;;  %s5152_s3 = int_to_ptr.hbm [resolvable:$true] %s5151_s3 }
  0x6d   :  { %s5153_s2 = scalar_lea.hbm %s5152_s3, 2  ;;  %s5155_s12 = scalar_lea.hbm %s5658_s29, 2 }
  0x6e   :  { %p5154_p6 = scmp.ne.s32.totalorder %s5152_s3, %s5153_s2  ;;  %p5156_p7 = scmp.lt.s32.totalorder %s5152_s3, %s5658_s29 }
  0x6f   :  { %p5157_p8 = scmp.lt.s32.totalorder %s5155_s12, %s5153_s2 }
  0x71   :  { %p5158_p9 = por %p5157_p8, %p5156_p7 }
  0x73   :  { %p5159_p10 = pnand %p5158_p9, %p5154_p6 }
  0x75   :  { %5162 = shalt.err (!%p5159_p10)
}
  0x76   :  { %229 = dma.hbm_to_vmem [thread:$0]  %s5727_s15, 32, %s224_s1, [#allocation17], %s5518_s16, %s5518_s16, %s5519_s23  }
  0x77   :  { %s5521_s28 = smov [#allocation19]   ;;  %s273_s11 = sshll.u32 %s5678_s17, 4  ;;  %s5745_s11 = int_to_ptr.hbm [resolvable:$true] %s273_s11 }
  0x78   :  { %s249_s0 = sshll.u32 %s5521_s28, 4  ;;  %s5175_s29 = sshra.s32 %s5735_s22, 4  ;;  %s250_s0 = int_to_ptr.vmem [resolvable:$true] %s249_s0  ;;  %s5176_s29 = int_to_ptr.hbm [resolvable:$true] %s5175_s29 }
  0x79   :  { %s5177_s24 = scalar_lea.hbm %s5176_s29, 2  ;;  %s5179_s18 = scalar_lea.hbm %s5668_s6, 2 }
  0x7a   :  { %p5178_p11 = scmp.ne.s32.totalorder %s5176_s29, %s5177_s24  ;;  %p5180_p12 = scmp.lt.s32.totalorder %s5176_s29, %s5668_s6 }
  0x7b   :  { %p5181_p13 = scmp.lt.s32.totalorder %s5179_s18, %s5177_s24 }
  0x7d   :  { %p5182_p0 = por %p5181_p13, %p5180_p12 }
  0x7f   :  { %p5183_p1 = pnand %p5182_p0, %p5178_p11 }
  0x81   :  { %5186 = shalt.err (!%p5183_p1)
}
  0x82   :  { %255 = dma.hbm_to_vmem [thread:$0]  %s5735_s22, 32, %s250_s0, [#allocation20], %s5518_s16, %s5518_s16, %s5519_s23  }
  0x83   :  { %s302_s15 = sshll.u32 %s5693_s13, 4  ;;  %s5522_s4 = smov [#allocation22]   ;;  %s303_s15 = int_to_ptr.hbm [resolvable:$true] %s302_s15 }
  0x84   :  { %s275_s26 = sshll.u32 %s5522_s4, 4  ;;  %s5199_s1 = sshra.s32 %s5745_s11, 4  ;;  %s276_s26 = int_to_ptr.vmem [resolvable:$true] %s275_s26  ;;  %s5200_s1 = int_to_ptr.hbm [resolvable:$true] %s5199_s1 }
  0x85   :  { %s5201_s6 = scalar_lea.hbm %s5200_s1, 2  ;;  %s5203_s3 = scalar_lea.hbm %s5678_s17, 2 }
  0x86   :  { %p5202_p2 = scmp.ne.s32.totalorder %s5200_s1, %s5201_s6  ;;  %p5204_p3 = scmp.lt.s32.totalorder %s5200_s1, %s5678_s17 }
  0x87   :  { %p5205_p4 = scmp.lt.s32.totalorder %s5203_s3, %s5201_s6 }
  0x89   :  { %p5206_p5 = por %p5205_p4, %p5204_p3 }
  0x8b   :  { %p5207_p6 = pnand %p5206_p5, %p5202_p2 }
  0x8d   :  { %5210 = shalt.err (!%p5207_p6)
}
  0x8e   :  { %281 = dma.hbm_to_vmem [thread:$0]  %s5745_s11, 32, %s276_s26, [#allocation23], %s5518_s16, %s5518_s16, %s5519_s23  }
  0x8f   :  { %s5523_s22 = smov [#allocation25]   ;;  %s102_s12 = sshll.u32 %s5603_s19, 4  ;;  %s5763_s12 = int_to_ptr.hbm [resolvable:$true] %s102_s12 }
  0x90   :  { %s304_s2 = sshll.u32 %s5523_s22, 4  ;;  %s5223_s28 = sshra.s32 %s303_s15, 4  ;;  %s305_s2 = int_to_ptr.vmem [resolvable:$true] %s304_s2  ;;  %s5224_s28 = int_to_ptr.hbm [resolvable:$true] %s5223_s28 }
  0x91   :  { %s5225_s17 = scalar_lea.hbm %s5224_s28, 1  ;;  %s5227_s0 = scalar_lea.hbm %s5693_s13, 1 }
  0x92   :  { %p5226_p7 = scmp.ne.s32.totalorder %s5224_s28, %s5225_s17  ;;  %p5228_p8 = scmp.lt.s32.totalorder %s5224_s28, %s5693_s13 }
  0x93   :  { %p5229_p9 = scmp.lt.s32.totalorder %s5227_s0, %s5225_s17 }
  0x95   :  { %p5230_p10 = por %p5229_p9, %p5228_p8 }
  0x97   :  { %p5231_p11 = pnand %p5230_p10, %p5226_p7 }
  0x99   :  { %5234 = shalt.err (!%p5231_p11)
}
  0x9a   :  { %307 = dma.hbm_to_vmem [thread:$0]  %s303_s15, 16, %s305_s2, [#allocation26]  }
  0x9b   :  { %s128_s11 = sshll.u32 %s5613_s30, 4  ;;  %s5524_s29 = smov [#allocation2]   ;;  %s5768_s11 = int_to_ptr.hbm [resolvable:$true] %s128_s11 }
  0x9c   :  { %s104_s24 = sshll.u32 %s5524_s29, 4  ;;  %s5247_s18 = sshra.s32 %s5763_s12, 4  ;;  %s105_s24 = int_to_ptr.vmem [resolvable:$true] %s104_s24  ;;  %s5248_s18 = int_to_ptr.hbm [resolvable:$true] %s5247_s18 }
  0x9d   :  { %s5249_s4 = scalar_lea.hbm %s5248_s18, 2  ;;  %s5251_s13 = scalar_lea.hbm %s5603_s19, 2 }
  0x9e   :  { %p5250_p12 = scmp.ne.s32.totalorder %s5248_s18, %s5249_s4  ;;  %p5252_p13 = scmp.lt.s32.totalorder %s5248_s18, %s5603_s19 }
  0x9f   :  { %p5253_p0 = scmp.lt.s32.totalorder %s5251_s13, %s5249_s4 }
  0xa1   :  { %p5254_p1 = por %p5253_p0, %p5252_p13 }
  0xa3   :  { %p5255_p2 = pnand %p5254_p1, %p5250_p12 }
  0xa5   :  { %5258 = shalt.err (!%p5255_p2)
}
  0xa6   :  { %110 = dma.hbm_to_vmem [thread:$0]  %s5763_s12, 32, %s105_s24, [#allocation3], %s5518_s16, %s5518_s16, %s5519_s23  }
  0xa7   :  { %s5525_s15 = smov [#allocation6]   ;;  %s158_s1 = sshll.u32 %s5633_s27, 4  ;;  %s5778_s1 = int_to_ptr.hbm [resolvable:$true] %s158_s1 }
  0xa8   :  { %s130_s26 = sshll.u32 %s5525_s15, 4  ;;  %s5271_s19 = sshra.s32 %s5768_s11, 4  ;;  %s131_s26 = int_to_ptr.vmem [resolvable:$true] %s130_s26  ;;  %s5272_s19 = int_to_ptr.hbm [resolvable:$true] %s5271_s19 }
  0xa9   :  { %s5273_s6 = scalar_lea.hbm %s5272_s19, 2  ;;  %s5275_s3 = scalar_lea.hbm %s5613_s30, 2 }
  0xaa   :  { %p5274_p3 = scmp.ne.s32.totalorder %s5272_s19, %s5273_s6  ;;  %p5276_p4 = scmp.lt.s32.totalorder %s5272_s19, %s5613_s30 }
  0xab   :  { %p5277_p5 = scmp.lt.s32.totalorder %s5275_s3, %s5273_s6 }
  0xad   :  { %p5278_p6 = por %p5277_p5, %p5276_p4 }
  0xaf   :  { %p5279_p7 = pnand %p5278_p6, %p5274_p3 }
  0xb1   :  { %5282 = shalt.err (!%p5279_p7)
}
  0xb2   :  { %136 = dma.hbm_to_vmem [thread:$0]  %s5768_s11, 32, %s131_s26, [#allocation5], %s5518_s16, %s5518_s16, %s5519_s23  }
  0xb3   :  { %s182_s22 = sshll.u32 %s5643_s14, 4  ;;  %s5526_s2 = smov [#allocation9]   ;;  %s5788_s22 = int_to_ptr.hbm [resolvable:$true] %s182_s22 }
  0xb4   :  { %s160_s12 = sshll.u32 %s5526_s2, 4  ;;  %s5295_s30 = sshra.s32 %s5778_s1, 4  ;;  %s161_s12 = int_to_ptr.vmem [resolvable:$true] %s160_s12  ;;  %s5296_s30 = int_to_ptr.hbm [resolvable:$true] %s5295_s30 }
  0xb5   :  { %s5297_s28 = scalar_lea.hbm %s5296_s30, 32  ;;  %s5299_s17 = scalar_lea.hbm %s5633_s27, 32 }
  0xb6   :  { %p5298_p8 = scmp.ne.s32.totalorder %s5296_s30, %s5297_s28  ;;  %p5300_p9 = scmp.lt.s32.totalorder %s5296_s30, %s5633_s27 }
  0xb7   :  { %p5301_p10 = scmp.lt.s32.totalorder %s5299_s17, %s5297_s28 }
  0xb9   :  { %p5302_p11 = por %p5301_p10, %p5300_p9 }
  0xbb   :  { %p5303_p12 = pnand %p5302_p11, %p5298_p8 }
  0xbd   :  { %5306 = shalt.err (!%p5303_p12)
}
  0xbe   :  { %166 = dma.hbm_to_vmem [thread:$0]  %s5778_s1, 512, %s161_s12, [#allocation8], %s5513_s7, %s5513_s7, %s5514_s10  }
  0xbf   :  { %s5527_s0 = smov [#allocation12]   ;;  %s208_s29 = sshll.u32 %s5653_s20, 4  ;;  %s5798_s29 = int_to_ptr.hbm [resolvable:$true] %s208_s29 }
  0xc0   :  { %s184_s11 = sshll.u32 %s5527_s0, 4  ;;  %s5319_s27 = sshra.s32 %s5788_s22, 4  ;;  %s185_s11 = int_to_ptr.vmem [resolvable:$true] %s184_s11  ;;  %s5320_s27 = int_to_ptr.hbm [resolvable:$true] %s5319_s27 }
  0xc1   :  { %s5321_s24 = scalar_lea.hbm %s5320_s27, 2  ;;  %s5323_s18 = scalar_lea.hbm %s5643_s14, 2 }
  0xc2   :  { %p5322_p13 = scmp.ne.s32.totalorder %s5320_s27, %s5321_s24  ;;  %p5324_p0 = scmp.lt.s32.totalorder %s5320_s27, %s5643_s14 }
  0xc3   :  { %p5325_p1 = scmp.lt.s32.totalorder %s5323_s18, %s5321_s24 }
  0xc5   :  { %p5326_p2 = por %p5325_p1, %p5324_p0 }
  0xc7   :  { %p5327_p3 = pnand %p5326_p2, %p5322_p13 }
  0xc9   :  { %5330 = shalt.err (!%p5327_p3)
}
  0xca   :  { %190 = dma.hbm_to_vmem [thread:$0]  %s5788_s22, 32, %s185_s11, [#allocation11], %s5518_s16, %s5518_s16, %s5519_s23  }
  0xcb   :  { %s234_s4 = sshll.u32 %s5663_s25, 4  ;;  %s5528_s13 = smov [#allocation15]   ;;  %s5808_s4 = int_to_ptr.hbm [resolvable:$true] %s234_s4 }
  0xcc   :  { %s210_s15 = sshll.u32 %s5528_s13, 4  ;;  %s5343_s14 = sshra.s32 %s5798_s29, 4  ;;  %s211_s15 = int_to_ptr.vmem [resolvable:$true] %s210_s15  ;;  %s5344_s14 = int_to_ptr.hbm [resolvable:$true] %s5343_s14 }
  0xcd   :  { %s5345_s26 = scalar_lea.hbm %s5344_s14, 2  ;;  %s5347_s1 = scalar_lea.hbm %s5653_s20, 2 }
  0xce   :  { %p5346_p4 = scmp.ne.s32.totalorder %s5344_s14, %s5345_s26  ;;  %p5348_p5 = scmp.lt.s32.totalorder %s5344_s14, %s5653_s20 }
  0xcf   :  { %p5349_p6 = scmp.lt.s32.totalorder %s5347_s1, %s5345_s26 }
  0xd1   :  { %p5350_p7 = por %p5349_p6, %p5348_p5 }
  0xd3   :  { %p5351_p8 = pnand %p5350_p7, %p5346_p4 }
  0xd5   :  { %5354 = shalt.err (!%p5351_p8)
}
  0xd6   :  { %216 = dma.hbm_to_vmem [thread:$0]  %s5798_s29, 32, %s211_s15, [#allocation14], %s5518_s16, %s5518_s16, %s5519_s23  }
  0xd7   :  { %s5529_s19 = smov [#allocation18]   ;;  %s260_s3 = sshll.u32 %s5673_s9, 4  ;;  %s5818_s3 = int_to_ptr.hbm [resolvable:$true] %s260_s3 }
  0xd8   :  { %s236_s6 = sshll.u32 %s5529_s19, 4  ;;  %s5367_s20 = sshra.s32 %s5808_s4, 4  ;;  %s237_s6 = int_to_ptr.vmem [resolvable:$true] %s236_s6  ;;  %s5368_s20 = int_to_ptr.hbm [resolvable:$true] %s5367_s20 }
  0xd9   :  { %s5369_s22 = scalar_lea.hbm %s5368_s20, 2  ;;  %s5371_s2 = scalar_lea.hbm %s5663_s25, 2 }
  0xda   :  { %p5370_p9 = scmp.ne.s32.totalorder %s5368_s20, %s5369_s22  ;;  %p5372_p10 = scmp.lt.s32.totalorder %s5368_s20, %s5663_s25 }
  0xdb   :  { %p5373_p11 = scmp.lt.s32.totalorder %s5371_s2, %s5369_s22 }
  0xdd   :  { %p5374_p12 = por %p5373_p11, %p5372_p10 }
  0xdf   :  { %p5375_p13 = pnand %p5374_p12, %p5370_p9 }
  0xe1   :  { %5378 = shalt.err (!%p5375_p13)
}
  0xe2   :  { %s6706_s12 = sld [smem:[#allocation50_spill]]  ;;  %s5530_s28 = smov [#allocation21]  }
  0xe3   :  { %242 = dma.hbm_to_vmem [thread:$0]  %s5808_s4, 32, %s237_s6, [#allocation17], %s5518_s16, %s5518_s16, %s5519_s23  }
  0xe4   :  { %s262_s17 = sshll.u32 %s5530_s28, 4  ;;  %s5391_s25 = sshra.s32 %s5818_s3, 4  ;;  %s263_s17 = int_to_ptr.vmem [resolvable:$true] %s262_s17  ;;  %s5392_s25 = int_to_ptr.hbm [resolvable:$true] %s5391_s25 }
  0xe5   :  { %s5393_s0 = scalar_lea.hbm %s5392_s25, 64  ;;  %s5395_s11 = scalar_lea.hbm %s5673_s9, 64 }
  0xe6   :  { %p5394_p0 = scmp.ne.s32.totalorder %s5392_s25, %s5393_s0  ;;  %p5396_p1 = scmp.lt.s32.totalorder %s5392_s25, %s5673_s9 }
  0xe7   :  { %p5397_p2 = scmp.lt.s32.totalorder %s5395_s11, %s5393_s0 }
  0xe8   :  { %s288_s30 = sshll.u32 %s6706_s12, 4  ;;  %s5828_s30 = int_to_ptr.hbm [resolvable:$true] %s288_s30 }
  0xe9   :  { %p5398_p3 = por %p5397_p2, %p5396_p1 }
  0xeb   :  { %p5399_p4 = pnand %p5398_p3, %p5394_p0 }
  0xed   :  { %5402 = shalt.err (!%p5399_p4)
}
  0xee   :  { %268 = dma.hbm_to_vmem [thread:$0]  %s5818_s3, 1024, %s263_s17, [#allocation20], %s5513_s7, %s5513_s7, %s5514_s10  }
  0xef   :  { %s5531_s29 = smov [#allocation24]   ;;  %s313_s24 = sshll.u32 %s5698_s8, 4  ;;  %s314_s24 = int_to_ptr.hbm [resolvable:$true] %s313_s24 }
  0xf0   :  { %s290_s27 = sshll.u32 %s5531_s29, 4  ;;  %s5415_s18 = sshra.s32 %s5828_s30, 4  ;;  %s291_s27 = int_to_ptr.vmem [resolvable:$true] %s290_s27  ;;  %s5416_s18 = int_to_ptr.hbm [resolvable:$true] %s5415_s18 }
  0xf1   :  { %s5417_s9 = scalar_lea.hbm %s5416_s18, 2  ;;  %s5419_s4 = scalar_lea.hbm %s6706_s12, 2 }
  0xf2   :  { %p5418_p5 = scmp.ne.s32.totalorder %s5416_s18, %s5417_s9  ;;  %p5420_p6 = scmp.lt.s32.totalorder %s5416_s18, %s6706_s12 }
  0xf3   :  { %p5421_p7 = scmp.lt.s32.totalorder %s5419_s4, %s5417_s9 }
  0xf5   :  { %p5422_p8 = por %p5421_p7, %p5420_p6 }
  0xf7   :  { %p5423_p9 = pnand %p5422_p8, %p5418_p5 }
  0xf9   :  { %5426 = shalt.err (!%p5423_p9)
}
  0xfa   :  { %296 = dma.hbm_to_vmem [thread:$0]  %s5828_s30, 32, %s291_s27, [#allocation23], %s5518_s16, %s5518_s16, %s5519_s23  }
  0xfb   :  { %s5532_s7 = smov [#allocation27]   ;;  %s5439_s13 = sshra.s32 %s314_s24, 4  ;;  %s5440_s13 = int_to_ptr.hbm [resolvable:$true] %s5439_s13 }
  0xfc   :  { %s315_s10 = sshll.u32 %s5532_s7, 4  ;;  %s5441_s15 = scalar_lea.hbm %s5440_s13, 1  ;;  %s316_s10 = int_to_ptr.vmem [resolvable:$true] %s315_s10 }
  0xfd   :  { %p5442_p10 = scmp.ne.s32.totalorder %s5440_s13, %s5441_s15  ;;  %s5443_s14 = scalar_lea.hbm %s5698_s8, 1 }
  0xfe   :  { %p5444_p11 = scmp.lt.s32.totalorder %s5440_s13, %s5698_s8  ;;  %p5445_p12 = scmp.lt.s32.totalorder %s5443_s14, %s5441_s15 }
 0x100   :  { %p5446_p13 = por %p5445_p12, %p5444_p11 }
 0x102   :  { %p5447_p0 = pnand %p5446_p13, %p5442_p10 }
 0x104   :  { %5450 = shalt.err (!%p5447_p0)
}
 0x105   :  { %318 = dma.hbm_to_vmem [thread:$0]  %s314_s24, 16, %s316_s10, [#allocation26]  }
 0x106   :  { %5463 = dma.done.wait [#allocation3], 32  }
 0x107   :  { %5464 = vsyncadd [#allocation3], 4294967264 }
 0x108   :  { %5465 = dma.done.wait [#allocation5], 1056  }
 0x109   :  { %5466 = vsyncadd [#allocation5], 4294966240 }
 0x10a   :  { %5467 = dma.done.wait [#allocation8], 1024  }
 0x10b   :  { %5468 = vsyncadd [#allocation8], 4294966272 }
 0x10c   :  { %5469 = dma.done.wait [#allocation11], 48  }
 0x10d   :  { %5470 = vsyncadd [#allocation11], 4294967248 }
 0x10e   :  { %5471 = dma.done.wait [#allocation14], 64  }
 0x10f   :  { %5472 = vsyncadd [#allocation14], 4294967232 }
 0x110   :  { %5473 = dma.done.wait [#allocation17], 64  }
 0x111   :  { %5474 = vsyncadd [#allocation17], 4294967232 }
 0x112   :  { %5475 = dma.done.wait [#allocation20], 1056  }
 0x113   :  { %5476 = vsyncadd [#allocation20], 4294966240 }
 0x114   :  { %5477 = dma.done.wait [#allocation23], 64  }
 0x115   :  { %5478 = vsyncadd [#allocation23], 4294967232 }
 0x116   :  { %5479 = dma.done.wait [#allocation26], 32  }
 0x117   :  { %5480 = vsyncadd [#allocation26], 4294967264  ;;  %s6707_s8 = sld [smem:[#allocation45_spill]]  ;;  %vm407_vm0 = vcmask 261120   ;;  %v516_v12 = vld [vmem:[#allocation9 + $0x18] sm:$0xff]  ;;  %v515_v13 = vld [vmem:[#allocation9 + $0x10] sm:$0xff] }
 0x118   :  { %s6708_s16 = sld [smem:[#allocation39_spill]]  ;;  %545 = vmatpush.msra.mxu3 %v516_v12  ;;  %v467_v14 = vld [vmem:[#allocation7 + $0x18] sm:$0xff]  ;;  %v514_v16 = vld [vmem:[#allocation9 + $0x8] sm:$0xff]  ;;  %v466_v18 = vld [vmem:[#allocation7 + $0x10] sm:$0xff]  ;;  %s5533_s20 = smov 88   ;;  %vm610_vm1 = vcmask 64512  }
 0x119   :  { %s6709_s23 = sld [smem:[#allocation41_spill]]  ;;  %496 = vmatpush.msra.mxu2 %v467_v14  ;;  %v513_v19 = vld [vmem:[#allocation9] sm:$0xff]  ;;  %v465_v20 = vld [vmem:[#allocation7 + $0x8] sm:$0xff]  ;;  %s5534_s22 = smov 96  }
 0x11a   :  { %s6710_s26 = sld [smem:[#allocation37_spill]]  ;;  %546 = vmatpush.msra.mxu3 %v515_v13  ;;  %v464_v25 = vld [vmem:[#allocation7] sm:$0xff]  ;;  %s5535_s2 = smov 120  }
 0x11b   :  { %s6711_s1 = sld [smem:[#allocation40_spill]]  ;;  %497 = vmatpush.msra.mxu2 %v466_v18  ;;  %s5536_s12 = smov 64  }
 0x11c   :  { %s6712_s19 = sld [smem:[#allocation38_spill]]  ;;  %547 = vmatpush.msra.mxu3 %v514_v16  ;;  %s5537_s30 = smov 112  }
 0x11d   :  { %v406_v0 = vld [vmem:[%s6707_s8 + $0x18] sm:$0xff]  ;;  %v405_v1 = vld [vmem:[%s6707_s8 + $0x10] sm:$0xff]  ;;  %v404_v2 = vld [vmem:[%s6707_s8 + $0x8] sm:$0xff]  ;;  %s6713_s6 = sld [smem:[#allocation47_spill]]  ;;  %498 = vmatpush.msra.mxu2 %v465_v20  ;;  %s5538_s28 = smov 56  }
 0x11e   :  { %426 = vmatpush.msra.mxu0 %v406_v0  ;;  %4721 = vmatpush.msra.mxu1 %v406_v0  ;;  %v403_v3 = vld [vmem:[%s6707_s8] sm:$0xff]  ;;  %v5853_v5 = vld [vmem:[%s6708_s16 + $0x8] sm:$0xff]  ;;  %s6714_s3 = sld [smem:[#allocation42_spill]]  ;;  %s5539_s17 = smov 80  }
 0x11f   :  { %v393_v4 = vld [vmem:[%s6708_s16] sm:$0xff]  ;;  %v565_v6 = vld [vmem:[%s6709_s23 + $0x18] sm:$0xff]  ;;  %v564_v7 = vld [vmem:[%s6709_s23 + $0x10] sm:$0xff]  ;;  %548 = vmatpush.msra.mxu3 %v513_v19  ;;  %499 = vmatpush.msra.mxu2 %v464_v25  ;;  %s6715_s25 = sld [smem:[#allocation43_spill]]  ;;  %s5540_s0 = smov 72  }
 0x120   :  { %427 = vmatpush.msra.mxu0 %v405_v1  ;;  %4722 = vmatpush.msra.mxu1 %v405_v1  ;;  %v563_v8 = vld [vmem:[%s6709_s23 + $0x8] sm:$0xff]  ;;  %v562_v9 = vld [vmem:[%s6709_s23] sm:$0xff]  ;;  %s5541_s11 = smov 104   ;;  %s6716_s29 = sld [smem:[#allocation48_spill]] }
 0x121   :  { %v5863_v10 = vld [vmem:[%s6710_s26] sm:$0xff]  ;;  %v5868_v11 = vld [vmem:[%s6710_s26 + $0x8] sm:$0xff]  ;;  %v397_v37 = vld [vmem:[%s6711_s1 + $0x10] sm:$0xff]  ;;  %s5542_s27 = smov 48   ;;  %s5543_s24 = smov 40  }
 0x122   :  { %428 = vmatpush.msra.mxu0 %v404_v2  ;;  %4723 = vmatpush.msra.mxu1 %v404_v2  ;;  %v395_v17 = vld [vmem:[%s6711_s1] sm:$0xff]  ;;  %v396_v30 = vld [vmem:[%s6711_s1 + $0x8] sm:$0xff]  ;;  %v391_v39 = vld [vmem:[%s6712_s19 + $0x10] sm:$0xff]  ;;  %s6717_s18 = sld [smem:[#allocation44_spill]] }
 0x123   :  { %v389_v21 = vld [vmem:[%s6712_s19] sm:$0xff]  ;;  %v440_v22 = vld [vmem:[%s6713_s6 + $0x18] sm:$0xff]  ;;  %v439_v23 = vld [vmem:[%s6713_s6 + $0x10] sm:$0xff]  ;;  %v401_v42 = vadd.f32 %v397_v37, %v391_v39  ;;  %s6718_s9 = sld [smem:[#allocation46_spill]] }
 0x124   :  { %429 = vmatpush.msra.mxu0 %v403_v3  ;;  %4724 = vmatpush.msra.mxu1 %v403_v3  ;;  %v399_v24 = vadd.f32 %v395_v17, %v389_v21  ;;  %v438_v26 = vld [vmem:[%s6713_s6 + $0x8] sm:$0xff]  ;;  %v4869_v27 = vld [vmem:[%s6714_s3] ss:$0 sm:$0xff]  ;;  %v392_v44 = vld [vmem:[%s6712_s19 + $0x18] sm:$0xff]  ;;  %s6719_s4 = sld [smem:[#allocation49_spill]] }
 0x125   :  { %4525 = vmatmul.msk.f32.vlgmr.msra.gmra.mxu0 %vm407_vm0, %v393_v4  ;;  %4526 = vmatmul.msk.f32.vlgmr.msra.gmra.mxu1 %vm407_vm0, %v5853_v5  ;;  %v437_v28 = vld [vmem:[%s6713_s6] sm:$0xff]  ;;  %v390_v32 = vld [vmem:[%s6712_s19 + $0x8] sm:$0xff]  ;;  %v398_v45 = vld [vmem:[%s6711_s1 + $0x18] sm:$0xff] }
 0x126   :  { %588 = vmatpush.msrb.mxu0 %v565_v6  ;;  %453 = vmatpush.msrb.mxu1 %v440_v22  ;;  %v400_v34 = vadd.f32 %v396_v30, %v390_v32  ;;  %v402_v46 = vadd.f32 %v398_v45, %v392_v44 }
 0x127   :  { %4533 = vmatmul.msk.f32.vlgmr.msra.gmra.mxu3 %vm407_vm0, %v389_v21  ;;  %4529 = vmatmul.msk.f32.vlgmr.msra.gmra.mxu2 %vm407_vm0, %v399_v24 }
 0x128   :  { %589 = vmatpush.msrb.mxu0 %v564_v7  ;;  %454 = vmatpush.msrb.mxu1 %v439_v23 }
 0x12a   :  { %590 = vmatpush.msrb.mxu0 %v563_v8  ;;  %455 = vmatpush.msrb.mxu1 %v438_v26 }
 0x12c   :  { %591 = vmatpush.msrb.mxu0 %v562_v9  ;;  %456 = vmatpush.msrb.mxu1 %v437_v28 }
 0x12d   :  { %4537 = vmatmul.msk.f32.vlgmr.msrb.gmra.mxu0 %vm407_vm0, %v5863_v10  ;;  %4527 = vmatmul.msk.f32.vlgmr.msrb.gmra.mxu1 %vm407_vm0, %v393_v4 }
 0x12f   :  { %4534 = vmatmul.msk.f32.gmra.mxu3 %vm407_vm0, %v390_v32  ;;  %4530 = vmatmul.msk.f32.gmra.mxu2 %vm407_vm0, %v400_v34  ;;  %v601_v32 = vld [vmem:[%s6715_s25] sm:$0xff] }
 0x135   :  { %4538 = vmatmul.msk.f32.gmra.mxu0 %vm407_vm0, %v5868_v11  ;;  %4528 = vmatmul.msk.f32.gmra.mxu1 %vm407_vm0, %v5853_v5 }
 0x137   :  { %4535 = vmatmul.msk.f32.gmra.mxu3 %vm407_vm0, %v391_v39  ;;  %4531 = vmatmul.msk.f32.gmra.mxu2 %vm407_vm0, %v401_v42 }
 0x13f   :  { %4536 = vmatmul.msk.f32.gmra.mxu3 %vm407_vm0, %v392_v44  ;;  %4532 = vmatmul.msk.f32.gmra.mxu2 %vm407_vm0, %v402_v46 }
 0x1a2   :  { %v5872_v15 = vpop.f32.mrf.mxu0  ;;  %v5898_v36 = vpop.f32.mrf.mxu1 }
 0x1aa   :  { %v593_v29 = vpop.f32.mrf.mxu0  ;;  %v5940_v53 = vpop.f32.mrf.mxu2 }
 0x1ab   :  { %v5884_v31 = vadd.f32 %v4869_v27, %v593_v29  ;;  %v5942_v54 = vpop.f32.mrf.mxu1  ;;  %v5972_v23 = vpop.f32.mrf.mxu3 }
 0x1ad   :  { %v5890_v33 = vadd.f32 %v5884_v31, %v5872_v15 }
 0x1af   :  { %768 = vrot.lane.b32.xlu1 %v5890_v33, %s5533_s20  ;;  %608 = vrot.lane.b32.xlu0 %v5890_v33, %s5534_s22  ;;  %v5911_v41 = vmul.f32 0.35355338, %v5890_v33 }
 0x1b2   :  { %v596_v35 = vpop.f32.mrf.mxu0  ;;  %v5944_v55 = vpop.f32.mrf.mxu2 }
 0x1b3   :  { %v5901_v38 = vadd.f32 %v4869_v27, %v596_v35  ;;  %v5946_v56 = vpop.f32.mrf.mxu1  ;;  %v5978_v24 = vpop.f32.mrf.mxu3 }
 0x1b5   :  { %v5908_v40 = vadd.f32 %v5901_v38, %v5898_v36  ;;  %v4789_v1 = vpack.i.bf16 %v5901_v38, %v5884_v31 }
 0x1b7   :  { %637 = vrot.lane.b32.xlu0 %v5908_v40, %s5534_s22  ;;  %766 = vrot.lane.b32.xlu1 %v5911_v41, %s5535_s2  ;;  %v5922_v43 = vmul.f32 0.35355338, %v5908_v40 }
 0x1b8   :  { %796 = vrot.lane.b32.xlu2 %v5908_v40, %s5533_s20 }
 0x1ba   :  { %v5948_v57 = vpop.f32.mrf.mxu2 }
 0x1bb   :  { %v5982_v25 = vpop.f32.mrf.mxu3 }
 0x1c0   :  { %794 = vrot.lane.b32.xlu2 %v5922_v43, %s5535_s2 }
 0x1c2   :  { %v5951_v60 = vpop.f32.mrf.mxu2 }
 0x1c3   :  { %v5986_v26 = vpop.f32.mrf.mxu3 }
 0x212   :  { %v797_v47 = vpop.permute.xlu2 %796 }
 0x213   :  { %4547 = vmatpush.xpose.msk.msrb.mxu3 %vm610_vm1, %v797_v47 }
 0x217   :  { %972 = vmatpush.msra.mxu3 %v601_v32  ;;  %v603_v32 = vld [vmem:[%s6715_s25 + $0x10] sm:$0xff] }
 0x21a   :  { %v795_v48 = vpop.permute.xlu2 %794 }
 0x21b   :  { %4548 = vmatmul.msk.f32.vlgmr.msrb.gmra.mxu3 %vm610_vm1, %v795_v48 }
 0x221   :  { %v769_v49 = vpop.permute.xlu1 %768  ;;  %v609_v50 = vpop.permute.xlu0 %608 }
 0x222   :  { %4539 = vmatpush.xpose.msk.msra.mxu1 %vm610_vm1, %v609_v50  ;;  %4545 = vmatpush.xpose.msk.msrb.mxu2 %vm610_vm1, %v769_v49 }
 0x225   :  { %4540 = vmatmul.msk.f32.vlgmr.msra.gmra.mxu1 %vm610_vm1, %v5911_v41 }
 0x229   :  { %v638_v51 = vpop.permute.xlu0 %637  ;;  %v767_v52 = vpop.permute.xlu1 %766 }
 0x22a   :  { %4541 = vmatpush.xpose.msk.msrb.mxu1 %vm610_vm1, %v638_v51  ;;  %4546 = vmatmul.msk.f32.vlgmr.msrb.gmra.mxu2 %vm610_vm1, %v767_v52 }
 0x22d   :  { %4542 = vmatmul.msk.f32.vlgmr.msrb.gmra.mxu1 %vm610_vm1, %v5922_v43 }
 0x29e   :  { %v5990_v27 = vpop.f32.mrf.mxu3 }
 0x29f   :  { %v825_v28 = vsel %vm610_vm1, %v5990_v27, -inf }
 0x2a2   :  { %v633_v58 = vpop.f32.mrf.mxu1 }
 0x2a3   :  { %v664_v59 = vsel %vm610_vm1, %v633_v58, -inf }
 0x2a4   :  { %665 = vmax.xlane.f32.xlu0 %v664_v59 }
 0x2aa   :  { %v661_v61 = vpop.f32.mrf.mxu1 }
 0x2ab   :  { %v667_v62 = vsel %vm610_vm1, %v661_v61, -inf }
 0x2ac   :  { %668 = vmax.xlane.f32.xlu1 %v667_v62 }
 0x2ad   :  { %v791_v63 = vpop.f32.mrf.mxu2 }
 0x2ae   :  { %v822_v0 = vsel %vm610_vm1, %v791_v63, -inf }
 0x2af   :  { %823 = vmax.xlane.f32.xlu2 %v822_v0 }
 0x2c5   :  { %4790 = vrot.lane.b32.xlu1 %v4789_v1, %s5536_s12 }
 0x2cd   :  { %980 = vrot.lane.b32.xlu1 %v5911_v41, %s5537_s30 }
 0x317   :  { %v666_v2 = vpop.xlane.xlu0 %665 }
 0x318   :  { %v670_v3 = vsub.f32 %v633_v58, %v666_v2 }
 0x31a   :  { %v672_v4 = vmul.f32 1.442695, %v670_v3 }
 0x31c   :  { %4897 = vpow2.f32 %v672_v4 }
 0x31f   :  { %v669_v5 = vpop.xlane.xlu1 %668 }
 0x320   :  { %v671_v6 = vsub.f32 %v661_v61, %v669_v5 }
 0x322   :  { %v5960_v7 = vpop.eup %4897  ;;  %v674_v8 = vmul.f32 1.442695, %v671_v6  ;;  %v824_v9 = vpop.xlane.xlu2 %823 }
 0x323   :  { %v828_v12 = vsub.f32 %v791_v63, %v824_v9  ;;  %v676_v13 = vsel %vm610_vm1, %v5960_v7, 0.0 }
 0x324   :  { %4899 = vpow2.f32 %v674_v8  ;;  %677 = vadd.xlane.f32.xlu2 %v676_v13 }
 0x325   :  { %v830_v14 = vmul.f32 1.442695, %v828_v12 }
 0x327   :  { %4901 = vpow2.f32 %v830_v14 }
 0x32a   :  { %v5964_v16 = vpop.eup %4899 }
 0x32b   :  { %v679_v17 = vsel %vm610_vm1, %v5964_v16, 0.0 }
 0x32c   :  { %680 = vadd.xlane.f32.xlu0 %v679_v17 }
 0x32d   :  { %v5968_v18 = vpop.eup %4901 }
 0x32e   :  { %v834_v19 = vsel %vm610_vm1, %v5968_v18, 0.0 }
 0x32f   :  { %835 = vadd.xlane.f32.xlu2 %v834_v19 }
 0x337   :  { %v4791_v20 = vpop.permute.xlu1 %4790 }
 0x338   :  { %v4793_v21 = vunpack.i.h.bf16 %v4791_v20  ;;  %v4792_v22 = vunpack.i.l.bf16 %v4791_v20 }
 0x33a   :  { %734 = vmatpush.msra.mxu0 %v4792_v22  ;;  %761 = vmatpush.msra.mxu1 %v4793_v21 }
 0x340   :  { %870 = vrot.lane.b32.xlu0 %v5884_v31, %s5538_s28 }
 0x347   :  { %982 = vrot.lane.b32.xlu2 %v5890_v33, %s5539_s17 }
 0x34f   :  { %896 = vrot.lane.b32.xlu2 %v5901_v38, %s5538_s28 }
 0x357   :  { %1010 = vrot.lane.b32.xlu2 %v5908_v40, %s5539_s17 }
 0x35f   :  { %1169 = vrot.lane.b32.xlu2 %v5890_v33, %s5540_s0 }
 0x367   :  { %1008 = vrot.lane.b32.xlu2 %v5922_v43, %s5537_s30 }
 0x36a   :  { %826 = vmax.xlane.f32.xlu0 %v825_v28 }
 0x37e   :  { %1167 = vrot.lane.b32.xlu0 %v5911_v41, %s5541_s11 }
 0x386   :  { %1197 = vrot.lane.b32.xlu0 %v5908_v40, %s5540_s0 }
 0x38e   :  { %1195 = vrot.lane.b32.xlu0 %v5922_v43, %s5541_s11 }
 0x397   :  { %v678_v29 = vpop.xlane.xlu2 %677 }
 0x398   :  { %4903 = vrcp.f32 %v678_v29  ;;  %v693_v37 = vand.u32 2147483648, %v678_v29  ;;  %v691_v41 = vand.u32 2147483647, %v678_v29  ;;  %vm687_vm3 = vweird.f32 %v678_v29 }
 0x39a   :  { %v694_v43 = vor.u32 1.1754944e-38, %v693_v37  ;;  %vm692_vm5 = vcmp.eq.f32.partialorder %v691_v41, 8.507059e+37 }
 0x39e   :  { %v4904_v30 = vpop.eup %4903 }
 0x39f   :  { %v683_v33 = vmul.f32 %v4904_v30, %v678_v29  ;;  %v681_v34 = vpop.xlane.xlu0 %680  ;;  %vm688_vm2 = vweird.f32 %v4904_v30 }
 0x3a0   :  { %4905 = vrcp.f32 %v681_v34  ;;  %vm689_vm4 = vmor %vm687_vm3, %vm688_vm2  ;;  %v708_v51 = vand.u32 2147483648, %v681_v34  ;;  %v706_v61 = vand.u32 2147483647, %v681_v34  ;;  %vm702_vm7 = vweird.f32 %v681_v34 }
 0x3a1   :  { %v684_v35 = vsub.f32 1.0, %v683_v33 }
 0x3a2   :  { %v836_v39 = vpop.xlane.xlu2 %835  ;;  %v709_v1 = vor.u32 1.1754944e-38, %v708_v51  ;;  %vm707_vm10 = vcmp.eq.f32.partialorder %v706_v61, 8.507059e+37 }
 0x3a3   :  { %v685_v42 = vmul.f32 %v4904_v30, %v684_v35  ;;  %4907 = vrcp.f32 %v836_v39  ;;  %v851_v0 = vand.u32 2147483648, %v836_v39  ;;  %v849_v3 = vand.u32 2147483647, %v836_v39  ;;  %v6019_v35 = vld [vmem:[%s6716_s29] ss:$0 sm:$0xff] }
 0x3a4   :  { %vm845_vm11 = vweird.f32 %v836_v39 }
 0x3a5   :  { %v686_v44 = vadd.f32 %v4904_v30, %v685_v42  ;;  %vm850_vm13 = vcmp.eq.f32.partialorder %v849_v3, 8.507059e+37 }
 0x3a6   :  { %v4906_v40 = vpop.eup %4905 }
 0x3a7   :  { %v690_v45 = vsel %vm689_vm4, %v4904_v30, %v686_v44  ;;  %v698_v46 = vmul.f32 %v4906_v40, %v681_v34  ;;  %vm703_vm6 = vweird.f32 %v4906_v40  ;;  %v602_v30 = vld [vmem:[%s6715_s25 + $0x8] sm:$0xff] }
 0x3a8   :  { %v695_v47 = vsel %vm692_vm5, %v694_v43, %v690_v45  ;;  %vm704_vm8 = vmor %vm702_vm7, %vm703_vm6  ;;  %943 = vmatpush.msra.mxu2 %v602_v30 }
 0x3a9   :  { %v4908_v48 = vpop.eup %4907  ;;  %v699_v49 = vsub.f32 1.0, %v698_v46  ;;  %v696_v50 = vmul.f32 %v5960_v7, %v695_v47  ;;  %v852_v7 = vor.u32 1.1754944e-38, %v851_v0 }
 0x3aa   :  { %v841_v52 = vmul.f32 %v4908_v48, %v836_v39  ;;  %v983_v58 = vpop.permute.xlu2 %982  ;;  %vm846_vm9 = vweird.f32 %v4908_v48  ;;  %1157 = vmatpush.msrb.mxu2 %v603_v32  ;;  %v6031_v39 = vadd.f32 %v6019_v35, %v5940_v53 }
 0x3ab   :  { %v700_v59 = vmul.f32 %v4906_v40, %v699_v49  ;;  %4543 = vmatmul.msk.f32.vlgmr.msra.gmra.mxu0 %vm610_vm1, %v696_v50  ;;  %vm847_vm12 = vmor %vm845_vm11, %vm846_vm9 }
 0x3ac   :  { %v842_v62 = vsub.f32 1.0, %v841_v52 }
 0x3ad   :  { %v701_v63 = vadd.f32 %v4906_v40, %v700_v59 }
 0x3ae   :  { %v843_v2 = vmul.f32 %v4908_v48, %v842_v62 }
 0x3af   :  { %v705_v4 = vsel %vm704_vm8, %v4906_v40, %v701_v63 }
 0x3b0   :  { %v844_v5 = vadd.f32 %v4908_v48, %v843_v2  ;;  %v710_v6 = vsel %vm707_vm10, %v709_v1, %v705_v4 }
 0x3b1   :  { %v711_v8 = vmul.f32 %v5964_v16, %v710_v6  ;;  %v981_v16 = vpop.permute.xlu1 %980 }
 0x3b2   :  { %v848_v9 = vsel %vm847_vm12, %v4908_v48, %v844_v5  ;;  %v897_v12 = vpop.permute.xlu2 %896  ;;  %v871_v13 = vpop.permute.xlu0 %870 }
 0x3b3   :  { %4544 = vmatmul.msk.f32.vlgmr.msra.gmra.mxu1 %vm610_vm1, %v711_v8  ;;  %891 = vmatpush.msrb.mxu0 %v871_v13  ;;  %v853_v14 = vsel %vm850_vm13, %v852_v7, %v848_v9 }
 0x3b4   :  { %917 = vmatpush.msrb.mxu1 %v897_v12  ;;  %v854_v17 = vmul.f32 %v5968_v18, %v853_v14 }
 0x3b5   :  { %4555 = vmatpush.xpose.msk.msra.mxu0 %vm610_vm1, %v983_v58 }
 0x3b6   :  { %4549 = vmatmul.msk.f32.vlgmr.msrb.gmra.mxu0 %vm610_vm1, %v854_v17 }
 0x3ba   :  { %v1011_v19 = vpop.permute.xlu2 %1010 }
 0x3bb   :  { %4557 = vmatpush.xpose.msk.msra.mxu1 %vm610_vm1, %v1011_v19 }
 0x3be   :  { %4556 = vmatmul.msk.f32.vlgmr.msra.gmra.mxu0 %vm610_vm1, %v981_v16 }
 0x3c2   :  { %v1170_v20 = vpop.permute.xlu2 %1169 }
 0x3c3   :  { %4563 = vmatpush.xpose.msk.msrb.mxu3 %vm610_vm1, %v1170_v20 }
 0x3ca   :  { %v1009_v58 = vpop.permute.xlu2 %1008 }
 0x3dd   :  { %v827_v21 = vpop.xlane.xlu0 %826 }
 0x3de   :  { %v829_v22 = vsub.f32 %v5990_v27, %v827_v21  ;;  %v6024_v27 = vadd.f32 %v6019_v35, %v5944_v55 }
 0x3e0   :  { %v832_v28 = vmul.f32 1.442695, %v829_v22 }
 0x3e2   :  { %4909 = vpow2.f32 %v832_v28 }
 0x3e8   :  { %v4910_v29 = vpop.eup %4909 }
 0x3e9   :  { %v837_v18 = vsel %vm610_vm1, %v4910_v29, 0.0 }
 0x3ea   :  { %838 = vadd.xlane.f32.xlu1 %v837_v18 }
 0x3f0   :  { %v1168_v42 = vpop.permute.xlu0 %1167 }
 0x3f8   :  { %v1198_v28 = vpop.permute.xlu0 %1197 }
 0x428   :  { %v736_v33 = vpop.f32.mrf.mxu0 }
 0x429   :  { %4553 = vmatmul.msk.f32.vlgmr.msra.gmra.mxu3 %vm610_vm1, %v736_v33 }
 0x430   :  { %v763_v34 = vpop.f32.mrf.mxu1 }
 0x431   :  { %4554 = vmatmul.msk.f32.gmra.mxu3 %vm610_vm1, %v763_v34 }
 0x433   :  { %v893_v37 = vpop.f32.mrf.mxu0 }
 0x434   :  { %4551 = vmatmul.msk.f32.vlgmr.msra.gmra.mxu2 %vm610_vm1, %v893_v37 }
 0x435   :  { %4573 = vmatpush.xpose.msk.msra.mxu2 %vm610_vm1, %v6024_v27 }
 0x439   :  { %4574 = vmatpush.xpose.msk.msra.mxu2 %vm610_vm1, %v6031_v39  ;;  %4564 = vmatmul.msk.f32.vlgmr.msrb.gmra.mxu3 %vm610_vm1, %v1168_v42 }
 0x43b   :  { %v1005_v41 = vpop.f32.mrf.mxu0 }
 0x43c   :  { %v1036_v55 = vsel %vm610_vm1, %v1005_v41, -inf }
 0x43d   :  { %1037 = vmax.xlane.f32.xlu2 %v1036_v55 }
 0x45d   :  { %v839_v44 = vpop.xlane.xlu1 %838 }
 0x45e   :  { %4911 = vrcp.f32 %v839_v44  ;;  %v866_v46 = vand.u32 2147483648, %v839_v44  ;;  %v864_v53 = vand.u32 2147483647, %v839_v44  ;;  %vm860_vm15 = vweird.f32 %v839_v44 }
 0x460   :  { %v867_v49 = vor.u32 1.1754944e-38, %v866_v46  ;;  %vm865_vm3 = vcmp.eq.f32.partialorder %v864_v53, 8.507059e+37 }
 0x464   :  { %v4912_v40 = vpop.eup %4911 }
 0x465   :  { %v856_v43 = vmul.f32 %v4912_v40, %v839_v44  ;;  %vm861_vm14 = vweird.f32 %v4912_v40 }
 0x466   :  { %vm862_vm2 = vmor %vm860_vm15, %vm861_vm14 }
 0x467   :  { %v857_v45 = vsub.f32 1.0, %v856_v43  ;;  %v6058_v43 = vld [vmem:[#allocation10] ss:$0 sm:$0xff] }
 0x469   :  { %v858_v47 = vmul.f32 %v4912_v40, %v857_v45  ;;  %v6062_v45 = vadd.f32 %v6058_v43, %v5978_v24 }
 0x46b   :  { %v859_v48 = vadd.f32 %v4912_v40, %v858_v47  ;;  %v6067_v47 = vadd.f32 %v6058_v43, %v5972_v23 }
 0x46d   :  { %v863_v50 = vsel %vm862_vm2, %v4912_v40, %v859_v48 }
 0x46e   :  { %v868_v51 = vsel %vm865_vm3, %v867_v49, %v863_v50 }
 0x46f   :  { %v869_v52 = vmul.f32 %v4910_v29, %v868_v51 }
 0x471   :  { %4550 = vmatmul.msk.f32.vlgmr.msrb.gmra.mxu1 %vm610_vm1, %v869_v52 }
 0x479   :  { %4558 = vmatmul.msk.f32.vlgmr.msra.gmra.mxu1 %vm610_vm1, %v1009_v58 }
 0x4ac   :  { %v6042_v1 = vpop.f32.mrf.mxu3 }
 0x4b0   :  { %v1038_v59 = vpop.xlane.xlu2 %1037 }
 0x4b1   :  { %v1042_v61 = vsub.f32 %v1005_v41, %v1038_v59 }
 0x4b3   :  { %v1044_v62 = vmul.f32 1.442695, %v1042_v61 }
 0x4b4   :  { %v6045_v3 = vpop.f32.mrf.mxu3 }
 0x4b5   :  { %4913 = vpow2.f32 %v1044_v62 }
 0x4bb   :  { %v4914_v63 = vpop.eup %4913 }
 0x4bc   :  { %v1048_v0 = vsel %vm610_vm1, %v4914_v63, 0.0  ;;  %v1192_v6 = vpop.f32.mrf.mxu3 }
 0x4bd   :  { %1049 = vadd.xlane.f32.xlu1 %v1048_v0  ;;  %v1223_v7 = vsel %vm610_vm1, %v1192_v6, -inf }
 0x4d6   :  { %1084 = vrot.lane.b32.xlu1 %v5884_v31, %s5542_s27 }
 0x4ee   :  { %v919_v2 = vpop.f32.mrf.mxu1 }
 0x4ef   :  { %4552 = vmatmul.msk.f32.gmra.mxu2 %vm610_vm1, %v919_v2 }
 0x4f6   :  { %v1033_v4 = vpop.f32.mrf.mxu1 }
 0x4f7   :  { %v1039_v5 = vsel %vm610_vm1, %v1033_v4, -inf }
 0x4f8   :  { %1040 = vmax.xlane.f32.xlu0 %v1039_v5 }
 0x500   :  { %1224 = vmax.xlane.f32.xlu1 %v1223_v7 }
 0x50c   :  { %1271 = vrot.lane.b32.xlu0 %v5884_v31, %s5543_s24  ;;  %v1196_v31 = vpop.permute.xlu0 %1195 }
 0x530   :  { %v1050_v8 = vpop.xlane.xlu1 %1049 }
 0x531   :  { %4915 = vrcp.f32 %v1050_v8  ;;  %v1065_v19 = vand.u32 2147483648, %v1050_v8  ;;  %vm1059_vm5 = vweird.f32 %v1050_v8  ;;  %v1063_v16 = vand.u32 2147483647, %v1050_v8 }
 0x533   :  { %v1066_v21 = vor.u32 1.1754944e-38, %v1065_v19  ;;  %vm1064_vm7 = vcmp.eq.f32.partialorder %v1063_v16, 8.507059e+37 }
 0x537   :  { %v4916_v9 = vpop.eup %4915 }
 0x538   :  { %v1055_v12 = vmul.f32 %v4916_v9, %v1050_v8  ;;  %vm1060_vm4 = vweird.f32 %v4916_v9 }
 0x539   :  { %vm1061_vm6 = vmor %vm1059_vm5, %vm1060_vm4 }
 0x53a   :  { %v1056_v13 = vsub.f32 1.0, %v1055_v12 }
 0x53c   :  { %v1057_v14 = vmul.f32 %v4916_v9, %v1056_v13 }
 0x53e   :  { %v1058_v17 = vadd.f32 %v4916_v9, %v1057_v14 }
 0x540   :  { %v1062_v20 = vsel %vm1061_vm6, %v4916_v9, %v1058_v17 }
 0x541   :  { %v1067_v22 = vsel %vm1064_vm7, %v1066_v21, %v1062_v20 }
 0x542   :  { %v1068_v18 = vmul.f32 %v4914_v63, %v1067_v22 }
 0x548   :  { %v1085_v29 = vpop.permute.xlu1 %1084 }
 0x549   :  { %1105 = vmatpush.msrb.mxu0 %v1085_v29 }
 0x54a   :  { %4559 = vmatmul.msk.f32.vlgmr.msrb.gmra.mxu0 %vm610_vm1, %v1068_v18  ;;  %v6079_v18 = vadd.f32 %v6019_v35, %v5951_v60 }
 0x54b   :  { %4565 = vmatpush.xpose.msk.msra.mxu0 %vm610_vm1, %v1198_v28 }
 0x552   :  { %4566 = vmatmul.msk.f32.vlgmr.msra.gmra.mxu0 %vm610_vm1, %v1196_v31 }
 0x56b   :  { %v1041_v30 = vpop.xlane.xlu0 %1040 }
 0x56c   :  { %v1043_v32 = vsub.f32 %v1033_v4, %v1041_v30  ;;  %v6085_v30 = vadd.f32 %v6019_v35, %v5948_v57 }
 0x56e   :  { %v1046_v33 = vmul.f32 1.442695, %v1043_v32  ;;  %v604_v32 = vld [vmem:[%s6715_s25 + $0x18] sm:$0xff] }
 0x56f   :  { %1344 = vmatpush.msrb.mxu0 %v604_v32  ;;  %v1425_v32 = vld [vmem:[%s6718_s9] sm:$0xff] }
 0x570   :  { %4917 = vpow2.f32 %v1046_v33 }
 0x573   :  { %v1225_v34 = vpop.xlane.xlu1 %1224 }
 0x574   :  { %v1229_v37 = vsub.f32 %v1192_v6, %v1225_v34 }
 0x576   :  { %v4918_v42 = vpop.eup %4917  ;;  %v1231_v41 = vmul.f32 1.442695, %v1229_v37 }
 0x577   :  { %v1051_v55 = vsel %vm610_vm1, %v4918_v42, 0.0 }
 0x578   :  { %4919 = vpow2.f32 %v1231_v41  ;;  %1052 = vadd.xlane.f32.xlu2 %v1051_v55 }
 0x57e   :  { %v4920_v44 = vpop.eup %4919  ;;  %v1272_v4 = vpop.permute.xlu0 %1271 }
 0x57f   :  { %v1235_v40 = vsel %vm610_vm1, %v4920_v44, 0.0 }
 0x580   :  { %1236 = vadd.xlane.f32.xlu2 %v1235_v40 }
 0x598   :  { %1110 = vrot.lane.b32.xlu2 %v5901_v38, %s5542_s27 }
 0x5c7   :  { %v1107_v46 = vpop.f32.mrf.mxu0 }
 0x5c8   :  { %4561 = vmatmul.msk.f32.vlgmr.msrb.gmra.mxu2 %vm610_vm1, %v1107_v46 }
 0x5c9   :  { %1594 = vmatpush.msrb.mxu2 %v6062_v45 }
 0x5cb   :  { %1595 = vmatpush.msrb.mxu2 %v6067_v47 }
 0x5cf   :  { %v1220_v53 = vpop.f32.mrf.mxu0 }
 0x5d0   :  { %v1226_v48 = vsel %vm610_vm1, %v1220_v53, -inf }
 0x5d1   :  { %1227 = vmax.xlane.f32.xlu1 %v1226_v48 }
 0x5ea   :  { %1297 = vrot.lane.b32.xlu1 %v5901_v38, %s5543_s24 }
 0x5eb   :  { %v1053_v24 = vpop.xlane.xlu2 %1052 }
 0x5ec   :  { %4921 = vrcp.f32 %v1053_v24  ;;  %v1080_v23 = vand.u32 2147483648, %v1053_v24  ;;  %v1078_v59 = vand.u32 2147483647, %v1053_v24  ;;  %vm1074_vm9 = vweird.f32 %v1053_v24 }
 0x5ee   :  { %v1081_v63 = vor.u32 1.1754944e-38, %v1080_v23  ;;  %vm1079_vm11 = vcmp.eq.f32.partialorder %v1078_v59, 8.507059e+37 }
 0x5f2   :  { %v4922_v49 = vpop.eup %4921 }
 0x5f3   :  { %v1070_v50 = vmul.f32 %v4922_v49, %v1053_v24  ;;  %v1237_v51 = vpop.xlane.xlu2 %1236  ;;  %vm1075_vm8 = vweird.f32 %v4922_v49  ;;  %v6094_v24 = vadd.f32 %v6058_v43, %v5986_v26  ;;  %v4872_v26 = vld [vmem:[%s6717_s18] ss:$0 sm:$0xff] }
 0x5f4   :  { %4923 = vrcp.f32 %v1237_v51  ;;  %vm1076_vm10 = vmor %vm1074_vm9, %vm1075_vm8  ;;  %v1252_v8 = vand.u32 2147483648, %v1237_v51  ;;  %v1250_v12 = vand.u32 2147483647, %v1237_v51  ;;  %vm1246_vm13 = vweird.f32 %v1237_v51 }
 0x5f5   :  { %v1071_v52 = vsub.f32 1.0, %v1070_v50  ;;  %v945_v50 = vpop.f32.mrf.mxu2 }
 0x5f6   :  { %v1253_v14 = vor.u32 1.1754944e-38, %v1252_v8  ;;  %vm1251_vm15 = vcmp.eq.f32.partialorder %v1250_v12, 8.507059e+37  ;;  %v975_v23 = vadd.f32 %v6042_v1, %v945_v50 }
 0x5f7   :  { %v1072_v58 = vmul.f32 %v4922_v49, %v1071_v52 }
 0x5f9   :  { %v1073_v61 = vadd.f32 %v4922_v49, %v1072_v58 }
 0x5fa   :  { %v4924_v62 = vpop.eup %4923 }
 0x5fb   :  { %v1077_v0 = vsel %vm1076_vm10, %v4922_v49, %v1073_v61  ;;  %v1242_v2 = vmul.f32 %v4924_v62, %v1237_v51  ;;  %v1111_v38 = vpop.permute.xlu2 %1110  ;;  %vm1247_vm12 = vweird.f32 %v4924_v62  ;;  %v6099_v49 = vadd.f32 %v6058_v43, %v5982_v25 }
 0x5fc   :  { %1131 = vmatpush.msrb.mxu1 %v1111_v38  ;;  %v1082_v5 = vsel %vm1079_vm11, %v1081_v63, %v1077_v0  ;;  %vm1248_vm14 = vmor %vm1246_vm13, %vm1247_vm12  ;;  %v5544_v43 = vmov 32.0   ;;  %vm1528_vm13 = vcmask 130048  }
 0x5fd   :  { %v1243_v6 = vsub.f32 1.0, %v1242_v2  ;;  %v1083_v7 = vmul.f32 %v4918_v42, %v1082_v5  ;;  %v948_v51 = vpop.f32.mrf.mxu2 }
 0x5fe   :  { %1292 = vmatpush.msra.mxu1 %v1272_v4 }
 0x5ff   :  { %v1244_v9 = vmul.f32 %v4924_v62, %v1243_v6  ;;  %4560 = vmatmul.msk.f32.vlgmr.msrb.gmra.mxu1 %vm610_vm1, %v1083_v7 }
 0x601   :  { %v1245_v13 = vadd.f32 %v4924_v62, %v1244_v9 }
 0x603   :  { %v1249_v17 = vsel %vm1248_vm14, %v4924_v62, %v1245_v13 }
 0x604   :  { %v1254_v19 = vsel %vm1251_vm15, %v1253_v14, %v1249_v17  ;;  %v978_v14 = vadd.f32 %v6045_v3, %v948_v51 }
 0x605   :  { %v1255_v16 = vmul.f32 %v4920_v44, %v1254_v19 }
 0x607   :  { %4567 = vmatmul.msk.f32.vlgmr.msra.gmra.mxu1 %vm610_vm1, %v1255_v16 }
 0x644   :  { %v1228_v20 = vpop.xlane.xlu1 %1227 }
 0x645   :  { %v1230_v21 = vsub.f32 %v1220_v53, %v1228_v20 }
 0x647   :  { %v1233_v22 = vmul.f32 1.442695, %v1230_v21 }
 0x649   :  { %4925 = vpow2.f32 %v1233_v22 }
 0x64b   :  { %v1159_v52 = vpop.f32.mrf.mxu2 }
 0x64c   :  { %v1165_v58 = vadd.f32 %v1159_v52, %v975_v23 }
 0x64f   :  { %v4926_v28 = vpop.eup %4925 }
 0x650   :  { %v1238_v29 = vsel %vm610_vm1, %v4926_v28, 0.0 }
 0x651   :  { %1239 = vadd.xlane.f32.xlu2 %v1238_v29  ;;  %v1427_v29 = vld [vmem:[%s6718_s9 + $0x10] sm:$0xff] }
 0x65c   :  { %v1298_v31 = vpop.permute.xlu1 %1297 }
 0x65d   :  { %1318 = vmatpush.msra.mxu3 %v1298_v31  ;;  %v1426_v31 = vld [vmem:[%s6718_s9 + $0x8] sm:$0xff] }
 0x65f   :  { %4576 = vmatpush.xpose.msk.msrb.mxu3 %vm610_vm1, %v6079_v18 }
 0x663   :  { %4577 = vmatpush.xpose.msk.msrb.mxu3 %vm610_vm1, %v6085_v30 }
 0x67c   :  { %v1133_v33 = vpop.f32.mrf.mxu1 }
 0x67d   :  { %4562 = vmatmul.msk.f32.gmra.mxu2 %vm610_vm1, %v1133_v33 }
 0x684   :  { %v1294_v34 = vpop.f32.mrf.mxu1 }
 0x685   :  { %4569 = vmatmul.msk.f32.vlgmr.msrb.gmra.mxu0 %vm610_vm1, %v1294_v34 }
 0x6c4   :  { %v1240_v60 = vpop.xlane.xlu2 %1239 }
 0x6c5   :  { %4927 = vrcp.f32 %v1240_v60  ;;  %v1267_v55 = vand.u32 2147483648, %v1240_v60  ;;  %v1265_v57 = vand.u32 2147483647, %v1240_v60  ;;  %vm1261_vm3 = vweird.f32 %v1240_v60 }
 0x6c6   :  { %4929 = vrcp.f32 %v5544_v43 }
 0x6c7   :  { %v1268_v40 = vor.u32 1.1754944e-38, %v1267_v55  ;;  %vm1266_vm5 = vcmp.eq.f32.partialorder %v1265_v57, 8.507059e+37 }
 0x6cb   :  { %v4928_v37 = vpop.eup %4927 }
 0x6cc   :  { %v1257_v42 = vmul.f32 %v4928_v37, %v1240_v60  ;;  %vm1262_vm2 = vweird.f32 %v4928_v37  ;;  %v4930_v2 = vpop.eup %4929 }
 0x6cd   :  { %vm1263_vm4 = vmor %vm1261_vm3, %vm1262_vm2  ;;  %v1371_v1 = vmul.f32 32.0, %v4930_v2  ;;  %vm1375_vm6 = vweird.f32 %v4930_v2 }
 0x6ce   :  { %v1258_v41 = vsub.f32 1.0, %v1257_v42 }
 0x6cf   :  { %v1372_v38 = vsub.f32 1.0, %v1371_v1 }
 0x6d0   :  { %v1259_v44 = vmul.f32 %v4928_v37, %v1258_v41 }
 0x6d1   :  { %v1373_v4 = vmul.f32 %v4930_v2, %v1372_v38 }
 0x6d2   :  { %v1260_v35 = vadd.f32 %v4928_v37, %v1259_v44  ;;  %v4873_v44 = vld [vmem:[#allocation12] ss:$0 sm:$0xff] }
 0x6d3   :  { %v1374_v5 = vadd.f32 %v4930_v2, %v1373_v4 }
 0x6d4   :  { %v1264_v46 = vsel %vm1263_vm4, %v4928_v37, %v1260_v35 }
 0x6d5   :  { %v1269_v53 = vsel %vm1266_vm5, %v1268_v40, %v1264_v46  ;;  %v6110_v6 = vsel %vm1375_vm6, %v4930_v2, %v1374_v5  ;;  %v4874_v40 = vld [vmem:[#allocation13] ss:$0 sm:$0xff] }
 0x6d6   :  { %v1270_v48 = vmul.f32 %v4926_v28, %v1269_v53  ;;  %v1428_v28 = vld [vmem:[%s6718_s9 + $0x18] sm:$0xff] }
 0x6d7   :  { %1451 = vmatpush.msrb.mxu1 %v1428_v28 }
 0x6d8   :  { %4568 = vmatmul.msk.f32.vlgmr.msra.gmra.mxu3 %vm610_vm1, %v1270_v48 }
 0x6d9   :  { %1617 = vmatpush.msra.mxu3 %v6094_v24  ;;  %1452 = vmatpush.msrb.mxu1 %v1427_v29 }
 0x6db   :  { %1618 = vmatpush.msra.mxu3 %v6099_v49  ;;  %1453 = vmatpush.msrb.mxu1 %v1426_v31 }
 0x6dd   :  { %1454 = vmatpush.msrb.mxu1 %v1425_v32 }
 0x700   :  { %v1162_v13 = vpop.f32.mrf.mxu2 }
 0x701   :  { %v1166_v17 = vadd.f32 %v1162_v13, %v978_v14 }
 0x702   :  { %v1346_v59 = vpop.f32.mrf.mxu0 }
 0x703   :  { %v1352_v61 = vadd.f32 %v1346_v59, %v1165_v58  ;;  %v4875_v58 = vld [vmem:[#allocation2] ss:$0 sm:$0xff] }
 0x705   :  { %v1354_v62 = vadd.f32 %v1352_v61, %v5863_v10 }
 0x707   :  { %v1360_v63 = vadd.f32 %v4872_v26, %v1354_v62 }
 0x709   :  { %v1364_v0 = vsel %vm407_vm0, %v1360_v63, 0.0 }
 0x70a   :  { %1365 = vadd.xlane.f32.xlu0 %v1364_v0 }
 0x71e   :  { %1627 = vrot.lane.b32.xlu0 %v6031_v39, %s5535_s2 }
 0x75b   :  { %v1320_v25 = vpop.f32.mrf.mxu3 }
 0x75c   :  { %4570 = vmatmul.msk.f32.gmra.mxu0 %vm610_vm1, %v1320_v25 }
 0x77d   :  { %v1366_v10 = vpop.xlane.xlu0 %1365 }
 0x77e   :  { %v1377_v7 = vmul.f32 %v6110_v6, %v1366_v10 }
 0x780   :  { %v1379_v8 = vsub.f32 %v1360_v63, %v1377_v7 }
 0x782   :  { %v1381_v9 = vmul.f32 %v1379_v8, %v1379_v8 }
 0x784   :  { %v1383_v12 = vsel %vm407_vm0, %v1381_v9, 0.0 }
 0x785   :  { %1384 = vadd.xlane.f32.xlu1 %v1383_v12 }
 0x790   :  { %v1628_v1 = vpop.permute.xlu0 %1627 }
 0x7d9   :  { %v1349_v19 = vpop.f32.mrf.mxu0 }
 0x7da   :  { %v1353_v16 = vadd.f32 %v1349_v19, %v1166_v17 }
 0x7dc   :  { %v1355_v20 = vadd.f32 %v1353_v16, %v5868_v11 }
 0x7de   :  { %v1361_v21 = vadd.f32 %v4872_v26, %v1355_v20 }
 0x7e0   :  { %v1367_v22 = vsel %vm407_vm0, %v1361_v21, 0.0 }
 0x7e1   :  { %1368 = vadd.xlane.f32.xlu2 %v1367_v22 }
 0x7f8   :  { %v1385_v33 = vpop.xlane.xlu1 %1384 }
 0x7f9   :  { %v1389_v3 = vmul.f32 %v1385_v33, %v6110_v6 }
 0x7fb   :  { %v1391_v34 = vadd.f32 1e-05, %v1389_v3 }
 0x7fd   :  { %4931 = vrsqrt.f32 %v1391_v34  ;;  %vm1399_vm8 = vweird.f32 %v1391_v34 }
 0x803   :  { %v4932_v60 = vpop.eup %4931 }
 0x804   :  { %v1394_v37 = vmul.f32 %v4932_v60, %v1391_v34  ;;  %vm1400_vm7 = vweird.f32 %v4932_v60 }
 0x805   :  { %vm1401_vm9 = vmor %vm1399_vm8, %vm1400_vm7 }
 0x806   :  { %v1395_v11 = vmul.f32 %v4932_v60, %v1394_v37 }
 0x808   :  { %v1396_v42 = vmul.f32 0.5, %v1395_v11 }
 0x80a   :  { %v1397_v41 = vsub.f32 1.5, %v1396_v42 }
 0x80c   :  { %v1398_v55 = vmul.f32 %v4932_v60, %v1397_v41 }
 0x80e   :  { %v1402_v57 = vsel %vm1401_vm9, %v4932_v60, %v1398_v55  ;;  %v6161_v60 = vpack.i.bf16 %v6067_v47, %v6062_v45 }
 0x80f   :  { %v1413_v35 = vmul.f32 %v1402_v57, %v1379_v8 }
 0x811   :  { %v1418_v46 = vmul.f32 %v4873_v44, %v1413_v35 }
 0x813   :  { %v6122_v53 = vadd.f32 %v4874_v40, %v1418_v46 }
 0x815   :  { %4571 = vmatmul.msk.f32.vlgmr.msrb.gmra.mxu1 %vm407_vm0, %v6122_v53 }
 0x854   :  { %v1369_v48 = vpop.xlane.xlu2 %1368 }
 0x855   :  { %v1378_v50 = vmul.f32 %v6110_v6, %v1369_v48 }
 0x857   :  { %v1380_v51 = vsub.f32 %v1361_v21, %v1378_v50 }
 0x859   :  { %v1382_v52 = vmul.f32 %v1380_v51, %v1380_v51 }
 0x85b   :  { %v1386_v23 = vsel %vm407_vm0, %v1382_v52, 0.0 }
 0x85c   :  { %1387 = vadd.xlane.f32.xlu2 %v1386_v23 }
 0x874   :  { %1629 = vrot.lane.b32.xlu2 %v6024_v27, %s5535_s2 }
 0x892   :  { %v1456_v59 = vpop.f32.mrf.mxu1 }
 0x893   :  { %v1457_v61 = vadd.f32 %v4875_v58, %v1456_v59 }
 0x895   :  { %v1462_v26 = vadd.f32 %v1457_v61, %v5942_v54 }
 0x897   :  { %v6131_v62 = vmul.f32 0.35355338, %v1462_v26 }
 0x899   :  { %1625 = vrot.lane.b32.xlu1 %v6131_v62, %s5535_s2  ;;  %4575 = vmatmul.msk.f32.vlgmr.msra.gmra.mxu2 %vm610_vm1, %v6131_v62 }
 0x8cf   :  { %v1388_v63 = vpop.xlane.xlu2 %1387 }
 0x8d0   :  { %v1390_v0 = vmul.f32 %v1388_v63, %v6110_v6 }
 0x8d2   :  { %v1392_v25 = vadd.f32 1e-05, %v1390_v0 }
 0x8d4   :  { %4933 = vrsqrt.f32 %v1392_v25  ;;  %vm1409_vm11 = vweird.f32 %v1392_v25 }
 0x8d7   :  { %v1630_v43 = vpop.permute.xlu2 %1629 }
 0x8d8   :  { %4581 = vmatpush.xpose.msk.msra.mxu0 %vm610_vm1, %v1630_v43 }
 0x8da   :  { %v4934_v2 = vpop.eup %4933 }
 0x8db   :  { %v1404_v38 = vmul.f32 %v4934_v2, %v1392_v25  ;;  %vm1410_vm10 = vweird.f32 %v4934_v2 }
 0x8dc   :  { %4582 = vmatpush.xpose.msk.msra.mxu0 %vm610_vm1, %v1628_v1  ;;  %vm1411_vm12 = vmor %vm1409_vm11, %vm1410_vm10 }
 0x8dd   :  { %v1405_v4 = vmul.f32 %v4934_v2, %v1404_v38 }
 0x8df   :  { %v1406_v5 = vmul.f32 0.5, %v1405_v4 }
 0x8e1   :  { %v1407_v10 = vsub.f32 1.5, %v1406_v5 }
 0x8e3   :  { %v1408_v7 = vmul.f32 %v4934_v2, %v1407_v10 }
 0x8e5   :  { %v1412_v8 = vsel %vm1411_vm12, %v4934_v2, %v1408_v7 }
 0x8e6   :  { %v1414_v9 = vmul.f32 %v1412_v8, %v1380_v51 }
 0x8e8   :  { %v1419_v12 = vmul.f32 %v4873_v44, %v1414_v9 }
 0x8ea   :  { %v6140_v13 = vadd.f32 %v4874_v40, %v1419_v12 }
 0x8ec   :  { %4572 = vmatmul.msk.f32.gmra.mxu1 %vm407_vm0, %v6140_v13 }
 0x90b   :  { %v1626_v14 = vpop.permute.xlu1 %1625 }
 0x90c   :  { %4583 = vmatmul.msk.f32.vlgmr.msra.gmra.mxu0 %vm610_vm1, %v1626_v14 }
 0x91c   :  { %v1496_v17 = vpop.f32.mrf.mxu2 }
 0x91d   :  { %v1529_v19 = vsel %vm1528_vm13, %v1496_v17, -inf }
 0x91e   :  { %1530 = vmax.xlane.f32.xlu0 %v1529_v19 }
 0x932   :  { %1659 = vrot.lane.b32.xlu0 %v6085_v30, %s5535_s2 }
 0x93a   :  { %1863 = vrot.lane.b32.xlu0 %v6024_v27, %s5537_s30 }
 0x969   :  { %v1459_v16 = vpop.f32.mrf.mxu1 }
 0x96a   :  { %v1460_v20 = vadd.f32 %v4875_v58, %v1459_v16 }
 0x96c   :  { %v1463_v21 = vadd.f32 %v1460_v20, %v5946_v56 }
 0x96e   :  { %v6151_v22 = vmul.f32 0.35355338, %v1463_v21 }
 0x970   :  { %4578 = vmatmul.msk.f32.vlgmr.msrb.gmra.mxu3 %vm610_vm1, %v6151_v22 }
 0x989   :  { %v1654_v28 = vpop.f32.mrf.mxu0 }
 0x98a   :  { %v1689_v29 = vsel %vm1528_vm13, %v1654_v28, -inf }
 0x98b   :  { %1690 = vmax.xlane.f32.xlu2 %v1689_v29 }
 0x991   :  { %v1531_v31 = vpop.xlane.xlu0 %1530 }
 0x992   :  { %v1535_v32 = vsub.f32 %v1496_v17, %v1531_v31  ;;  %v1464_v17 = vld [vmem:[#allocation4] sm:$0xff] }
 0x994   :  { %v1537_v33 = vmul.f32 1.442695, %v1535_v32 }
 0x996   :  { %4935 = vpow2.f32 %v1537_v33 }
 0x99c   :  { %v4936_v3 = vpop.eup %4935 }
 0x99d   :  { %v1541_v34 = vsel %vm1528_vm13, %v4936_v3, 0.0 }
 0x99e   :  { %1542 = vadd.xlane.f32.xlu1 %v1541_v34 }
 0x9a3   :  { %1661 = vrot.lane.b32.xlu2 %v6079_v18, %s5535_s2 }
 0x9a4   :  { %v1660_v47 = vpop.permute.xlu0 %1659 }
 0x9ab   :  { %4795 = vrot.lane.b32.xlu2 %v6161_v60, %s5535_s2 }
 0x9ac   :  { %v1864_v43 = vpop.permute.xlu0 %1863 }
 0x9b3   :  { %1861 = vrot.lane.b32.xlu2 %v6031_v39, %s5537_s30 }
 0x9b7   :  { %1657 = vrot.lane.b32.xlu1 %v6151_v22, %s5535_s2 }
 0x9f3   :  { %v1525_v37 = vpop.f32.mrf.mxu3 }
 0x9f4   :  { %v1532_v11 = vsel %vm1528_vm13, %v1525_v37, -inf }
 0x9f5   :  { %1533 = vmax.xlane.f32.xlu2 %v1532_v11  ;;  %v6192_v11 = vpack.i.bf16 %v6099_v49, %v6094_v24 }
 0x9fe   :  { %v1691_v42 = vpop.xlane.xlu2 %1690 }
 0x9ff   :  { %v1695_v41 = vsub.f32 %v1654_v28, %v1691_v42 }
 0xa01   :  { %v1697_v55 = vmul.f32 1.442695, %v1695_v41 }
 0xa03   :  { %4937 = vpow2.f32 %v1697_v55 }
 0xa06   :  { %v1662_v44 = vpop.permute.xlu2 %1661 }
 0xa07   :  { %4584 = vmatpush.xpose.msk.msra.mxu1 %vm610_vm1, %v1662_v44 }
 0xa09   :  { %v4938_v45 = vpop.eup %4937 }
 0xa0a   :  { %v1701_v57 = vsel %vm1528_vm13, %v4938_v45, 0.0 }
 0xa0b   :  { %1702 = vadd.xlane.f32.xlu0 %v1701_v57  ;;  %4585 = vmatpush.xpose.msk.msra.mxu1 %vm610_vm1, %v1660_v47  ;;  %v1465_v47 = vld [vmem:[#allocation4 + $0x8] sm:$0xff] }
 0xa0c   :  { %1820 = vmatpush.msrb.mxu0 %v1465_v47 }
 0xa0e   :  { %v4796_v35 = vpop.permute.xlu2 %4795 }
 0xa0f   :  { %v4797_v40 = vunpack.i.l.bf16 %v4796_v35  ;;  %v4798_v46 = vunpack.i.h.bf16 %v4796_v35  ;;  %1849 = vmatpush.msrb.mxu1 %v1464_v17 }
 0xa11   :  { %v1543_v48 = vpop.xlane.xlu1 %1542  ;;  %1762 = vmatpush.msra.mxu2 %v4797_v40 }
 0xa12   :  { %4939 = vrcp.f32 %v1543_v48  ;;  %v1558_v23 = vand.u32 2147483648, %v1543_v48  ;;  %v1556_v59 = vand.u32 2147483647, %v1543_v48  ;;  %vm1552_vm15 = vweird.f32 %v1543_v48 }
 0xa13   :  { %1763 = vmatpush.msra.mxu2 %v4798_v46 }
 0xa14   :  { %v1559_v26 = vor.u32 1.1754944e-38, %v1558_v23  ;;  %vm1557_vm3 = vcmp.eq.f32.partialorder %v1556_v59, 8.507059e+37 }
 0xa16   :  { %v1862_v2 = vpop.permute.xlu2 %1861 }
 0xa18   :  { %v4940_v50 = vpop.eup %4939 }
 0xa19   :  { %v1548_v51 = vmul.f32 %v4940_v50, %v1543_v48  ;;  %vm1553_vm14 = vweird.f32 %v4940_v50 }
 0xa1a   :  { %vm1554_vm2 = vmor %vm1552_vm15, %vm1553_vm14 }
 0xa1b   :  { %v1549_v52 = vsub.f32 1.0, %v1548_v51 }
 0xa1d   :  { %v1550_v58 = vmul.f32 %v4940_v50, %v1549_v52 }
 0xa1f   :  { %v1551_v61 = vadd.f32 %v4940_v50, %v1550_v58  ;;  %1859 = vrot.lane.b32.xlu0 %v6131_v62, %s5537_s30 }
 0xa21   :  { %v1555_v63 = vsel %vm1554_vm2, %v4940_v50, %v1551_v61 }
 0xa22   :  { %v1560_v0 = vsel %vm1557_vm3, %v1559_v26, %v1555_v63 }
 0xa23   :  { %v6175_v25 = vmul.f32 %v4936_v3, %v1560_v0 }
 0xa25   :  { %4579 = vmatmul.msk.f32.vlgmr.msrb.gmra.mxu2 %vm1528_vm13, %v6175_v25 }
 0xa26   :  { %4593 = vmatpush.xpose.msk.msrb.mxu2 %vm610_vm1, %v1864_v43 }
 0xa29   :  { %v1658_v1 = vpop.permute.xlu1 %1657 }
 0xa2a   :  { %4594 = vmatpush.xpose.msk.msrb.mxu2 %vm610_vm1, %v1862_v2  ;;  %4586 = vmatmul.msk.f32.vlgmr.msra.gmra.mxu1 %vm610_vm1, %v1658_v1 }
 0xa68   :  { %v1534_v38 = vpop.xlane.xlu2 %1533 }
 0xa69   :  { %v1536_v4 = vsub.f32 %v1525_v37, %v1534_v38 }
 0xa6b   :  { %v1539_v5 = vmul.f32 1.442695, %v1536_v4 }
 0xa6d   :  { %4941 = vpow2.f32 %v1539_v5 }
 0xa73   :  { %v4942_v10 = vpop.eup %4941 }
 0xa74   :  { %v1544_v7 = vsel %vm1528_vm13, %v4942_v10, 0.0 }
 0xa75   :  { %1545 = vadd.xlane.f32.xlu0 %v1544_v7 }
 0xa7e   :  { %v1703_v8 = vpop.xlane.xlu0 %1702 }
 0xa7f   :  { %4943 = vrcp.f32 %v1703_v8  ;;  %v1718_v19 = vand.u32 2147483648, %v1703_v8  ;;  %v1716_v20 = vand.u32 2147483647, %v1703_v8  ;;  %vm1712_vm5 = vweird.f32 %v1703_v8 }
 0xa81   :  { %v1719_v28 = vor.u32 1.1754944e-38, %v1718_v19  ;;  %vm1717_vm7 = vcmp.eq.f32.partialorder %v1716_v20, 8.507059e+37 }
 0xa85   :  { %v4944_v9 = vpop.eup %4943 }
 0xa86   :  { %v1708_v12 = vmul.f32 %v4944_v9, %v1703_v8  ;;  %vm1713_vm4 = vweird.f32 %v4944_v9 }
 0xa87   :  { %vm1714_vm6 = vmor %vm1712_vm5, %vm1713_vm4 }
 0xa88   :  { %v1709_v14 = vsub.f32 1.0, %v1708_v12 }
 0xa8a   :  { %v1710_v16 = vmul.f32 %v4944_v9, %v1709_v14 }
 0xa8c   :  { %v1711_v21 = vadd.f32 %v4944_v9, %v1710_v16 }
 0xa8e   :  { %v1715_v29 = vsel %vm1714_vm6, %v4944_v9, %v1711_v21 }
 0xa8f   :  { %v1720_v31 = vsel %vm1717_vm7, %v1719_v28, %v1715_v29 }
 0xa90   :  { %v6183_v32 = vmul.f32 %v4938_v45, %v1720_v31 }
 0xa91   :  { %v1860_v33 = vpop.permute.xlu0 %1859 }
 0xa92   :  { %4587 = vmatmul.msk.f32.vlgmr.msra.gmra.mxu2 %vm1528_vm13, %v6183_v32 }
 0xa9a   :  { %4595 = vmatmul.msk.f32.vlgmr.msrb.gmra.mxu2 %vm610_vm1, %v1860_v33 }
 0xaa7   :  { %v1686_v3 = vpop.f32.mrf.mxu1 }
 0xaa8   :  { %v1597_v34 = vpop.f32.mrf.mxu2  ;;  %v1692_v37 = vsel %vm1528_vm13, %v1686_v3, -inf }
 0xaa9   :  { %4591 = vmatmul.msk.f32.vlgmr.msrb.gmra.mxu1 %vm610_vm1, %v1597_v34  ;;  %1693 = vmax.xlane.f32.xlu1 %v1692_v37 }
 0xac2   :  { %4800 = vrot.lane.b32.xlu1 %v6192_v11, %s5535_s2 }
 0xaca   :  { %1891 = vrot.lane.b32.xlu1 %v6151_v22, %s5537_s30 }
 0xad2   :  { %4805 = vrot.lane.b32.xlu1 %v6161_v60, %s5537_s30 }
 0xada   :  { %2098 = vrot.lane.b32.xlu1 %v6079_v18, %s5541_s11 }
 0xae8   :  { %v1546_v42 = vpop.xlane.xlu0 %1545 }
 0xae9   :  { %4945 = vrcp.f32 %v1546_v42  ;;  %v1573_v45 = vand.u32 2147483648, %v1546_v42  ;;  %v1571_v49 = vand.u32 2147483647, %v1546_v42  ;;  %vm1567_vm9 = vweird.f32 %v1546_v42 }
 0xaeb   :  { %v1574_v35 = vor.u32 1.1754944e-38, %v1573_v45  ;;  %vm1572_vm11 = vcmp.eq.f32.partialorder %v1571_v49, 8.507059e+37 }
 0xaef   :  { %v4946_v41 = vpop.eup %4945 }
 0xaf0   :  { %v1563_v55 = vmul.f32 %v4946_v41, %v1546_v42  ;;  %vm1568_vm8 = vweird.f32 %v4946_v41 }
 0xaf1   :  { %vm1569_vm10 = vmor %vm1567_vm9, %vm1568_vm8 }
 0xaf2   :  { %v1564_v44 = vsub.f32 1.0, %v1563_v55 }
 0xaf4   :  { %v1565_v24 = vmul.f32 %v4946_v41, %v1564_v44 }
 0xaf6   :  { %v1566_v57 = vadd.f32 %v4946_v41, %v1565_v24 }
 0xaf8   :  { %v1570_v40 = vsel %vm1569_vm10, %v4946_v41, %v1566_v57 }
 0xaf9   :  { %v1575_v46 = vsel %vm1572_vm11, %v1574_v35, %v1570_v40 }
 0xafa   :  { %v6202_v48 = vmul.f32 %v4942_v10, %v1575_v46 }
 0xafc   :  { %4580 = vmatmul.msk.f32.vlgmr.msra.gmra.mxu3 %vm1528_vm13, %v6202_v48 }
 0xb15   :  { %v1765_v50 = vpop.f32.mrf.mxu2 }
 0xb16   :  { %4589 = vmatmul.msk.f32.vlgmr.msrb.gmra.mxu0 %vm610_vm1, %v1765_v50 }
 0xb1c   :  { %v1694_v51 = vpop.xlane.xlu1 %1693 }
 0xb1d   :  { %v1696_v52 = vsub.f32 %v1686_v3, %v1694_v51  ;;  %v1888_v23 = vpop.f32.mrf.mxu2 }
 0xb1e   :  { %v1923_v58 = vsel %vm1528_vm13, %v1888_v23, -inf }
 0xb1f   :  { %v1699_v59 = vmul.f32 1.442695, %v1696_v52  ;;  %1924 = vmax.xlane.f32.xlu2 %v1923_v58  ;;  %v1857_v52 = vadd.f32 %v6183_v32, %v6175_v25 }
 0xb21   :  { %4947 = vpow2.f32 %v1699_v59 }
 0xb27   :  { %v4948_v61 = vpop.eup %4947 }
 0xb28   :  { %v1704_v26 = vsel %vm1528_vm13, %v4948_v61, 0.0 }
 0xb29   :  { %1705 = vadd.xlane.f32.xlu0 %v1704_v26 }
 0xb34   :  { %v4801_v63 = vpop.permute.xlu1 %4800 }
 0xb35   :  { %v4802_v0 = vunpack.i.l.bf16 %v4801_v63  ;;  %v4803_v43 = vunpack.i.h.bf16 %v4801_v63 }
 0xb37   :  { %1793 = vmatpush.msrb.mxu3 %v4802_v0  ;;  %1895 = vrot.lane.b32.xlu2 %v6079_v18, %s5537_s30 }
 0xb39   :  { %1794 = vmatpush.msrb.mxu3 %v4803_v43 }
 0xb3c   :  { %v1892_v2 = vpop.permute.xlu1 %1891 }
 0xb3d   :  { %1893 = vrot.lane.b32.xlu0 %v6085_v30, %s5537_s30 }
 0xb3f   :  { %2066 = vrot.lane.b32.xlu2 %v6024_v27, %s5541_s11 }
 0xb44   :  { %v4806_v1 = vpop.permute.xlu1 %4805 }
 0xb45   :  { %v4807_v38 = vunpack.i.l.bf16 %v4806_v1  ;;  %2064 = vrot.lane.b32.xlu0 %v6031_v39, %s5541_s11  ;;  %v4808_v4 = vunpack.i.h.bf16 %v4806_v1  ;;  %v1466_v1 = vld [vmem:[#allocation4 + $0x10] sm:$0xff] }
 0xb46   :  { %2050 = vmatpush.msra.mxu0 %v1466_v1 }
 0xb47   :  { %1994 = vmatpush.msra.mxu2 %v4807_v38  ;;  %2062 = vrot.lane.b32.xlu2 %v6131_v62, %s5541_s11 }
 0xb49   :  { %1995 = vmatpush.msra.mxu2 %v4808_v4 }
 0xb4c   :  { %v2099_v5 = vpop.permute.xlu1 %2098 }
 0xb4d   :  { %4606 = vmatpush.xpose.msk.msrb.mxu2 %vm610_vm1, %v2099_v5 }
 0xb4f   :  { %2094 = vrot.lane.b32.xlu2 %v6151_v22, %s5541_s11 }
 0xb7f   :  { %v1620_v10 = vpop.f32.mrf.mxu3 }
 0xb80   :  { %4592 = vmatmul.msk.f32.gmra.mxu1 %vm610_vm1, %v1620_v10 }
 0xb92   :  { %v1925_v7 = vpop.xlane.xlu2 %1924 }
 0xb93   :  { %v1929_v8 = vsub.f32 %v1888_v23, %v1925_v7 }
 0xb95   :  { %v1931_v9 = vmul.f32 1.442695, %v1929_v8 }
 0xb97   :  { %4949 = vpow2.f32 %v1931_v9 }
 0xb9a   :  { %v1896_v12 = vpop.permute.xlu2 %1895 }
 0xb9b   :  { %4596 = vmatpush.xpose.msk.msra.mxu3 %vm610_vm1, %v1896_v12 }
 0xb9c   :  { %v1706_v14 = vpop.xlane.xlu0 %1705 }
 0xb9d   :  { %v4950_v17 = vpop.eup %4949  ;;  %4951 = vrcp.f32 %v1706_v14  ;;  %v1733_v21 = vand.u32 2147483648, %v1706_v14  ;;  %v1731_v29 = vand.u32 2147483647, %v1706_v14  ;;  %vm1727_vm14 = vweird.f32 %v1706_v14 }
 0xb9e   :  { %v1935_v62 = vsel %vm1528_vm13, %v4950_v17, 0.0 }
 0xb9f   :  { %1936 = vadd.xlane.f32.xlu0 %v1935_v62  ;;  %v1734_v33 = vor.u32 1.1754944e-38, %v1733_v21  ;;  %vm1732_vm2 = vcmp.eq.f32.partialorder %v1731_v29, 8.507059e+37 }
 0xba2   :  { %v2067_v19 = vpop.permute.xlu2 %2066 }
 0xba3   :  { %v4952_v16 = vpop.eup %4951  ;;  %4603 = vmatpush.xpose.msk.msra.mxu1 %vm610_vm1, %v2067_v19 }
 0xba4   :  { %v1723_v22 = vmul.f32 %v4952_v16, %v1706_v14  ;;  %vm1728_vm12 = vweird.f32 %v4952_v16 }
 0xba5   :  { %vm1729_vm15 = vmor %vm1727_vm14, %vm1728_vm12 }
 0xba6   :  { %v1724_v20 = vsub.f32 1.0, %v1723_v22 }
 0xba8   :  { %v1725_v28 = vmul.f32 %v4952_v16, %v1724_v20 }
 0xbaa   :  { %v1726_v31 = vadd.f32 %v4952_v16, %v1725_v28  ;;  %v2063_v55 = vpop.permute.xlu2 %2062 }
 0xbac   :  { %v1730_v3 = vsel %vm1729_vm15, %v4952_v16, %v1726_v31 }
 0xbad   :  { %v1735_v34 = vsel %vm1732_vm2, %v1734_v33, %v1730_v3 }
 0xbae   :  { %v6226_v37 = vmul.f32 %v4948_v61, %v1735_v34  ;;  %v6242_v61 = vpop.f32.mrf.mxu1 }
 0xbaf   :  { %v1894_v42 = vpop.permute.xlu0 %1893 }
 0xbb0   :  { %4588 = vmatmul.msk.f32.vlgmr.msrb.gmra.mxu3 %vm1528_vm13, %v6226_v37 }
 0xbb1   :  { %4597 = vmatpush.xpose.msk.msra.mxu3 %vm610_vm1, %v1894_v42 }
 0xbb2   :  { %v2095_v26 = vpop.permute.xlu2 %2094 }
 0xbb3   :  { %2096 = vrot.lane.b32.xlu0 %v6085_v30, %s5541_s11 }
 0xbb7   :  { %v2065_v41 = vpop.permute.xlu0 %2064 }
 0xbb8   :  { %4598 = vmatmul.msk.f32.vlgmr.msra.gmra.mxu3 %vm610_vm1, %v1892_v2  ;;  %4604 = vmatpush.xpose.msk.msra.mxu1 %vm610_vm1, %v2065_v41 }
 0xbbb   :  { %4605 = vmatmul.msk.f32.vlgmr.msra.gmra.mxu1 %vm610_vm1, %v2063_v55 }
 0xbfd   :  { %v6245_v63 = vpop.f32.mrf.mxu1 }
 0xc12   :  { %v1937_v44 = vpop.xlane.xlu0 %1936 }
 0xc13   :  { %4953 = vrcp.f32 %v1937_v44  ;;  %v1952_v47 = vand.u32 2147483648, %v1937_v44  ;;  %v1950_v35 = vand.u32 2147483647, %v1937_v44  ;;  %vm1946_vm4 = vweird.f32 %v1937_v44 }
 0xc15   :  { %v1953_v46 = vor.u32 1.1754944e-38, %v1952_v47  ;;  %vm1951_vm6 = vcmp.eq.f32.partialorder %v1950_v35, 8.507059e+37 }
 0xc19   :  { %v4954_v45 = vpop.eup %4953 }
 0xc1a   :  { %v1942_v24 = vmul.f32 %v4954_v45, %v1937_v44  ;;  %vm1947_vm3 = vweird.f32 %v4954_v45 }
 0xc1b   :  { %vm1948_vm5 = vmor %vm1946_vm4, %vm1947_vm3 }
 0xc1c   :  { %v1943_v49 = vsub.f32 1.0, %v1942_v24 }
 0xc1e   :  { %v1944_v57 = vmul.f32 %v4954_v45, %v1943_v49 }
 0xc20   :  { %v1945_v40 = vadd.f32 %v4954_v45, %v1944_v57 }
 0xc22   :  { %v1949_v50 = vsel %vm1948_vm5, %v4954_v45, %v1945_v40 }
 0xc23   :  { %v1954_v51 = vsel %vm1951_vm6, %v1953_v46, %v1949_v50 }
 0xc24   :  { %v1955_v23 = vmul.f32 %v4950_v17, %v1954_v51 }
 0xc25   :  { %v2097_v58 = vpop.permute.xlu0 %2096 }
 0xc26   :  { %4599 = vmatmul.msk.f32.vlgmr.msra.gmra.mxu2 %vm1528_vm13, %v1955_v23  ;;  %v6239_v59 = vadd.f32 %v1955_v23, %v1857_v52 }
 0xc27   :  { %4607 = vmatpush.xpose.msk.msrb.mxu2 %vm610_vm1, %v2097_v58 }
 0xc2e   :  { %4608 = vmatmul.msk.f32.vlgmr.msrb.gmra.mxu2 %vm610_vm1, %v2095_v26 }
 0xc33   :  { %v1796_v0 = vpop.f32.mrf.mxu3 }
 0xc34   :  { %4590 = vmatmul.msk.f32.gmra.mxu0 %vm610_vm1, %v1796_v0 }
 0xc38   :  { %v2091_v43 = vpop.f32.mrf.mxu1 }
 0xc39   :  { %v2126_v25 = vsel %vm1528_vm13, %v2091_v43, -inf }
 0xc3a   :  { %2127 = vmax.xlane.f32.xlu0 %v2126_v25 }
 0xc3b   :  { %v1920_v32 = vpop.f32.mrf.mxu3 }
 0xc3c   :  { %v1926_v2 = vsel %vm1528_vm13, %v1920_v32, -inf }
 0xc3d   :  { %1927 = vmax.xlane.f32.xlu1 %v1926_v2 }
 0xca9   :  { %v1997_v38 = vpop.f32.mrf.mxu2 }
 0xcaa   :  { %4601 = vmatmul.msk.f32.vlgmr.msra.gmra.mxu0 %vm610_vm1, %v1997_v38 }
 0xcad   :  { %v2128_v4 = vpop.xlane.xlu0 %2127 }
 0xcae   :  { %v2132_v5 = vsub.f32 %v2091_v43, %v2128_v4  ;;  %v1858_v4 = vadd.f32 %v6226_v37, %v6202_v48  ;;  %v1467_v48 = vld [vmem:[#allocation4 + $0x18] sm:$0xff] }
 0xcaf   :  { %2253 = vmatpush.msra.mxu2 %v1467_v48 }
 0xcb0   :  { %v2134_v10 = vmul.f32 1.442695, %v2132_v5  ;;  %v1928_v7 = vpop.xlane.xlu1 %1927 }
 0xcb1   :  { %v1930_v8 = vsub.f32 %v1920_v32, %v1928_v7  ;;  %v2123_v9 = vpop.f32.mrf.mxu2 }
 0xcb2   :  { %4955 = vpow2.f32 %v2134_v10  ;;  %v2129_v12 = vsel %vm1528_vm13, %v2123_v9, -inf }
 0xcb3   :  { %v1933_v14 = vmul.f32 1.442695, %v1930_v8  ;;  %2130 = vmax.xlane.f32.xlu2 %v2129_v12 }
 0xcb5   :  { %4957 = vpow2.f32 %v1933_v14 }
 0xcb8   :  { %v4956_v17 = vpop.eup %4955 }
 0xcb9   :  { %v2138_v62 = vsel %vm1528_vm13, %v4956_v17, 0.0 }
 0xcba   :  { %2139 = vadd.xlane.f32.xlu0 %v2138_v62 }
 0xcbb   :  { %v4958_v19 = vpop.eup %4957 }
 0xcbc   :  { %v1938_v16 = vsel %vm1528_vm13, %v4958_v19, 0.0 }
 0xcbd   :  { %1939 = vadd.xlane.f32.xlu1 %v1938_v16 }
 0xccb   :  { %4810 = vrot.lane.b32.xlu2 %v6192_v11, %s5537_s30 }
 0xcce   :  { %4815 = vrot.lane.b32.xlu0 %v6161_v60, %s5541_s11 }
 0xd26   :  { %v2131_v22 = vpop.xlane.xlu2 %2130 }
 0xd27   :  { %v2133_v20 = vsub.f32 %v2123_v9, %v2131_v22 }
 0xd29   :  { %v2136_v21 = vmul.f32 1.442695, %v2133_v20 }
 0xd2b   :  { %4959 = vpow2.f32 %v2136_v21 }
 0xd2d   :  { %v2140_v28 = vpop.xlane.xlu0 %2139 }
 0xd2e   :  { %4961 = vrcp.f32 %v2140_v28  ;;  %v4811_v29 = vpop.permute.xlu2 %4810  ;;  %v2155_v24 = vand.u32 2147483648, %v2140_v28  ;;  %v2153_v57 = vand.u32 2147483647, %v2140_v28  ;;  %vm2149_vm8 = vweird.f32 %v2140_v28 }
 0xd2f   :  { %v4812_v31 = vunpack.i.l.bf16 %v4811_v29  ;;  %v4813_v34 = vunpack.i.h.bf16 %v4811_v29 }
 0xd30   :  { %v1940_v33 = vpop.xlane.xlu1 %1939  ;;  %v2156_v50 = vor.u32 1.1754944e-38, %v2155_v24  ;;  %vm2154_vm11 = vcmp.eq.f32.partialorder %v2153_v57, 8.507059e+37 }
 0xd31   :  { %v6258_v3 = vpop.eup %4959  ;;  %4963 = vrcp.f32 %v1940_v33  ;;  %2023 = vmatpush.msrb.mxu3 %v4812_v31  ;;  %v1967_v46 = vand.u32 2147483648, %v1940_v33  ;;  %v1965_v52 = vand.u32 2147483647, %v1940_v33  ;;  %vm1961_vm12 = vweird.f32 %v1940_v33 }
 0xd32   :  { %v2141_v42 = vsel %vm1528_vm13, %v6258_v3, 0.0 }
 0xd33   :  { %2142 = vadd.xlane.f32.xlu1 %v2141_v42  ;;  %2024 = vmatpush.msrb.mxu3 %v4813_v34  ;;  %v1968_v0 = vor.u32 1.1754944e-38, %v1967_v46  ;;  %vm1966_vm15 = vcmp.eq.f32.partialorder %v1965_v52, 8.507059e+37 }
 0xd34   :  { %v4962_v41 = vpop.eup %4961 }
 0xd35   :  { %v2145_v55 = vmul.f32 %v4962_v41, %v2140_v28  ;;  %vm2150_vm7 = vweird.f32 %v4962_v41 }
 0xd36   :  { %vm2151_vm9 = vmor %vm2149_vm8, %vm2150_vm7 }
 0xd37   :  { %v4964_v44 = vpop.eup %4963  ;;  %v2146_v45 = vsub.f32 1.0, %v2145_v55  ;;  %v1822_v55 = vpop.f32.mrf.mxu0 }
 0xd38   :  { %v1957_v49 = vmul.f32 %v4964_v44, %v1940_v33  ;;  %vm1962_vm10 = vweird.f32 %v4964_v44  ;;  %v1852_v24 = vadd.f32 %v6242_v61, %v1822_v55 }
 0xd39   :  { %v2147_v47 = vmul.f32 %v4962_v41, %v2146_v45  ;;  %vm1963_vm14 = vmor %vm1961_vm12, %vm1962_vm10  ;;  %vm2384_vm12 = vcmask 523264  }
 0xd3a   :  { %v1958_v35 = vsub.f32 1.0, %v1957_v49 }
 0xd3b   :  { %v2148_v40 = vadd.f32 %v4962_v41, %v2147_v47 }
 0xd3c   :  { %v1959_v51 = vmul.f32 %v4964_v44, %v1958_v35  ;;  %v4876_v35 = vld [vmem:[#allocation6] ss:$0 sm:$0xff] }
 0xd3d   :  { %v2152_v23 = vsel %vm2151_vm9, %v4962_v41, %v2148_v40 }
 0xd3e   :  { %v2157_v58 = vsel %vm2154_vm11, %v2156_v50, %v2152_v23  ;;  %v1960_v26 = vadd.f32 %v4964_v44, %v1959_v51 }
 0xd3f   :  { %v2158_v43 = vmul.f32 %v4956_v17, %v2157_v58 }
 0xd40   :  { %v1964_v25 = vsel %vm1963_vm14, %v4964_v44, %v1960_v26  ;;  %v4816_v32 = vpop.permute.xlu0 %4815 }
 0xd41   :  { %v1969_v2 = vsel %vm1966_vm15, %v1968_v0, %v1964_v25  ;;  %v4817_v1 = vunpack.i.l.bf16 %v4816_v32  ;;  %v2263_v38 = vadd.f32 %v2158_v43, %v6239_v59  ;;  %v4818_v10 = vunpack.i.h.bf16 %v4816_v32 }
 0xd42   :  { %v1970_v5 = vmul.f32 %v4958_v19, %v1969_v2 }
 0xd43   :  { %2197 = vmatpush.msra.mxu3 %v4817_v1  ;;  %v2265_v7 = vmul.f32 0.25, %v2263_v38  ;;  %v2336_v38 = vld [vmem:[#allocation21 + $0x18] sm:$0xff] }
 0xd44   :  { %4600 = vmatmul.msk.f32.vlgmr.msrb.gmra.mxu3 %vm1528_vm13, %v1970_v5  ;;  %v2061_v8 = vadd.f32 %v1970_v5, %v1858_v4  ;;  %v2335_v5 = vld [vmem:[#allocation21 + $0x10] sm:$0xff] }
 0xd45   :  { %2198 = vmatpush.msra.mxu3 %v4818_v10  ;;  %2331 = vst.msk [vmem:[%s5708_s21] sm:$0xff] %vm1528_vm13, %v2265_v7  ;;  %v2333_v7 = vld [vmem:[#allocation21] sm:$0xff] }
 0xd47   :  { %2359 = vmatpush.msrb.mxu3 %v2336_v38 }
 0xd49   :  { %2360 = vmatpush.msrb.mxu3 %v2335_v5 }
 0xd4c   :  { %4820 = vrot.lane.b32.xlu1 %v6192_v11, %s5541_s11  ;;  %4609 = vmatmul.msk.f32.vlgmr.msra.gmra.mxu3 %vm1528_vm13, %v2158_v43 }
 0xda6   :  { %v2143_v9 = vpop.xlane.xlu1 %2142 }
 0xda7   :  { %4965 = vrcp.f32 %v2143_v9  ;;  %v2170_v14 = vand.u32 2147483648, %v2143_v9  ;;  %v2168_v62 = vand.u32 2147483647, %v2143_v9  ;;  %vm2164_vm3 = vweird.f32 %v2143_v9 }
 0xda9   :  { %v2171_v16 = vor.u32 1.1754944e-38, %v2170_v14  ;;  %vm2169_vm5 = vcmp.eq.f32.partialorder %v2168_v62, 8.507059e+37 }
 0xdad   :  { %v4966_v59 = vpop.eup %4965 }
 0xdae   :  { %v2160_v12 = vmul.f32 %v4966_v59, %v2143_v9  ;;  %vm2165_vm2 = vweird.f32 %v4966_v59 }
 0xdaf   :  { %vm2166_vm4 = vmor %vm2164_vm3, %vm2165_vm2 }
 0xdb0   :  { %v2161_v37 = vsub.f32 1.0, %v2160_v12 }
 0xdb2   :  { %v2162_v17 = vmul.f32 %v4966_v59, %v2161_v37 }
 0xdb4   :  { %v2163_v19 = vadd.f32 %v4966_v59, %v2162_v17 }
 0xdb6   :  { %v2167_v22 = vsel %vm2166_vm4, %v4966_v59, %v2163_v19 }
 0xdb7   :  { %v2172_v20 = vsel %vm2169_vm5, %v2171_v16, %v2167_v22  ;;  %v4877_v22 = vld [vmem:[#allocation15] ss:$0 sm:$0xff] }
 0xdb8   :  { %v2173_v21 = vmul.f32 %v6258_v3, %v2172_v20  ;;  %v1825_v3 = vpop.f32.mrf.mxu0 }
 0xdb9   :  { %v1855_v52 = vadd.f32 %v6245_v63, %v1825_v3 }
 0xdba   :  { %v2264_v28 = vadd.f32 %v2173_v21, %v2061_v8 }
 0xdbc   :  { %v2266_v29 = vmul.f32 0.25, %v2264_v28  ;;  %v4878_v28 = vld [vmem:[#allocation16] ss:$0 sm:$0xff] }
 0xdbe   :  { %v4821_v31 = vpop.permute.xlu1 %4820  ;;  %2332 = vst.msk [vmem:[%s5708_s21 + $0x8] sm:$0xff] %vm1528_vm13, %v2266_v29 }
 0xdbf   :  { %v4822_v33 = vunpack.i.l.bf16 %v4821_v31  ;;  %v4823_v34 = vunpack.i.h.bf16 %v4821_v31 }
 0xdc0   :  { %v2052_v45 = vpop.f32.mrf.mxu0 }
 0xdc1   :  { %2226 = vmatpush.msrb.mxu1 %v4822_v33  ;;  %v2058_v49 = vadd.f32 %v2052_v45, %v1852_v24  ;;  %v2379_v33 = vld [vmem:[%s6719_s4 + $0x38] sm:$0xff] }
 0xdc2   :  { %2399 = vmatpush.msrb.mxu0 %v2379_v33  ;;  %v2375_v45 = vld [vmem:[%s6719_s4 + $0x18] sm:$0xff] }
 0xdc3   :  { %2227 = vmatpush.msrb.mxu1 %v4823_v34  ;;  %v2378_v34 = vld [vmem:[%s6719_s4 + $0x30] sm:$0xff] }
 0xdc4   :  { %4610 = vmatmul.msk.f32.vlgmr.msrb.gmra.mxu1 %vm1528_vm13, %v2173_v21  ;;  %2400 = vmatpush.msrb.mxu0 %v2378_v34 }
 0xdc7   :  { %v2026_v42 = vpop.f32.mrf.mxu3 }
 0xdc8   :  { %4602 = vmatmul.msk.f32.gmra.mxu0 %vm610_vm1, %v2026_v42  ;;  %v2377_v42 = vld [vmem:[%s6719_s4 + $0x28] sm:$0xff] }
 0xdc9   :  { %2401 = vmatpush.msrb.mxu0 %v2377_v42 }
 0xdcf   :  { %v2200_v41 = vpop.f32.mrf.mxu3 }
 0xdd0   :  { %4611 = vmatmul.msk.f32.vlgmr.msra.gmra.mxu2 %vm610_vm1, %v2200_v41 }
 0xe41   :  { %v2229_v44 = vpop.f32.mrf.mxu1 }
 0xe42   :  { %4612 = vmatmul.msk.f32.gmra.mxu2 %vm610_vm1, %v2229_v44  ;;  %v2376_v44 = vld [vmem:[%s6719_s4 + $0x20] sm:$0xff] }
 0xe43   :  { %2402 = vmatpush.msrb.mxu0 %v2376_v44  ;;  %v4881_v44 = vld [vmem:[#allocation18] ss:$0 sm:$0xff] }
 0xe45   :  { %v2055_v51 = vpop.f32.mrf.mxu0  ;;  %2403 = vmatpush.msrb.mxu0 %v2375_v45 }
 0xe46   :  { %v2059_v23 = vadd.f32 %v2055_v51, %v1855_v52 }
 0xe53   :  { %v2255_v47 = vpop.f32.mrf.mxu2 }
 0xe54   :  { %v2261_v57 = vadd.f32 %v2255_v47, %v2058_v49 }
 0xe56   :  { %v2267_v40 = vadd.f32 %v2261_v57, %v6122_v53  ;;  %v2374_v57 = vld [vmem:[%s6719_s4 + $0x10] sm:$0xff] }
 0xe57   :  { %2404 = vmatpush.msrb.mxu0 %v2374_v57 }
 0xe58   :  { %v2273_v46 = vadd.f32 %v4876_v35, %v2267_v40  ;;  %v2373_v40 = vld [vmem:[%s6719_s4 + $0x8] sm:$0xff] }
 0xe59   :  { %2405 = vmatpush.msrb.mxu0 %v2373_v40 }
 0xe5a   :  { %v2277_v50 = vsel %vm407_vm0, %v2273_v46, 0.0 }
 0xe5b   :  { %2278 = vadd.xlane.f32.xlu2 %v2277_v50 }
 0xec5   :  { %v2258_v58 = vpop.f32.mrf.mxu2 }
 0xec6   :  { %v2262_v26 = vadd.f32 %v2258_v58, %v2059_v23 }
 0xec8   :  { %v2268_v0 = vadd.f32 %v2262_v26, %v6140_v13  ;;  %v2334_v13 = vld [vmem:[#allocation21 + $0x8] sm:$0xff] }
 0xec9   :  { %2361 = vmatpush.msrb.mxu3 %v2334_v13 }
 0xeca   :  { %v2274_v43 = vadd.f32 %v4876_v35, %v2268_v0  ;;  %v4879_v0 = vld [vmem:[#allocation22] ss:$0 sm:$0xff] }
 0xecb   :  { %2362 = vmatpush.msrb.mxu3 %v2333_v7 }
 0xecc   :  { %v2280_v61 = vsel %vm407_vm0, %v2274_v43, 0.0 }
 0xecd   :  { %2281 = vadd.xlane.f32.xlu0 %v2280_v61 }
 0xece   :  { %v2279_v25 = vpop.xlane.xlu2 %2278 }
 0xecf   :  { %v2283_v32 = vmul.f32 %v2279_v25, %v6110_v6 }
 0xed1   :  { %v2285_v53 = vsub.f32 %v2273_v46, %v2283_v32  ;;  %v2372_v46 = vld [vmem:[%s6719_s4] sm:$0xff] }
 0xed2   :  { %2406 = vmatpush.msrb.mxu0 %v2372_v46 }
 0xed3   :  { %v2287_v2 = vmul.f32 %v2285_v53, %v2285_v53 }
 0xed5   :  { %v2289_v1 = vsel %vm407_vm0, %v2287_v2, 0.0 }
 0xed6   :  { %2290 = vadd.xlane.f32.xlu1 %v2289_v1  ;;  %v4880_v1 = vld [vmem:[#allocation24] ss:$0 sm:$0xff] }
 0xf40   :  { %v2282_v4 = vpop.xlane.xlu0 %2281 }
 0xf41   :  { %v2284_v63 = vmul.f32 %v2282_v4, %v6110_v6 }
 0xf43   :  { %v2286_v10 = vsub.f32 %v2274_v43, %v2284_v63 }
 0xf45   :  { %v2288_v8 = vmul.f32 %v2286_v10, %v2286_v10 }
 0xf47   :  { %v2292_v9 = vsel %vm407_vm0, %v2288_v8, 0.0 }
 0xf48   :  { %2293 = vadd.xlane.f32.xlu2 %v2292_v9 }
 0xf49   :  { %v2291_v59 = vpop.xlane.xlu1 %2290 }
 0xf4a   :  { %v2295_v12 = vmul.f32 %v2291_v59, %v6110_v6 }
 0xf4c   :  { %v2297_v48 = vadd.f32 1e-05, %v2295_v12 }
 0xf4e   :  { %4967 = vrsqrt.f32 %v2297_v48  ;;  %vm2305_vm7 = vweird.f32 %v2297_v48 }
 0xf54   :  { %v4968_v37 = vpop.eup %4967 }
 0xf55   :  { %v2300_v14 = vmul.f32 %v4968_v37, %v2297_v48  ;;  %vm2306_vm6 = vweird.f32 %v4968_v37 }
 0xf56   :  { %vm2307_vm8 = vmor %vm2305_vm7, %vm2306_vm6 }
 0xf57   :  { %v2301_v17 = vmul.f32 %v4968_v37, %v2300_v14  ;;  %v4620_v14 = vld [vmem:[%s6709_s23 + $0x38] sm:$0xff] }
 0xf58   :  { %2500 = vmatpush.msra.mxu1 %v4620_v14 }
 0xf59   :  { %v2302_v62 = vmul.f32 0.5, %v2301_v17 }
 0xf5b   :  { %v2303_v19 = vsub.f32 1.5, %v2302_v62 }
 0xf5d   :  { %v2304_v16 = vmul.f32 %v4968_v37, %v2303_v19  ;;  %v4619_v19 = vld [vmem:[%s6709_s23 + $0x30] sm:$0xff] }
 0xf5e   :  { %2501 = vmatpush.msra.mxu1 %v4619_v19 }
 0xf5f   :  { %v2308_v20 = vsel %vm2307_vm8, %v4968_v37, %v2304_v16  ;;  %v4618_v16 = vld [vmem:[%s6709_s23 + $0x28] sm:$0xff] }
 0xf60   :  { %v2319_v21 = vmul.f32 %v2308_v20, %v2285_v53  ;;  %v4617_v20 = vld [vmem:[%s6709_s23 + $0x20] sm:$0xff]  ;;  %2502 = vmatpush.msra.mxu1 %v4618_v16 }
 0xf62   :  { %v2324_v29 = vmul.f32 %v4877_v22, %v2319_v21  ;;  %2503 = vmatpush.msra.mxu1 %v4617_v20 }
 0xf64   :  { %v2329_v31 = vadd.f32 %v4878_v28, %v2324_v29 }
 0xf66   :  { %4613 = vmatmul.msk.f32.vlgmr.msrb.gmra.mxu3 %vm407_vm0, %v2329_v31 }
 0xfbb   :  { %v2294_v41 = vpop.xlane.xlu2 %2293 }
 0xfbc   :  { %v2296_v55 = vmul.f32 %v2294_v41, %v6110_v6 }
 0xfbe   :  { %v2298_v3 = vadd.f32 1e-05, %v2296_v55 }
 0xfc0   :  { %4969 = vrsqrt.f32 %v2298_v3  ;;  %vm2315_vm10 = vweird.f32 %v2298_v3 }
 0xfc6   :  { %v4970_v24 = vpop.eup %4969 }
 0xfc7   :  { %v2310_v49 = vmul.f32 %v4970_v24, %v2298_v3  ;;  %vm2316_vm9 = vweird.f32 %v4970_v24 }
 0xfc8   :  { %vm2317_vm11 = vmor %vm2315_vm10, %vm2316_vm9 }
 0xfc9   :  { %v2311_v47 = vmul.f32 %v4970_v24, %v2310_v49 }
 0xfcb   :  { %v2312_v35 = vmul.f32 0.5, %v2311_v47 }
 0xfcd   :  { %v2313_v50 = vsub.f32 1.5, %v2312_v35 }
 0xfcf   :  { %v2314_v51 = vmul.f32 %v4970_v24, %v2313_v50 }
 0xfd1   :  { %v2318_v52 = vsel %vm2317_vm11, %v4970_v24, %v2314_v51  ;;  %v4882_v24 = vld [vmem:[#allocation19] ss:$0 sm:$0xff] }
 0xfd2   :  { %v2320_v23 = vmul.f32 %v2318_v52, %v2286_v10 }
 0xfd4   :  { %v2325_v58 = vmul.f32 %v4877_v22, %v2320_v23 }
 0xfd6   :  { %v2330_v26 = vadd.f32 %v4878_v28, %v2325_v58 }
 0xfd8   :  { %4614 = vmatmul.msk.f32.gmra.mxu3 %vm407_vm0, %v2330_v26 }
 0xfe9   :  { %v2364_v43 = vpop.f32.mrf.mxu3 }
 0xfea   :  { %v2365_v61 = vadd.f32 %v4879_v0, %v2364_v43 }
 0xfec   :  { %v2370_v25 = vmax.f32 %v2365_v61, 0.0 }
 0xfee   :  { %4615 = vmatmul.msk.f32.vlgmr.msrb.gmra.mxu0 %vm2384_vm12, %v2370_v25  ;;  %v4883_v25 = vld [vmem:[%s6714_s3 + $0x1] ss:$0 sm:$0xff] }
0x105b   :  { %v2367_v32 = vpop.f32.mrf.mxu3 }
0x105c   :  { %v2368_v53 = vadd.f32 %v4879_v0, %v2367_v32 }
0x105e   :  { %v2371_v2 = vmax.f32 %v2368_v53, 0.0 }
0x1060   :  { %4616 = vmatmul.msk.f32.gmra.mxu0 %vm2384_vm12, %v2371_v2 }
0x106b   :  { %v2408_v38 = vpop.f32.mrf.mxu0 }
0x106c   :  { %v2409_v4 = vadd.f32 %v4880_v1, %v2408_v38 }
0x106e   :  { %v2414_v63 = vadd.f32 %v2409_v4, %v2329_v31 }
0x1070   :  { %v2418_v5 = vsel %vm407_vm0, %v2414_v63, 0.0 }
0x1071   :  { %2419 = vadd.xlane.f32.xlu0 %v2418_v5 }
0x10dd   :  { %v2411_v13 = vpop.f32.mrf.mxu0 }
0x10de   :  { %v2412_v10 = vadd.f32 %v4880_v1, %v2411_v13 }
0x10e0   :  { %v2415_v7 = vadd.f32 %v2412_v10, %v2330_v26 }
0x10e2   :  { %v2421_v8 = vsel %vm407_vm0, %v2415_v7, 0.0 }
0x10e3   :  { %2422 = vadd.xlane.f32.xlu2 %v2421_v8 }
0x10e4   :  { %v2420_v9 = vpop.xlane.xlu0 %2419 }
0x10e5   :  { %v2424_v59 = vmul.f32 %v2420_v9, %v6110_v6 }
0x10e7   :  { %v2426_v12 = vsub.f32 %v2414_v63, %v2424_v59 }
0x10e9   :  { %v2428_v48 = vmul.f32 %v2426_v12, %v2426_v12 }
0x10eb   :  { %v2430_v37 = vsel %vm407_vm0, %v2428_v48, 0.0 }
0x10ec   :  { %2431 = vadd.xlane.f32.xlu0 %v2430_v37 }
0x10fb   :  { %2513 = vrot.lane.b32.xlu2 %v5872_v15, %s5536_s12 }
0x1100   :  { %2515 = vrot.lane.b32.xlu0 %v5898_v36, %s5536_s12 }
0x1156   :  { %v2423_v17 = vpop.xlane.xlu2 %2422 }
0x1157   :  { %v2425_v62 = vmul.f32 %v2423_v17, %v6110_v6 }
0x1159   :  { %v2427_v22 = vsub.f32 %v2415_v7, %v2425_v62 }
0x115b   :  { %v2429_v21 = vmul.f32 %v2427_v22, %v2427_v22 }
0x115d   :  { %v2433_v28 = vsel %vm407_vm0, %v2429_v21, 0.0 }
0x115e   :  { %2434 = vadd.xlane.f32.xlu1 %v2433_v28  ;;  %v2514_v2 = vpop.permute.xlu2 %2513 }
0x115f   :  { %v2432_v15 = vpop.xlane.xlu0 %2431 }
0x1160   :  { %v2436_v29 = vmul.f32 %v2432_v15, %v6110_v6 }
0x1162   :  { %v2438_v36 = vadd.f32 1e-05, %v2436_v29 }
0x1164   :  { %4971 = vrsqrt.f32 %v2438_v36  ;;  %vm2446_vm15 = vweird.f32 %v2438_v36 }
0x116a   :  { %v4972_v31 = vpop.eup %4971 }
0x116b   :  { %v2441_v33 = vmul.f32 %v4972_v31, %v2438_v36  ;;  %vm2447_vm14 = vweird.f32 %v4972_v31 }
0x116c   :  { %vm2448_vm2 = vmor %vm2446_vm15, %vm2447_vm14 }
0x116d   :  { %v2442_v34 = vmul.f32 %v4972_v31, %v2441_v33 }
0x116f   :  { %v2443_v42 = vmul.f32 0.5, %v2442_v34 }
0x1171   :  { %v2444_v41 = vsub.f32 1.5, %v2443_v42 }
0x1172   :  { %v2516_v38 = vpop.permute.xlu0 %2515 }
0x1173   :  { %v2445_v55 = vmul.f32 %v4972_v31, %v2444_v41 }
0x1175   :  { %v2449_v3 = vsel %vm2448_vm2, %v4972_v31, %v2445_v55 }
0x1176   :  { %v2460_v45 = vmul.f32 %v2449_v3, %v2426_v12 }
0x1178   :  { %v2465_v49 = vmul.f32 %v4881_v44, %v2460_v45 }
0x117a   :  { %v6317_v47 = vadd.f32 %v4882_v24, %v2465_v49 }
0x117c   :  { %4622 = vmatmul.msk.f32.vlgmr.msra.gmra.mxu1 %vm407_vm0, %v6317_v47 }
0x11d1   :  { %v2435_v57 = vpop.xlane.xlu1 %2434 }
0x11d2   :  { %v2437_v35 = vmul.f32 %v2435_v57, %v6110_v6 }
0x11d4   :  { %v2439_v40 = vadd.f32 1e-05, %v2437_v35 }
0x11d6   :  { %4973 = vrsqrt.f32 %v2439_v40  ;;  %vm2456_vm4 = vweird.f32 %v2439_v40 }
0x11dc   :  { %v4974_v46 = vpop.eup %4973 }
0x11dd   :  { %v2451_v50 = vmul.f32 %v4974_v46, %v2439_v40  ;;  %vm2457_vm3 = vweird.f32 %v4974_v46 }
0x11de   :  { %vm2458_vm5 = vmor %vm2456_vm4, %vm2457_vm3 }
0x11df   :  { %v2452_v51 = vmul.f32 %v4974_v46, %v2451_v50 }
0x11e1   :  { %v2453_v52 = vmul.f32 0.5, %v2452_v51 }
0x11e3   :  { %v2454_v23 = vsub.f32 1.5, %v2453_v52 }
0x11e5   :  { %v2455_v58 = vmul.f32 %v4974_v46, %v2454_v23 }
0x11e7   :  { %v2459_v26 = vsel %vm2458_vm5, %v4974_v46, %v2455_v58 }
0x11e8   :  { %v2461_v0 = vmul.f32 %v2459_v26, %v2427_v22 }
0x11ea   :  { %v2466_v43 = vmul.f32 %v4881_v44, %v2461_v0 }
0x11ec   :  { %v6322_v61 = vadd.f32 %v4882_v24, %v2466_v43 }
0x11ee   :  { %4623 = vmatmul.msk.f32.gmra.mxu1 %vm407_vm0, %v6322_v61 }
0x11f9   :  { %v2505_v32 = vpop.f32.mrf.mxu1 }
0x11fa   :  { %v6327_v53 = vadd.f32 %v4883_v25, %v2505_v32 }
0x11fc   :  { %v6330_v1 = vadd.f32 %v2514_v2, %v6327_v53 }
0x11fe   :  { %2688 = vrot.lane.b32.xlu0 %v6330_v1, %s5533_s20  ;;  %2529 = vrot.lane.b32.xlu1 %v6330_v1, %s5534_s22  ;;  %v6353_v8 = vmul.f32 0.35355338, %v6330_v1 }
0x126b   :  { %v2508_v4 = vpop.f32.mrf.mxu1 }
0x126c   :  { %v6336_v63 = vadd.f32 %v4883_v25, %v2508_v4 }
0x126e   :  { %v6339_v5 = vadd.f32 %v2516_v38, %v6336_v63  ;;  %v4824_v28 = vpack.i.bf16 %v6336_v63, %v6327_v53 }
0x1270   :  { %v2530_v13 = vpop.permute.xlu1 %2529  ;;  %2716 = vrot.lane.b32.xlu0 %v6339_v5, %s5533_s20  ;;  %2557 = vrot.lane.b32.xlu2 %v6339_v5, %s5534_s22  ;;  %v2689_v10 = vpop.permute.xlu0 %2688  ;;  %v6346_v7 = vmul.f32 0.35355338, %v6339_v5 }
0x1271   :  { %4628 = vmatpush.xpose.msk.msrb.mxu2 %vm610_vm1, %v2530_v13 }
0x1272   :  { %2714 = vrot.lane.b32.xlu1 %v6346_v7, %s5535_s2 }
0x1274   :  { %4629 = vmatmul.msk.f32.vlgmr.msrb.gmra.mxu2 %vm610_vm1, %v6353_v8 }
0x1275   :  { %4634 = vmatpush.xpose.msk.msra.mxu2 %vm610_vm1, %v2689_v10 }
0x1278   :  { %2686 = vrot.lane.b32.xlu2 %v6353_v8, %s5535_s2 }
0x12ca   :  { %v2558_v9 = vpop.permute.xlu2 %2557 }
0x12cb   :  { %4630 = vmatpush.xpose.msk.msra.mxu3 %vm610_vm1, %v2558_v9 }
0x12ce   :  { %4631 = vmatmul.msk.f32.vlgmr.msra.gmra.mxu3 %vm610_vm1, %v6346_v7 }
0x12d2   :  { %v2687_v59 = vpop.permute.xlu2 %2686 }
0x12d3   :  { %4635 = vmatmul.msk.f32.vlgmr.msra.gmra.mxu2 %vm610_vm1, %v2687_v59 }
0x12e2   :  { %v2717_v12 = vpop.permute.xlu0 %2716 }
0x12e3   :  { %4636 = vmatpush.xpose.msk.msrb.mxu3 %vm610_vm1, %v2717_v12 }
0x12e4   :  { %v2715_v48 = vpop.permute.xlu1 %2714 }
0x12e6   :  { %4637 = vmatmul.msk.f32.vlgmr.msrb.gmra.mxu3 %vm610_vm1, %v2715_v48 }
0x12f7   :  { %v2553_v37 = vpop.f32.mrf.mxu2 }
0x12f8   :  { %v2584_v14 = vsel %vm610_vm1, %v2553_v37, -inf }
0x12f9   :  { %2585 = vmax.xlane.f32.xlu2 %v2584_v14 }
0x1351   :  { %v2581_v17 = vpop.f32.mrf.mxu3 }
0x1352   :  { %v2587_v62 = vsel %vm610_vm1, %v2581_v17, -inf }
0x1353   :  { %2588 = vmax.xlane.f32.xlu0 %v2587_v62 }
0x1356   :  { %v2711_v19 = vpop.f32.mrf.mxu2 }
0x1357   :  { %v2742_v16 = vsel %vm610_vm1, %v2711_v19, -inf }
0x1358   :  { %2743 = vmax.xlane.f32.xlu1 %v2742_v16 }
0x1369   :  { %v2739_v32 = vpop.f32.mrf.mxu3 }
0x136a   :  { %v2745_v2 = vsel %vm610_vm1, %v2739_v32, -inf }
0x136c   :  { %v2586_v22 = vpop.xlane.xlu2 %2585 }
0x136d   :  { %v2590_v20 = vsub.f32 %v2553_v37, %v2586_v22 }
0x136f   :  { %v2592_v21 = vmul.f32 1.442695, %v2590_v20 }
0x1371   :  { %4975 = vpow2.f32 %v2592_v21  ;;  %4825 = vrot.lane.b32.xlu1 %v4824_v28, %s5536_s12 }
0x1377   :  { %v4976_v15 = vpop.eup %4975 }
0x1378   :  { %v2596_v29 = vsel %vm610_vm1, %v4976_v15, 0.0 }
0x1379   :  { %2597 = vadd.xlane.f32.xlu2 %v2596_v29  ;;  %2900 = vrot.lane.b32.xlu1 %v6353_v8, %s5537_s30 }
0x13c6   :  { %v2589_v36 = vpop.xlane.xlu0 %2588 }
0x13c7   :  { %v2591_v31 = vsub.f32 %v2581_v17, %v2589_v36 }
0x13c9   :  { %v2594_v33 = vmul.f32 1.442695, %v2591_v31 }
0x13cb   :  { %4977 = vpow2.f32 %v2594_v33  ;;  %v2744_v34 = vpop.xlane.xlu1 %2743 }
0x13cc   :  { %v2748_v42 = vsub.f32 %v2711_v19, %v2744_v34 }
0x13ce   :  { %v2750_v41 = vmul.f32 1.442695, %v2748_v42 }
0x13d0   :  { %4979 = vpow2.f32 %v2750_v41 }
0x13d1   :  { %v6374_v55 = vpop.eup %4977 }
0x13d2   :  { %v2599_v44 = vsel %vm610_vm1, %v6374_v55, 0.0 }
0x13d3   :  { %2600 = vadd.xlane.f32.xlu0 %v2599_v44 }
0x13d6   :  { %v6378_v3 = vpop.eup %4979 }
0x13d7   :  { %v2754_v45 = vsel %vm610_vm1, %v6378_v3, 0.0 }
0x13d8   :  { %2755 = vadd.xlane.f32.xlu2 %v2754_v45 }
0x13e3   :  { %v4826_v24 = vpop.permute.xlu1 %4825 }
0x13e4   :  { %v4828_v49 = vunpack.i.h.bf16 %v4826_v24  ;;  %v4827_v57 = vunpack.i.l.bf16 %v4826_v24 }
0x13e6   :  { %2654 = vmatpush.msra.mxu0 %v4827_v57  ;;  %2681 = vmatpush.msrb.mxu1 %v4828_v49 }
0x13e7   :  { %2790 = vrot.lane.b32.xlu0 %v6327_v53, %s5538_s28 }
0x13eb   :  { %v2901_v41 = vpop.permute.xlu1 %2900 }
0x13ec   :  { %v2598_v35 = vpop.xlane.xlu2 %2597 }
0x13ed   :  { %4981 = vrcp.f32 %v2598_v35  ;;  %v2613_v51 = vand.u32 2147483648, %v2598_v35  ;;  %v2611_v23 = vand.u32 2147483647, %v2598_v35  ;;  %vm2607_vm7 = vweird.f32 %v2598_v35 }
0x13ef   :  { %v2614_v26 = vor.u32 1.1754944e-38, %v2613_v51  ;;  %vm2612_vm9 = vcmp.eq.f32.partialorder %v2611_v23, 8.507059e+37 }
0x13f0   :  { %2902 = vrot.lane.b32.xlu2 %v6330_v1, %s5539_s17 }
0x13f3   :  { %v4982_v40 = vpop.eup %4981 }
0x13f4   :  { %v2603_v46 = vmul.f32 %v4982_v40, %v2598_v35  ;;  %vm2608_vm6 = vweird.f32 %v4982_v40  ;;  %v4625_v35 = vld [vmem:[%s6715_s25 + $0x28] sm:$0xff] }
0x13f5   :  { %vm2609_vm8 = vmor %vm2607_vm7, %vm2608_vm6  ;;  %2863 = vmatpush.msrb.mxu2 %v4625_v35 }
0x13f6   :  { %v2604_v50 = vsub.f32 1.0, %v2603_v46 }
0x13f8   :  { %v2605_v52 = vmul.f32 %v4982_v40, %v2604_v50  ;;  %2816 = vrot.lane.b32.xlu2 %v6336_v63, %s5538_s28 }
0x13fa   :  { %v2606_v58 = vadd.f32 %v4982_v40, %v2605_v52 }
0x13fc   :  { %v2610_v0 = vsel %vm2609_vm8, %v4982_v40, %v2606_v58 }
0x13fd   :  { %v2615_v43 = vsel %vm2612_vm9, %v2614_v26, %v2610_v0 }
0x13fe   :  { %v2616_v25 = vmul.f32 %v4976_v15, %v2615_v43 }
0x1400   :  { %2930 = vrot.lane.b32.xlu2 %v6339_v5, %s5539_s17  ;;  %4632 = vmatmul.msk.f32.vlgmr.msra.gmra.mxu0 %vm610_vm1, %v2616_v25 }
0x1408   :  { %3089 = vrot.lane.b32.xlu2 %v6330_v1, %s5540_s0  ;;  %v4624_v1 = vld [vmem:[%s6715_s25 + $0x20] sm:$0xff] }
0x1409   :  { %2892 = vmatpush.msra.mxu3 %v4624_v1 }
0x1410   :  { %2928 = vrot.lane.b32.xlu2 %v6346_v7, %s5537_s30 }
0x1411   :  { %2746 = vmax.xlane.f32.xlu0 %v2745_v2 }
0x1425   :  { %3087 = vrot.lane.b32.xlu0 %v6353_v8, %s5541_s11 }
0x142d   :  { %3117 = vrot.lane.b32.xlu0 %v6339_v5, %s5540_s0 }
0x1435   :  { %3115 = vrot.lane.b32.xlu0 %v6346_v7, %s5541_s11 }
0x1446   :  { %v2601_v38 = vpop.xlane.xlu0 %2600 }
0x1447   :  { %4983 = vrcp.f32 %v2601_v38  ;;  %v2628_v59 = vand.u32 2147483648, %v2601_v38  ;;  %v2626_v8 = vand.u32 2147483647, %v2601_v38  ;;  %vm2622_vm11 = vweird.f32 %v2601_v38 }
0x1449   :  { %v2629_v7 = vor.u32 1.1754944e-38, %v2628_v59  ;;  %vm2627_vm15 = vcmp.eq.f32.partialorder %v2626_v8, 8.507059e+37 }
0x144b   :  { %v2756_v4 = vpop.xlane.xlu2 %2755 }
0x144c   :  { %4985 = vrcp.f32 %v2756_v4  ;;  %v2771_v19 = vand.u32 2147483648, %v2756_v4  ;;  %v2769_v20 = vand.u32 2147483647, %v2756_v4  ;;  %vm2765_vm3 = vweird.f32 %v2756_v4 }
0x144d   :  { %v4984_v13 = vpop.eup %4983 }
0x144e   :  { %v2618_v10 = vmul.f32 %v4984_v13, %v2601_v38  ;;  %vm2623_vm10 = vweird.f32 %v4984_v13  ;;  %v2772_v29 = vor.u32 1.1754944e-38, %v2771_v19  ;;  %vm2770_vm5 = vcmp.eq.f32.partialorder %v2769_v20, 8.507059e+37 }
0x144f   :  { %vm2624_vm14 = vmor %vm2622_vm11, %vm2623_vm10 }
0x1450   :  { %v2619_v9 = vsub.f32 1.0, %v2618_v10 }
0x1452   :  { %v4986_v12 = vpop.eup %4985  ;;  %v2620_v48 = vmul.f32 %v4984_v13, %v2619_v9 }
0x1453   :  { %v2761_v37 = vmul.f32 %v4986_v12, %v2756_v4  ;;  %v2903_v14 = vpop.permute.xlu2 %2902  ;;  %vm2766_vm2 = vweird.f32 %v4986_v12 }
0x1454   :  { %v2621_v5 = vadd.f32 %v4984_v13, %v2620_v48  ;;  %vm2767_vm4 = vmor %vm2765_vm3, %vm2766_vm2 }
0x1455   :  { %v2762_v17 = vsub.f32 1.0, %v2761_v37 }
0x1456   :  { %v2625_v62 = vsel %vm2624_vm14, %v4984_v13, %v2621_v5 }
0x1457   :  { %v2630_v16 = vsel %vm2627_vm15, %v2629_v7, %v2625_v62  ;;  %v2763_v22 = vmul.f32 %v4986_v12, %v2762_v17 }
0x1458   :  { %v2631_v21 = vmul.f32 %v6374_v55, %v2630_v16 }
0x1459   :  { %v2764_v28 = vadd.f32 %v4986_v12, %v2763_v22  ;;  %v2791_v15 = vpop.permute.xlu0 %2790 }
0x145a   :  { %4633 = vmatmul.msk.f32.vlgmr.msrb.gmra.mxu1 %vm610_vm1, %v2631_v21  ;;  %2811 = vmatpush.msrb.mxu0 %v2791_v15 }
0x145b   :  { %v2768_v36 = vsel %vm2767_vm4, %v4986_v12, %v2764_v28  ;;  %v2817_v31 = vpop.permute.xlu2 %2816 }
0x145c   :  { %4644 = vmatpush.xpose.msk.msra.mxu0 %vm610_vm1, %v2903_v14  ;;  %v2773_v33 = vsel %vm2770_vm5, %v2772_v29, %v2768_v36  ;;  %2837 = vmatpush.msra.mxu1 %v2817_v31 }
0x145d   :  { %v2774_v34 = vmul.f32 %v6378_v3, %v2773_v33 }
0x145f   :  { %4638 = vmatmul.msk.f32.vlgmr.msrb.gmra.mxu0 %vm610_vm1, %v2774_v34 }
0x1463   :  { %v2931_v42 = vpop.permute.xlu2 %2930 }
0x1464   :  { %4646 = vmatpush.xpose.msk.msrb.mxu1 %vm610_vm1, %v2931_v42 }
0x1467   :  { %4645 = vmatmul.msk.f32.vlgmr.msra.gmra.mxu0 %vm610_vm1, %v2901_v41 }
0x146b   :  { %v3090_v55 = vpop.permute.xlu2 %3089 }
0x146c   :  { %4652 = vmatpush.xpose.msk.msrb.mxu3 %vm610_vm1, %v3090_v55 }
0x1473   :  { %v2929_v10 = vpop.permute.xlu2 %2928 }
0x147d   :  { %v2656_v44 = vpop.f32.mrf.mxu0 }
0x147e   :  { %4642 = vmatmul.msk.f32.vlgmr.msra.gmra.mxu3 %vm610_vm1, %v2656_v44 }
0x1484   :  { %v2747_v45 = vpop.xlane.xlu0 %2746 }
0x1485   :  { %v2749_v24 = vsub.f32 %v2739_v32, %v2747_v45 }
0x1487   :  { %v2752_v49 = vmul.f32 1.442695, %v2749_v24 }
0x1489   :  { %4987 = vpow2.f32 %v2752_v49 }
0x148f   :  { %v4988_v3 = vpop.eup %4987 }
0x1490   :  { %v2757_v57 = vsel %vm610_vm1, %v4988_v3, 0.0 }
0x1491   :  { %2758 = vadd.xlane.f32.xlu1 %v2757_v57 }
0x1497   :  { %v3088_v50 = vpop.permute.xlu0 %3087 }
0x149f   :  { %v3118_v42 = vpop.permute.xlu0 %3117 }
0x14d7   :  { %v2683_v40 = vpop.f32.mrf.mxu1 }
0x14d8   :  { %4643 = vmatmul.msk.f32.gmra.mxu3 %vm610_vm1, %v2683_v40 }
0x14dc   :  { %v2813_v46 = vpop.f32.mrf.mxu0 }
0x14dd   :  { %4640 = vmatmul.msk.f32.vlgmr.msrb.gmra.mxu2 %vm610_vm1, %v2813_v46 }
0x14e0   :  { %4653 = vmatmul.msk.f32.vlgmr.msrb.gmra.mxu3 %vm610_vm1, %v3088_v50 }
0x14e4   :  { %v2925_v51 = vpop.f32.mrf.mxu0 }
0x14e5   :  { %v2956_v52 = vsel %vm610_vm1, %v2925_v51, -inf }
0x14e6   :  { %2957 = vmax.xlane.f32.xlu2 %v2956_v52 }
0x1501   :  { %v6423_v37 = vpop.f32.mrf.mxu3 }
0x1504   :  { %v2759_v23 = vpop.xlane.xlu1 %2758 }
0x1505   :  { %4989 = vrcp.f32 %v2759_v23  ;;  %v2786_v43 = vand.u32 2147483648, %v2759_v23  ;;  %v2784_v32 = vand.u32 2147483647, %v2759_v23  ;;  %vm2780_vm7 = vweird.f32 %v2759_v23 }
0x1507   :  { %v2787_v38 = vor.u32 1.1754944e-38, %v2786_v43  ;;  %vm2785_vm9 = vcmp.eq.f32.partialorder %v2784_v32, 8.507059e+37 }
0x150b   :  { %v4990_v58 = vpop.eup %4989 }
0x150c   :  { %v2776_v26 = vmul.f32 %v4990_v58, %v2759_v23  ;;  %vm2781_vm6 = vweird.f32 %v4990_v58 }
0x150d   :  { %vm2782_vm8 = vmor %vm2780_vm7, %vm2781_vm6 }
0x150e   :  { %v2777_v0 = vsub.f32 1.0, %v2776_v26 }
0x1510   :  { %v2778_v25 = vmul.f32 %v4990_v58, %v2777_v0 }
0x1512   :  { %v2779_v2 = vadd.f32 %v4990_v58, %v2778_v25 }
0x1514   :  { %v2783_v4 = vsel %vm2782_vm8, %v4990_v58, %v2779_v2 }
0x1515   :  { %v2788_v1 = vsel %vm2785_vm9, %v2787_v38, %v2783_v4 }
0x1516   :  { %v2789_v13 = vmul.f32 %v4988_v3, %v2788_v1 }
0x1518   :  { %4639 = vmatmul.msk.f32.vlgmr.msra.gmra.mxu1 %vm610_vm1, %v2789_v13 }
0x1520   :  { %4647 = vmatmul.msk.f32.vlgmr.msrb.gmra.mxu1 %vm610_vm1, %v2929_v10 }
0x1559   :  { %v2958_v9 = vpop.xlane.xlu2 %2957 }
0x155a   :  { %v2962_v59 = vsub.f32 %v2925_v51, %v2958_v9  ;;  %v4626_v51 = vld [vmem:[%s6715_s25 + $0x30] sm:$0xff] }
0x155b   :  { %v6426_v5 = vpop.f32.mrf.mxu3  ;;  %3077 = vmatpush.msra.mxu2 %v4626_v51 }
0x155c   :  { %v2964_v12 = vmul.f32 1.442695, %v2962_v59 }
0x155e   :  { %4991 = vpow2.f32 %v2964_v12 }
0x1560   :  { %v2865_v51 = vpop.f32.mrf.mxu2 }
0x1563   :  { %v3112_v62 = vpop.f32.mrf.mxu3 }
0x1564   :  { %v4992_v48 = vpop.eup %4991  ;;  %v3143_v19 = vsel %vm610_vm1, %v3112_v62, -inf }
0x1565   :  { %v2968_v8 = vsel %vm610_vm1, %v4992_v48, 0.0 }
0x1566   :  { %2969 = vadd.xlane.f32.xlu1 %v2968_v8 }
0x157f   :  { %3004 = vrot.lane.b32.xlu1 %v6327_v53, %s5542_s27 }
0x1595   :  { %v2839_v14 = vpop.f32.mrf.mxu1 }
0x1596   :  { %4641 = vmatmul.msk.f32.gmra.mxu2 %vm610_vm1, %v2839_v14 }
0x159d   :  { %v2953_v7 = vpop.f32.mrf.mxu1 }
0x159e   :  { %v2959_v17 = vsel %vm610_vm1, %v2953_v7, -inf }
0x159f   :  { %2960 = vmax.xlane.f32.xlu0 %v2959_v17 }
0x15a9   :  { %3144 = vmax.xlane.f32.xlu1 %v3143_v19 }
0x15b3   :  { %3191 = vrot.lane.b32.xlu0 %v6327_v53, %s5543_s24  ;;  %v3116_v53 = vpop.permute.xlu0 %3115 }
0x15d9   :  { %v2970_v16 = vpop.xlane.xlu1 %2969 }
0x15da   :  { %4993 = vrcp.f32 %v2970_v16  ;;  %v2985_v29 = vand.u32 2147483648, %v2970_v16  ;;  %vm2979_vm11 = vweird.f32 %v2970_v16  ;;  %v2983_v36 = vand.u32 2147483647, %v2970_v16 }
0x15dc   :  { %v2986_v33 = vor.u32 1.1754944e-38, %v2985_v29  ;;  %vm2984_vm15 = vcmp.eq.f32.partialorder %v2983_v36, 8.507059e+37 }
0x15e0   :  { %v4994_v22 = vpop.eup %4993 }
0x15e1   :  { %v2975_v20 = vmul.f32 %v4994_v22, %v2970_v16  ;;  %vm2980_vm10 = vweird.f32 %v4994_v22 }
0x15e2   :  { %vm2981_vm14 = vmor %vm2979_vm11, %vm2980_vm10 }
0x15e3   :  { %v2976_v21 = vsub.f32 1.0, %v2975_v20 }
0x15e5   :  { %v2977_v28 = vmul.f32 %v4994_v22, %v2976_v21 }
0x15e7   :  { %v2978_v15 = vadd.f32 %v4994_v22, %v2977_v28 }
0x15e9   :  { %v2982_v31 = vsel %vm2981_vm14, %v4994_v22, %v2978_v15 }
0x15ea   :  { %v2987_v34 = vsel %vm2984_vm15, %v2986_v33, %v2982_v31 }
0x15eb   :  { %v2988_v55 = vmul.f32 %v4992_v48, %v2987_v34  ;;  %v4627_v34 = vld [vmem:[%s6715_s25 + $0x38] sm:$0xff] }
0x15f1   :  { %v3005_v41 = vpop.permute.xlu1 %3004 }
0x15f2   :  { %3025 = vmatpush.msrb.mxu0 %v3005_v41 }
0x15f3   :  { %4648 = vmatmul.msk.f32.vlgmr.msrb.gmra.mxu0 %vm610_vm1, %v2988_v55 }
0x15f4   :  { %4654 = vmatpush.xpose.msk.msra.mxu0 %vm610_vm1, %v3118_v42 }
0x15f8   :  { %3264 = vmatpush.msrb.mxu0 %v4627_v34  ;;  %v4885_v34 = vld [vmem:[#allocation12 + $0x1] ss:$0 sm:$0xff] }
0x15fb   :  { %4655 = vmatmul.msk.f32.vlgmr.msra.gmra.mxu0 %vm610_vm1, %v3116_v53 }
0x1612   :  { %v2961_v44 = vpop.xlane.xlu0 %2960 }
0x1613   :  { %v2963_v45 = vsub.f32 %v2953_v7, %v2961_v44 }
0x1615   :  { %v2966_v24 = vmul.f32 1.442695, %v2963_v45 }
0x1617   :  { %4995 = vpow2.f32 %v2966_v24 }
0x161c   :  { %v3145_v49 = vpop.xlane.xlu1 %3144 }
0x161d   :  { %v4996_v3 = vpop.eup %4995  ;;  %v3149_v57 = vsub.f32 %v3112_v62, %v3145_v49 }
0x161e   :  { %v2971_v35 = vsel %vm610_vm1, %v4996_v3, 0.0 }
0x161f   :  { %v3151_v40 = vmul.f32 1.442695, %v3149_v57  ;;  %2972 = vadd.xlane.f32.xlu2 %v2971_v35 }
0x1621   :  { %4997 = vpow2.f32 %v3151_v40 }
0x1625   :  { %v3192_v8 = vpop.permute.xlu0 %3191 }
0x1627   :  { %v4998_v46 = vpop.eup %4997 }
0x1628   :  { %v3155_v50 = vsel %vm610_vm1, %v4998_v46, 0.0 }
0x1629   :  { %3156 = vadd.xlane.f32.xlu2 %v3155_v50 }
0x1641   :  { %3030 = vrot.lane.b32.xlu2 %v6336_v63, %s5542_s27 }
0x1670   :  { %v3027_v52 = vpop.f32.mrf.mxu0 }
0x1671   :  { %4650 = vmatmul.msk.f32.vlgmr.msra.gmra.mxu2 %vm610_vm1, %v3027_v52  ;;  %v2868_v52 = vpop.f32.mrf.mxu2 }
0x1678   :  { %v3140_v23 = vpop.f32.mrf.mxu0 }
0x1679   :  { %v3146_v58 = vsel %vm610_vm1, %v3140_v23, -inf }
0x167a   :  { %3147 = vmax.xlane.f32.xlu1 %v3146_v58  ;;  %v2895_v58 = vadd.f32 %v6423_v37, %v2865_v51 }
0x1692   :  { %v2973_v26 = vpop.xlane.xlu2 %2972 }
0x1693   :  { %4999 = vrcp.f32 %v2973_v26  ;;  %3217 = vrot.lane.b32.xlu1 %v6336_v63, %s5543_s24  ;;  %v3000_v2 = vand.u32 2147483648, %v2973_v26  ;;  %v2998_v4 = vand.u32 2147483647, %v2973_v26  ;;  %vm2994_vm3 = vweird.f32 %v2973_v26 }
0x1695   :  { %v3001_v13 = vor.u32 1.1754944e-38, %v3000_v2  ;;  %vm2999_vm5 = vcmp.eq.f32.partialorder %v2998_v4, 8.507059e+37 }
0x1699   :  { %v5000_v0 = vpop.eup %4999 }
0x169a   :  { %v2990_v43 = vmul.f32 %v5000_v0, %v2973_v26  ;;  %vm2995_vm2 = vweird.f32 %v5000_v0 }
0x169b   :  { %vm2996_vm4 = vmor %vm2994_vm3, %vm2995_vm2 }
0x169c   :  { %v2991_v25 = vsub.f32 1.0, %v2990_v43  ;;  %v3157_v32 = vpop.xlane.xlu2 %3156 }
0x169d   :  { %5001 = vrcp.f32 %v3157_v32  ;;  %v3172_v7 = vand.u32 2147483648, %v3157_v32  ;;  %v3170_v62 = vand.u32 2147483647, %v3157_v32  ;;  %vm3166_vm7 = vweird.f32 %v3157_v32 }
0x169e   :  { %v2992_v38 = vmul.f32 %v5000_v0, %v2991_v25  ;;  %v4884_v25 = vld [vmem:[%s6717_s18 + $0x1] ss:$0 sm:$0xff] }
0x169f   :  { %v3173_v16 = vor.u32 1.1754944e-38, %v3172_v7  ;;  %vm3171_vm9 = vcmp.eq.f32.partialorder %v3170_v62, 8.507059e+37 }
0x16a0   :  { %v2993_v1 = vadd.f32 %v5000_v0, %v2992_v38 }
0x16a2   :  { %v2997_v10 = vsel %vm2996_vm4, %v5000_v0, %v2993_v1 }
0x16a3   :  { %v5002_v9 = vpop.eup %5001  ;;  %v3002_v59 = vsel %vm2999_vm5, %v3001_v13, %v2997_v10 }
0x16a4   :  { %v3162_v12 = vmul.f32 %v5002_v9, %v3157_v32  ;;  %v3031_v48 = vpop.permute.xlu2 %3030  ;;  %v3003_v63 = vmul.f32 %v4996_v3, %v3002_v59  ;;  %vm3167_vm6 = vweird.f32 %v5002_v9 }
0x16a5   :  { %3051 = vmatpush.msra.mxu1 %v3031_v48  ;;  %vm3168_vm8 = vmor %vm3166_vm7, %vm3167_vm6  ;;  %v2898_v48 = vadd.f32 %v6426_v5, %v2868_v52 }
0x16a6   :  { %v3163_v14 = vsub.f32 1.0, %v3162_v12  ;;  %4649 = vmatmul.msk.f32.vlgmr.msra.gmra.mxu1 %vm610_vm1, %v3003_v63 }
0x16a7   :  { %3212 = vmatpush.msrb.mxu1 %v3192_v8 }
0x16a8   :  { %v3164_v17 = vmul.f32 %v5002_v9, %v3163_v14 }
0x16aa   :  { %v3165_v19 = vadd.f32 %v5002_v9, %v3164_v17 }
0x16ac   :  { %v3169_v22 = vsel %vm3168_vm8, %v5002_v9, %v3165_v19  ;;  %v4664_v19 = vld [vmem:[%s6718_s9 + $0x38] sm:$0xff] }
0x16ad   :  { %v3174_v20 = vsel %vm3171_vm9, %v3173_v16, %v3169_v22  ;;  %3369 = vmatpush.msra.mxu1 %v4664_v19  ;;  %v4663_v16 = vld [vmem:[%s6718_s9 + $0x30] sm:$0xff]  ;;  %v4662_v22 = vld [vmem:[%s6718_s9 + $0x28] sm:$0xff] }
0x16ae   :  { %v3175_v21 = vmul.f32 %v4998_v46, %v3174_v20  ;;  %v4661_v20 = vld [vmem:[%s6718_s9 + $0x20] sm:$0xff] }
0x16af   :  { %3370 = vmatpush.msra.mxu1 %v4663_v16 }
0x16b0   :  { %4656 = vmatmul.msk.f32.vlgmr.msrb.gmra.mxu1 %vm610_vm1, %v3175_v21 }
0x16b1   :  { %3371 = vmatpush.msra.mxu1 %v4662_v22 }
0x16b3   :  { %3372 = vmatpush.msra.mxu1 %v4661_v20 }
0x16ed   :  { %v3148_v28 = vpop.xlane.xlu1 %3147 }
0x16ee   :  { %v3150_v15 = vsub.f32 %v3140_v23, %v3148_v28 }
0x16f0   :  { %v3153_v29 = vmul.f32 1.442695, %v3150_v15 }
0x16f2   :  { %5003 = vpow2.f32 %v3153_v29 }
0x16f4   :  { %v3079_v23 = vpop.f32.mrf.mxu2 }
0x16f5   :  { %v3085_v26 = vadd.f32 %v3079_v23, %v2895_v58 }
0x16f8   :  { %v5004_v36 = vpop.eup %5003 }
0x16f9   :  { %v3158_v31 = vsel %vm610_vm1, %v5004_v36, 0.0 }
0x16fa   :  { %3159 = vadd.xlane.f32.xlu2 %v3158_v31 }
0x1705   :  { %v3218_v33 = vpop.permute.xlu1 %3217 }
0x1706   :  { %3238 = vmatpush.msra.mxu3 %v3218_v33 }
0x1723   :  { %v3053_v42 = vpop.f32.mrf.mxu1 }
0x1724   :  { %4651 = vmatmul.msk.f32.gmra.mxu2 %vm610_vm1, %v3053_v42 }
0x172d   :  { %v3214_v41 = vpop.f32.mrf.mxu1 }
0x172e   :  { %4658 = vmatmul.msk.f32.vlgmr.msrb.gmra.mxu0 %vm610_vm1, %v3214_v41  ;;  %v4886_v41 = vld [vmem:[#allocation13 + $0x1] ss:$0 sm:$0xff] }
0x176d   :  { %v3160_v55 = vpop.xlane.xlu2 %3159 }
0x176e   :  { %5005 = vrcp.f32 %v3160_v55  ;;  %v3187_v24 = vand.u32 2147483648, %v3160_v55  ;;  %v3185_v3 = vand.u32 2147483647, %v3160_v55  ;;  %vm3181_vm11 = vweird.f32 %v3160_v55 }
0x1770   :  { %v3188_v35 = vor.u32 1.1754944e-38, %v3187_v24  ;;  %vm3186_vm15 = vcmp.eq.f32.partialorder %v3185_v3, 8.507059e+37 }
0x1774   :  { %v5006_v53 = vpop.eup %5005 }
0x1775   :  { %v3177_v44 = vmul.f32 %v5006_v53, %v3160_v55  ;;  %vm3182_vm10 = vweird.f32 %v5006_v53 }
0x1776   :  { %vm3183_vm14 = vmor %vm3181_vm11, %vm3182_vm10 }
0x1777   :  { %v3178_v45 = vsub.f32 1.0, %v3177_v44 }
0x1779   :  { %v3179_v49 = vmul.f32 %v5006_v53, %v3178_v45 }
0x177b   :  { %v3180_v57 = vadd.f32 %v5006_v53, %v3179_v49 }
0x177d   :  { %v3184_v40 = vsel %vm3183_vm14, %v5006_v53, %v3180_v57 }
0x177e   :  { %v3189_v46 = vsel %vm3186_vm15, %v3188_v35, %v3184_v40 }
0x177f   :  { %v3190_v50 = vmul.f32 %v5004_v36, %v3189_v46 }
0x1781   :  { %4657 = vmatmul.msk.f32.vlgmr.msra.gmra.mxu3 %vm610_vm1, %v3190_v50  ;;  %v4887_v50 = vld [vmem:[#allocation2 + $0x1] ss:$0 sm:$0xff] }
0x17a7   :  { %v3082_v12 = vpop.f32.mrf.mxu2 }
0x17a8   :  { %v3086_v63 = vadd.f32 %v3082_v12, %v2898_v48 }
0x17ab   :  { %v3266_v0 = vpop.f32.mrf.mxu0 }
0x17ac   :  { %v3272_v43 = vadd.f32 %v3266_v0, %v3085_v26 }
0x17ae   :  { %v3274_v32 = vadd.f32 %v3272_v43, %v6317_v47 }
0x17b0   :  { %v3281_v2 = vadd.f32 %v4884_v25, %v3274_v32 }
0x17b2   :  { %v3287_v38 = vsel %vm407_vm0, %v3281_v2, 0.0 }
0x17b3   :  { %3288 = vadd.xlane.f32.xlu0 %v3287_v38 }
0x17c7   :  { %3399 = vrot.lane.b32.xlu0 %v6024_v27, %s5534_s22 }
0x17cf   :  { %3571 = vrot.lane.b32.xlu0 %v6024_v27, %s5533_s20 }
0x1804   :  { %v3240_v4 = vpop.f32.mrf.mxu3 }
0x1805   :  { %4659 = vmatmul.msk.f32.gmra.mxu0 %vm610_vm1, %v3240_v4 }
0x1826   :  { %v3289_v37 = vpop.xlane.xlu0 %3288 }
0x1827   :  { %v3293_v1 = vmul.f32 %v3289_v37, %v6110_v6 }
0x1829   :  { %v3295_v13 = vsub.f32 %v3281_v2, %v3293_v1 }
0x182b   :  { %v3297_v10 = vmul.f32 %v3295_v13, %v3295_v13 }
0x182d   :  { %v3299_v47 = vsel %vm407_vm0, %v3297_v10, 0.0 }
0x182e   :  { %3300 = vadd.xlane.f32.xlu1 %v3299_v47 }
0x1839   :  { %v3400_v9 = vpop.permute.xlu0 %3399 }
0x183a   :  { %4667 = vmatpush.xpose.msk.msrb.mxu2 %vm610_vm1, %v3400_v9 }
0x1841   :  { %v3572_v59 = vpop.permute.xlu0 %3571 }
0x1842   :  { %4675 = vmatpush.xpose.msk.msra.mxu0 %vm610_vm1, %v3572_v59 }
0x1847   :  { %3397 = vrot.lane.b32.xlu1 %v6031_v39, %s5534_s22 }
0x1882   :  { %v3269_v8 = vpop.f32.mrf.mxu0 }
0x1883   :  { %v3273_v14 = vadd.f32 %v3269_v8, %v3086_v63 }
0x1885   :  { %v3275_v7 = vadd.f32 %v3273_v14, %v6322_v61 }
0x1887   :  { %v3282_v17 = vadd.f32 %v4884_v25, %v3275_v7 }
0x1889   :  { %v3290_v62 = vsel %vm407_vm0, %v3282_v17, 0.0 }
0x188a   :  { %3291 = vadd.xlane.f32.xlu2 %v3290_v62 }
0x18a1   :  { %v3301_v21 = vpop.xlane.xlu1 %3300 }
0x18a2   :  { %v3305_v5 = vmul.f32 %v3301_v21, %v6110_v6 }
0x18a4   :  { %v3307_v28 = vadd.f32 1e-05, %v3305_v5 }
0x18a6   :  { %5007 = vrsqrt.f32 %v3307_v28  ;;  %vm3315_vm3 = vweird.f32 %v3307_v28 }
0x18ac   :  { %v5008_v15 = vpop.eup %5007 }
0x18ad   :  { %v3310_v29 = vmul.f32 %v5008_v15, %v3307_v28  ;;  %vm3316_vm2 = vweird.f32 %v5008_v15 }
0x18ae   :  { %vm3317_vm4 = vmor %vm3315_vm3, %vm3316_vm2 }
0x18af   :  { %v3311_v61 = vmul.f32 %v5008_v15, %v3310_v29 }
0x18b1   :  { %v3312_v36 = vmul.f32 0.5, %v3311_v61 }
0x18b3   :  { %v3313_v31 = vsub.f32 1.5, %v3312_v36 }
0x18b5   :  { %v3314_v33 = vmul.f32 %v5008_v15, %v3313_v31 }
0x18b7   :  { %v3318_v42 = vsel %vm3317_vm4, %v5008_v15, %v3314_v33 }
0x18b8   :  { %v3329_v55 = vmul.f32 %v3318_v42, %v3295_v13 }
0x18b9   :  { %v3398_v53 = vpop.permute.xlu1 %3397 }
0x18ba   :  { %v3334_v44 = vmul.f32 %v4885_v34, %v3329_v55  ;;  %4668 = vmatpush.xpose.msk.msrb.mxu2 %vm610_vm1, %v3398_v53 }
0x18bc   :  { %v6475_v45 = vadd.f32 %v4886_v41, %v3334_v44 }
0x18be   :  { %4665 = vmatmul.msk.f32.vlgmr.msra.gmra.mxu1 %vm407_vm0, %v6475_v45 }
0x18fd   :  { %v3292_v24 = vpop.xlane.xlu2 %3291 }
0x18fe   :  { %v3294_v49 = vmul.f32 %v3292_v24, %v6110_v6 }
0x1900   :  { %v3296_v3 = vsub.f32 %v3282_v17, %v3294_v49 }
0x1902   :  { %v3298_v57 = vmul.f32 %v3296_v3, %v3296_v3 }
0x1904   :  { %v3302_v35 = vsel %vm407_vm0, %v3298_v57, 0.0 }
0x1905   :  { %3303 = vadd.xlane.f32.xlu2 %v3302_v35 }
0x191d   :  { %3382 = vrot.lane.b32.xlu2 %v5942_v54, %s5534_s22 }
0x1925   :  { %3569 = vrot.lane.b32.xlu2 %v6031_v39, %s5533_s20 }
0x192d   :  { %3430 = vrot.lane.b32.xlu2 %v6079_v18, %s5534_s22 }
0x1935   :  { %3428 = vrot.lane.b32.xlu2 %v6085_v30, %s5534_s22 }
0x193b   :  { %v3374_v51 = vpop.f32.mrf.mxu1 }
0x193c   :  { %v3375_v52 = vadd.f32 %v4887_v50, %v3374_v51 }
0x193d   :  { %4830 = vrot.lane.b32.xlu2 %v6161_v60, %s5534_s22 }
0x1945   :  { %4835 = vrot.lane.b32.xlu2 %v6161_v60, %s5533_s20 }
0x1978   :  { %v3304_v40 = vpop.xlane.xlu2 %3303 }
0x1979   :  { %v3306_v46 = vmul.f32 %v3304_v40, %v6110_v6 }
0x197b   :  { %v3308_v54 = vadd.f32 1e-05, %v3306_v46 }
0x197d   :  { %5009 = vrsqrt.f32 %v3308_v54  ;;  %vm3325_vm6 = vweird.f32 %v3308_v54 }
0x1980   :  { %v3383_v23 = vpop.permute.xlu2 %3382 }
0x1981   :  { %v3388_v58 = vadd.f32 %v3383_v23, %v3375_v52 }
0x1983   :  { %v5010_v26 = vpop.eup %5009  ;;  %v6494_v0 = vmul.f32 0.35355338, %v3388_v58 }
0x1984   :  { %v3320_v43 = vmul.f32 %v5010_v26, %v3308_v54  ;;  %vm3326_vm5 = vweird.f32 %v5010_v26 }
0x1985   :  { %3567 = vrot.lane.b32.xlu0 %v6494_v0, %s5535_s2  ;;  %4669 = vmatmul.msk.f32.vlgmr.msrb.gmra.mxu2 %vm610_vm1, %v6494_v0  ;;  %vm3327_vm7 = vmor %vm3325_vm6, %vm3326_vm5 }
0x1986   :  { %v3321_v25 = vmul.f32 %v5010_v26, %v3320_v43 }
0x1988   :  { %v3322_v32 = vmul.f32 0.5, %v3321_v25  ;;  %v3570_v2 = vpop.permute.xlu2 %3569 }
0x1989   :  { %4676 = vmatpush.xpose.msk.msra.mxu0 %vm610_vm1, %v3570_v2 }
0x198a   :  { %v3323_v38 = vsub.f32 1.5, %v3322_v32 }
0x198c   :  { %v3324_v4 = vmul.f32 %v5010_v26, %v3323_v38 }
0x198d   :  { %3384 = vrot.lane.b32.xlu0 %v5946_v56, %s5534_s22 }
0x198e   :  { %v3328_v37 = vsel %vm3327_vm7, %v5010_v26, %v3324_v4 }
0x198f   :  { %v3330_v1 = vmul.f32 %v3328_v37, %v3296_v3 }
0x1990   :  { %v3431_v13 = vpop.permute.xlu2 %3430 }
0x1991   :  { %4670 = vmatpush.xpose.msk.msrb.mxu3 %vm610_vm1, %v3431_v13  ;;  %v3335_v10 = vmul.f32 %v4885_v34, %v3330_v1 }
0x1993   :  { %v6504_v47 = vadd.f32 %v4886_v41, %v3335_v10 }
0x1995   :  { %4666 = vmatmul.msk.f32.gmra.mxu1 %vm407_vm0, %v6504_v47 }
0x1998   :  { %v3429_v9 = vpop.permute.xlu2 %3428 }
0x1999   :  { %4671 = vmatpush.xpose.msk.msrb.mxu3 %vm610_vm1, %v3429_v9 }
0x19a0   :  { %v4831_v59 = vpop.permute.xlu2 %4830 }
0x19a1   :  { %v4832_v12 = vunpack.i.l.bf16 %v4831_v59  ;;  %v4833_v48 = vunpack.i.h.bf16 %v4831_v59 }
0x19a3   :  { %3530 = vmatpush.msra.mxu2 %v4832_v12 }
0x19a5   :  { %3531 = vmatpush.msra.mxu2 %v4833_v48 }
0x19a8   :  { %v4836_v56 = vpop.permute.xlu2 %4835 }
0x19a9   :  { %v4837_v63 = vunpack.i.l.bf16 %v4836_v56  ;;  %v4838_v8 = vunpack.i.h.bf16 %v4836_v56  ;;  %v3391_v56 = vld [vmem:[#allocation4 + $0x20] sm:$0xff] }
0x19ab   :  { %3702 = vmatpush.msrb.mxu2 %v4837_v63 }
0x19ad   :  { %3703 = vmatpush.msrb.mxu2 %v4838_v8 }
0x19f7   :  { %v3568_v14 = vpop.permute.xlu0 %3567 }
0x19f8   :  { %4677 = vmatmul.msk.f32.vlgmr.msra.gmra.mxu0 %vm610_vm1, %v3568_v14 }
0x19ff   :  { %v3385_v16 = vpop.permute.xlu0 %3384 }
0x1a08   :  { %v3425_v7 = vpop.f32.mrf.mxu2 }
0x1a09   :  { %v3459_v17 = vsel %vm1528_vm13, %v3425_v7, -inf }
0x1a0a   :  { %3460 = vmax.xlane.f32.xlu1 %v3459_v17 }
0x1a12   :  { %v3377_v62 = vpop.f32.mrf.mxu1 }
0x1a13   :  { %v3378_v19 = vadd.f32 %v4887_v50, %v3377_v62 }
0x1a15   :  { %v3389_v22 = vadd.f32 %v3385_v16, %v3378_v19 }
0x1a17   :  { %v6511_v20 = vmul.f32 0.35355338, %v3389_v22 }
0x1a19   :  { %4672 = vmatmul.msk.f32.vlgmr.msrb.gmra.mxu3 %vm610_vm1, %v6511_v20 }
0x1a23   :  { %3601 = vrot.lane.b32.xlu1 %v6085_v30, %s5533_s20 }
0x1a75   :  { %v3596_v21 = vpop.f32.mrf.mxu0 }
0x1a76   :  { %v3631_v5 = vsel %vm1528_vm13, %v3596_v21, -inf }
0x1a77   :  { %3632 = vmax.xlane.f32.xlu0 %v3631_v5 }
0x1a7d   :  { %v3461_v28 = vpop.xlane.xlu1 %3460 }
0x1a7e   :  { %v3465_v15 = vsub.f32 %v3425_v7, %v3461_v28 }
0x1a80   :  { %v3467_v29 = vmul.f32 1.442695, %v3465_v15 }
0x1a82   :  { %5011 = vpow2.f32 %v3467_v29 }
0x1a88   :  { %v5012_v61 = vpop.eup %5011 }
0x1a89   :  { %v3471_v36 = vsel %vm1528_vm13, %v5012_v61, 0.0 }
0x1a8a   :  { %3472 = vadd.xlane.f32.xlu2 %v3471_v36 }
0x1a8b   :  { %3603 = vrot.lane.b32.xlu0 %v6079_v18, %s5533_s20 }
0x1a93   :  { %3599 = vrot.lane.b32.xlu0 %v6511_v20, %s5535_s2 }
0x1a95   :  { %v3602_v49 = vpop.permute.xlu1 %3601 }
0x1a9b   :  { %3801 = vrot.lane.b32.xlu0 %v6024_v27, %s5539_s17 }
0x1a9c   :  { %v3456_v31 = vpop.f32.mrf.mxu3 }
0x1a9d   :  { %v3462_v33 = vsel %vm1528_vm13, %v3456_v31, -inf }
0x1aa2   :  { %3797 = vrot.lane.b32.xlu2 %v6494_v0, %s5537_s30 }
0x1aaa   :  { %4840 = vrot.lane.b32.xlu2 %v6192_v11, %s5534_s22 }
0x1ac5   :  { %3463 = vmax.xlane.f32.xlu0 %v3462_v33 }
0x1aea   :  { %v3633_v34 = vpop.xlane.xlu0 %3632 }
0x1aeb   :  { %v3637_v42 = vsub.f32 %v3596_v21, %v3633_v34 }
0x1aed   :  { %v3639_v41 = vmul.f32 1.442695, %v3637_v42 }
0x1aef   :  { %5013 = vpow2.f32 %v3639_v41 }
0x1af5   :  { %v5014_v55 = vpop.eup %5013 }
0x1af6   :  { %v3643_v53 = vsel %vm1528_vm13, %v5014_v55, 0.0 }
0x1af7   :  { %3644 = vadd.xlane.f32.xlu1 %v3643_v53 }
0x1afd   :  { %v3604_v44 = vpop.permute.xlu0 %3603  ;;  %v3473_v24 = vpop.xlane.xlu2 %3472 }
0x1afe   :  { %5015 = vrcp.f32 %v3473_v24  ;;  %4678 = vmatpush.xpose.msk.msrb.mxu1 %vm610_vm1, %v3604_v44  ;;  %v3488_v50 = vand.u32 2147483648, %v3473_v24  ;;  %v3486_v51 = vand.u32 2147483647, %v3473_v24  ;;  %vm3482_vm9 = vweird.f32 %v3473_v24 }
0x1b00   :  { %v3489_v23 = vor.u32 1.1754944e-38, %v3488_v50  ;;  %vm3487_vm11 = vcmp.eq.f32.partialorder %v3486_v51, 8.507059e+37 }
0x1b02   :  { %4679 = vmatpush.xpose.msk.msrb.mxu1 %vm610_vm1, %v3602_v49 }
0x1b04   :  { %v5016_v3 = vpop.eup %5015 }
0x1b05   :  { %v3478_v57 = vmul.f32 %v5016_v3, %v3473_v24  ;;  %v3600_v35 = vpop.permute.xlu0 %3599  ;;  %v3798_v40 = vpop.permute.xlu2 %3797  ;;  %vm3483_vm8 = vweird.f32 %v5016_v3  ;;  %v3392_v24 = vld [vmem:[#allocation4 + $0x28] sm:$0xff] }
0x1b06   :  { %4680 = vmatmul.msk.f32.vlgmr.msrb.gmra.mxu1 %vm610_vm1, %v3600_v35  ;;  %vm3484_vm10 = vmor %vm3482_vm9, %vm3483_vm8  ;;  %3758 = vmatpush.msrb.mxu0 %v3392_v24 }
0x1b07   :  { %v3479_v46 = vsub.f32 1.0, %v3478_v57  ;;  %3787 = vmatpush.msra.mxu1 %v3391_v56 }
0x1b09   :  { %v3480_v54 = vmul.f32 %v5016_v3, %v3479_v46 }
0x1b0b   :  { %v3481_v52 = vadd.f32 %v5016_v3, %v3480_v54 }
0x1b0d   :  { %v3485_v58 = vsel %vm3484_vm10, %v5016_v3, %v3481_v52  ;;  %v4841_v26 = vpop.permute.xlu2 %4840  ;;  %v3802_v38 = vpop.permute.xlu0 %3801 }
0x1b0e   :  { %v3490_v43 = vsel %vm3487_vm11, %v3489_v23, %v3485_v58  ;;  %v4842_v25 = vunpack.i.l.bf16 %v4841_v26  ;;  %v4843_v2 = vunpack.i.h.bf16 %v4841_v26 }
0x1b0f   :  { %v6534_v32 = vmul.f32 %v5012_v61, %v3490_v43 }
0x1b10   :  { %3799 = vrot.lane.b32.xlu1 %v6031_v39, %s5539_s17  ;;  %3559 = vmatpush.msra.mxu3 %v4842_v25 }
0x1b11   :  { %4673 = vmatmul.msk.f32.vlgmr.msra.gmra.mxu2 %vm1528_vm13, %v6534_v32 }
0x1b12   :  { %4687 = vmatpush.xpose.msk.msra.mxu2 %vm610_vm1, %v3802_v38  ;;  %3560 = vmatpush.msra.mxu3 %v4843_v2 }
0x1b38   :  { %v3464_v4 = vpop.xlane.xlu0 %3463 }
0x1b39   :  { %v3466_v37 = vsub.f32 %v3456_v31, %v3464_v4 }
0x1b3b   :  { %v3469_v1 = vmul.f32 1.442695, %v3466_v37 }
0x1b3d   :  { %5017 = vpow2.f32 %v3469_v1 }
0x1b43   :  { %v5018_v13 = vpop.eup %5017 }
0x1b44   :  { %v3474_v10 = vsel %vm1528_vm13, %v5018_v13, 0.0 }
0x1b45   :  { %3475 = vadd.xlane.f32.xlu1 %v3474_v10 }
0x1b6a   :  { %v3645_v9 = vpop.xlane.xlu1 %3644 }
0x1b6b   :  { %5019 = vrcp.f32 %v3645_v9  ;;  %v3660_v63 = vand.u32 2147483648, %v3645_v9  ;;  %v3658_v14 = vand.u32 2147483647, %v3645_v9  ;;  %vm3654_vm15 = vweird.f32 %v3645_v9 }
0x1b6d   :  { %v3661_v17 = vor.u32 1.1754944e-38, %v3660_v63  ;;  %vm3659_vm3 = vcmp.eq.f32.partialorder %v3658_v14, 8.507059e+37 }
0x1b71   :  { %v5020_v59 = vpop.eup %5019 }
0x1b72   :  { %v3650_v12 = vmul.f32 %v5020_v59, %v3645_v9  ;;  %vm3655_vm14 = vweird.f32 %v5020_v59 }
0x1b73   :  { %vm3656_vm2 = vmor %vm3654_vm15, %vm3655_vm14 }
0x1b74   :  { %v3651_v48 = vsub.f32 1.0, %v3650_v12 }
0x1b76   :  { %v3652_v8 = vmul.f32 %v5020_v59, %v3651_v48 }
0x1b78   :  { %v3653_v7 = vadd.f32 %v5020_v59, %v3652_v8 }
0x1b7a   :  { %v3657_v62 = vsel %vm3656_vm2, %v5020_v59, %v3653_v7 }
0x1b7b   :  { %v3662_v19 = vsel %vm3659_vm3, %v3661_v17, %v3657_v62 }
0x1b7c   :  { %v6542_v16 = vmul.f32 %v5014_v55, %v3662_v19 }
0x1b7e   :  { %4681 = vmatmul.msk.f32.vlgmr.msrb.gmra.mxu2 %vm1528_vm13, %v6542_v16 }
0x1b82   :  { %v3800_v22 = vpop.permute.xlu1 %3799 }
0x1b83   :  { %v3628_v21 = vpop.f32.mrf.mxu1  ;;  %4688 = vmatpush.xpose.msk.msra.mxu2 %vm610_vm1, %v3800_v22 }
0x1b84   :  { %v3634_v5 = vsel %vm1528_vm13, %v3628_v21, -inf }
0x1b85   :  { %3635 = vmax.xlane.f32.xlu2 %v3634_v5 }
0x1b86   :  { %4689 = vmatmul.msk.f32.vlgmr.msra.gmra.mxu2 %vm610_vm1, %v3798_v40 }
0x1b94   :  { %v3533_v28 = vpop.f32.mrf.mxu2 }
0x1b95   :  { %4685 = vmatmul.msk.f32.vlgmr.msra.gmra.mxu1 %vm610_vm1, %v3533_v28 }
0x1b9d   :  { %3831 = vrot.lane.b32.xlu2 %v6085_v30, %s5539_s17 }
0x1bb8   :  { %v3476_v15 = vpop.xlane.xlu1 %3475 }
0x1bb9   :  { %5021 = vrcp.f32 %v3476_v15  ;;  %v3503_v31 = vand.u32 2147483648, %v3476_v15  ;;  %v3501_v34 = vand.u32 2147483647, %v3476_v15  ;;  %vm3497_vm5 = vweird.f32 %v3476_v15 }
0x1bbb   :  { %v3504_v41 = vor.u32 1.1754944e-38, %v3503_v31  ;;  %vm3502_vm7 = vcmp.eq.f32.partialorder %v3501_v34, 8.507059e+37 }
0x1bbf   :  { %v5022_v29 = vpop.eup %5021 }
0x1bc0   :  { %v3493_v61 = vmul.f32 %v5022_v29, %v3476_v15  ;;  %vm3498_vm4 = vweird.f32 %v5022_v29 }
0x1bc1   :  { %vm3499_vm6 = vmor %vm3497_vm5, %vm3498_vm4 }
0x1bc2   :  { %v3494_v36 = vsub.f32 1.0, %v3493_v61 }
0x1bc4   :  { %v3495_v33 = vmul.f32 %v5022_v29, %v3494_v36 }
0x1bc6   :  { %v3496_v42 = vadd.f32 %v5022_v29, %v3495_v33 }
0x1bc8   :  { %v3500_v55 = vsel %vm3499_vm6, %v5022_v29, %v3496_v42  ;;  %v3795_v42 = vadd.f32 %v6542_v16, %v6534_v32 }
0x1bc9   :  { %v3505_v53 = vsel %vm3502_vm7, %v3504_v41, %v3500_v55 }
0x1bca   :  { %v6552_v44 = vmul.f32 %v5018_v13, %v3505_v53 }
0x1bcc   :  { %4674 = vmatmul.msk.f32.vlgmr.msra.gmra.mxu3 %vm1528_vm13, %v6552_v44 }
0x1bf8   :  { %v3636_v49 = vpop.xlane.xlu2 %3635 }
0x1bf9   :  { %v3638_v3 = vsub.f32 %v3628_v21, %v3636_v49 }
0x1bfb   :  { %v3641_v57 = vmul.f32 1.442695, %v3638_v3 }
0x1bfd   :  { %5023 = vpow2.f32 %v3641_v57 }
0x1c00   :  { %v3832_v63 = vpop.permute.xlu2 %3831 }
0x1c01   :  { %v3705_v35 = vpop.f32.mrf.mxu2 }
0x1c02   :  { %4683 = vmatmul.msk.f32.vlgmr.msrb.gmra.mxu0 %vm610_vm1, %v3705_v35 }
0x1c03   :  { %v5024_v40 = vpop.eup %5023 }
0x1c04   :  { %v3646_v46 = vsel %vm1528_vm13, %v5024_v40, 0.0 }
0x1c05   :  { %3647 = vadd.xlane.f32.xlu1 %v3646_v46 }
0x1c09   :  { %v3826_v50 = vpop.f32.mrf.mxu2 }
0x1c0a   :  { %v3861_v54 = vsel %vm1528_vm13, %v3826_v50, -inf }
0x1c0b   :  { %3862 = vmax.xlane.f32.xlu0 %v3861_v54 }
0x1c12   :  { %v6598_v53 = vpop.f32.mrf.mxu1 }
0x1c1e   :  { %3833 = vrot.lane.b32.xlu1 %v6079_v18, %s5539_s17 }
0x1c1f   :  { %4845 = vrot.lane.b32.xlu0 %v6192_v11, %s5533_s20 }
0x1c26   :  { %4004 = vrot.lane.b32.xlu1 %v6024_v27, %s5540_s0 }
0x1c27   :  { %3829 = vrot.lane.b32.xlu0 %v6511_v20, %s5537_s30 }
0x1c2e   :  { %4002 = vrot.lane.b32.xlu1 %v6031_v39, %s5540_s0 }
0x1c2f   :  { %4850 = vrot.lane.b32.xlu0 %v6161_v60, %s5539_s17 }
0x1c36   :  { %4034 = vrot.lane.b32.xlu1 %v6085_v30, %s5540_s0 }
0x1c37   :  { %4000 = vrot.lane.b32.xlu0 %v6494_v0, %s5541_s11 }
0x1c3f   :  { %4032 = vrot.lane.b32.xlu0 %v6511_v20, %s5541_s11 }
0x1c4f   :  { %v3562_v51 = vpop.f32.mrf.mxu3 }
0x1c50   :  { %4686 = vmatmul.msk.f32.gmra.mxu1 %vm610_vm1, %v3562_v51 }
0x1c78   :  { %v3648_v27 = vpop.xlane.xlu1 %3647 }
0x1c79   :  { %5025 = vrcp.f32 %v3648_v27  ;;  %v3675_v20 = vand.u32 2147483648, %v3648_v27  ;;  %vm3669_vm9 = vweird.f32 %v3648_v27  ;;  %v3673_v38 = vand.u32 2147483647, %v3648_v27 }
0x1c7b   :  { %v3676_v37 = vor.u32 1.1754944e-38, %v3675_v20  ;;  %vm3674_vm11 = vcmp.eq.f32.partialorder %v3673_v38, 8.507059e+37 }
0x1c7e   :  { %v3863_v52 = vpop.xlane.xlu0 %3862 }
0x1c7f   :  { %v5026_v23 = vpop.eup %5025  ;;  %v3867_v39 = vsub.f32 %v3826_v50, %v3863_v52 }
0x1c80   :  { %v3665_v58 = vmul.f32 %v5026_v23, %v3648_v27  ;;  %vm3670_vm8 = vweird.f32 %v5026_v23 }
0x1c81   :  { %v3869_v26 = vmul.f32 1.442695, %v3867_v39  ;;  %vm3671_vm10 = vmor %vm3669_vm9, %vm3670_vm8 }
0x1c82   :  { %v3666_v43 = vsub.f32 1.0, %v3665_v58 }
0x1c83   :  { %5027 = vpow2.f32 %v3869_v26 }
0x1c84   :  { %v3667_v25 = vmul.f32 %v5026_v23, %v3666_v43 }
0x1c86   :  { %v3668_v0 = vadd.f32 %v5026_v23, %v3667_v25 }
0x1c88   :  { %v3672_v4 = vsel %vm3671_vm10, %v5026_v23, %v3668_v0 }
0x1c89   :  { %v5028_v30 = vpop.eup %5027  ;;  %v3677_v10 = vsel %vm3674_vm11, %v3676_v37, %v3672_v4 }
0x1c8a   :  { %v3873_v2 = vsel %vm1528_vm13, %v5028_v30, 0.0  ;;  %v6579_v12 = vmul.f32 %v5024_v40, %v3677_v10  ;;  %v3393_v40 = vld [vmem:[#allocation4 + $0x30] sm:$0xff] }
0x1c8b   :  { %3874 = vadd.xlane.f32.xlu2 %v3873_v2  ;;  %3988 = vmatpush.msra.mxu0 %v3393_v40 }
0x1c90   :  { %v3834_v1 = vpop.permute.xlu1 %3833 }
0x1c91   :  { %v4846_v13 = vpop.permute.xlu0 %4845 }
0x1c92   :  { %v4847_v9 = vunpack.i.l.bf16 %v4846_v13  ;;  %v4848_v59 = vunpack.i.h.bf16 %v4846_v13 }
0x1c94   :  { %3731 = vmatpush.msrb.mxu3 %v4847_v9 }
0x1c96   :  { %3732 = vmatpush.msrb.mxu3 %v4848_v59 }
0x1c97   :  { %4682 = vmatmul.msk.f32.vlgmr.msrb.gmra.mxu3 %vm1528_vm13, %v6579_v12 }
0x1c98   :  { %4690 = vmatpush.xpose.msk.msra.mxu3 %vm610_vm1, %v3834_v1  ;;  %v4005_v48 = vpop.permute.xlu1 %4004 }
0x1c99   :  { %4697 = vmatpush.xpose.msk.msrb.mxu1 %vm610_vm1, %v4005_v48  ;;  %v3830_v56 = vpop.permute.xlu0 %3829 }
0x1c9c   :  { %4691 = vmatpush.xpose.msk.msra.mxu3 %vm610_vm1, %v3832_v63 }
0x1c9f   :  { %4692 = vmatmul.msk.f32.vlgmr.msra.gmra.mxu3 %vm610_vm1, %v3830_v56 }
0x1ca0   :  { %v4003_v8 = vpop.permute.xlu1 %4002 }
0x1ca1   :  { %4698 = vmatpush.xpose.msk.msrb.mxu1 %vm610_vm1, %v4003_v8  ;;  %v4851_v14 = vpop.permute.xlu0 %4850 }
0x1ca2   :  { %v4852_v7 = vunpack.i.l.bf16 %v4851_v14  ;;  %v4853_v17 = vunpack.i.h.bf16 %v4851_v14 }
0x1ca3   :  { %4036 = vrot.lane.b32.xlu2 %v6079_v18, %s5540_s0 }
0x1ca4   :  { %3932 = vmatpush.msrb.mxu2 %v4852_v7 }
0x1ca6   :  { %3933 = vmatpush.msrb.mxu2 %v4853_v17 }
0x1ca8   :  { %v4035_v29 = vpop.permute.xlu1 %4034 }
0x1ca9   :  { %v4001_v62 = vpop.permute.xlu0 %4000 }
0x1caa   :  { %4699 = vmatmul.msk.f32.vlgmr.msrb.gmra.mxu1 %vm610_vm1, %v4001_v62 }
0x1cb1   :  { %v4033_v24 = vpop.permute.xlu0 %4032 }
0x1ccd   :  { %v6602_v3 = vpop.f32.mrf.mxu1 }
0x1cfe   :  { %v3875_v19 = vpop.xlane.xlu2 %3874 }
0x1cff   :  { %5029 = vrcp.f32 %v3875_v19  ;;  %v3890_v15 = vand.u32 2147483648, %v3875_v19  ;;  %v3888_v36 = vand.u32 2147483647, %v3875_v19  ;;  %vm3884_vm15 = vweird.f32 %v3875_v19 }
0x1d01   :  { %v3891_v31 = vor.u32 1.1754944e-38, %v3890_v15  ;;  %vm3889_vm3 = vcmp.eq.f32.partialorder %v3888_v36, 8.507059e+37 }
0x1d05   :  { %v5030_v22 = vpop.eup %5029 }
0x1d06   :  { %v3880_v21 = vmul.f32 %v5030_v22, %v3875_v19  ;;  %v4037_v5 = vpop.permute.xlu2 %4036  ;;  %vm3885_vm14 = vweird.f32 %v5030_v22 }
0x1d07   :  { %4700 = vmatpush.xpose.msk.msra.mxu2 %vm610_vm1, %v4037_v5  ;;  %vm3886_vm2 = vmor %vm3884_vm15, %vm3885_vm14 }
0x1d08   :  { %v3881_v28 = vsub.f32 1.0, %v3880_v21 }
0x1d0a   :  { %v3882_v61 = vmul.f32 %v5030_v22, %v3881_v28 }
0x1d0b   :  { %4701 = vmatpush.xpose.msk.msra.mxu2 %vm610_vm1, %v4035_v29  ;;  %v3796_v29 = vadd.f32 %v6579_v12, %v6552_v44 }
0x1d0c   :  { %v3883_v18 = vadd.f32 %v5030_v22, %v3882_v61 }
0x1d0e   :  { %v3887_v33 = vsel %vm3886_vm2, %v5030_v22, %v3883_v18 }
0x1d0f   :  { %v3892_v34 = vsel %vm3889_vm3, %v3891_v31, %v3887_v33 }
0x1d10   :  { %v3893_v41 = vmul.f32 %v5028_v30, %v3892_v34 }
0x1d12   :  { %v6595_v55 = vadd.f32 %v3893_v41, %v3795_v42  ;;  %4693 = vmatmul.msk.f32.vlgmr.msrb.gmra.mxu2 %vm1528_vm13, %v3893_v41 }
0x1d1a   :  { %v3734_v49 = vpop.f32.mrf.mxu3  ;;  %4702 = vmatmul.msk.f32.vlgmr.msra.gmra.mxu2 %vm610_vm1, %v4033_v24 }
0x1d1b   :  { %4684 = vmatmul.msk.f32.gmra.mxu0 %vm610_vm1, %v3734_v49 }
0x1d22   :  { %v3858_v57 = vpop.f32.mrf.mxu3 }
0x1d23   :  { %v3864_v35 = vsel %vm1528_vm13, %v3858_v57, -inf }
0x1d24   :  { %3865 = vmax.xlane.f32.xlu2 %v3864_v35 }
0x1d27   :  { %v4029_v32 = vpop.f32.mrf.mxu1 }
0x1d28   :  { %v4064_v16 = vsel %vm1528_vm13, %v4029_v32, -inf }
0x1d29   :  { %4065 = vmax.xlane.f32.xlu1 %v4064_v16 }
0x1d95   :  { %v3935_v46 = vpop.f32.mrf.mxu2 }
0x1d96   :  { %4695 = vmatmul.msk.f32.vlgmr.msra.gmra.mxu0 %vm610_vm1, %v3935_v46 }
0x1d97   :  { %v3866_v50 = vpop.xlane.xlu2 %3865 }
0x1d98   :  { %v3868_v54 = vsub.f32 %v3858_v57, %v3866_v50 }
0x1d9a   :  { %v3871_v51 = vmul.f32 1.442695, %v3868_v54 }
0x1d9c   :  { %5031 = vpow2.f32 %v3871_v51  ;;  %v4066_v27 = vpop.xlane.xlu1 %4065 }
0x1d9d   :  { %v4070_v52 = vsub.f32 %v4029_v32, %v4066_v27  ;;  %v4061_v23 = vpop.f32.mrf.mxu2 }
0x1d9e   :  { %v4067_v39 = vsel %vm1528_vm13, %v4061_v23, -inf }
0x1d9f   :  { %v4072_v58 = vmul.f32 1.442695, %v4070_v52  ;;  %4068 = vmax.xlane.f32.xlu0 %v4067_v39 }
0x1da1   :  { %5033 = vpow2.f32 %v4072_v58 }
0x1da2   :  { %v5032_v26 = vpop.eup %5031 }
0x1da3   :  { %v3876_v43 = vsel %vm1528_vm13, %v5032_v26, 0.0 }
0x1da4   :  { %3877 = vadd.xlane.f32.xlu2 %v3876_v43 }
0x1da7   :  { %v5034_v25 = vpop.eup %5033 }
0x1da8   :  { %v4076_v30 = vsel %vm1528_vm13, %v5034_v25, 0.0 }
0x1da9   :  { %4077 = vadd.xlane.f32.xlu1 %v4076_v30 }
0x1dbc   :  { %4855 = vrot.lane.b32.xlu2 %v6192_v11, %s5539_s17 }
0x1dc2   :  { %4860 = vrot.lane.b32.xlu1 %v6161_v60, %s5540_s0 }
0x1e12   :  { %v4069_v2 = vpop.xlane.xlu0 %4068 }
0x1e13   :  { %v4071_v0 = vsub.f32 %v4061_v23, %v4069_v2 }
0x1e15   :  { %v4074_v20 = vmul.f32 1.442695, %v4071_v0  ;;  %v3760_v0 = vpop.f32.mrf.mxu0 }
0x1e17   :  { %5035 = vpow2.f32 %v4074_v20  ;;  %v3878_v38 = vpop.xlane.xlu2 %3877 }
0x1e18   :  { %5037 = vrcp.f32 %v3878_v38  ;;  %v3905_v60 = vand.u32 2147483648, %v3878_v38  ;;  %v3903_v14 = vand.u32 2147483647, %v3878_v38  ;;  %vm3899_vm5 = vweird.f32 %v3878_v38 }
0x1e1a   :  { %v3906_v62 = vor.u32 1.1754944e-38, %v3905_v60  ;;  %vm3904_vm7 = vcmp.eq.f32.partialorder %v3903_v14, 8.507059e+37 }
0x1e1c   :  { %v4078_v4 = vpop.xlane.xlu1 %4077 }
0x1e1d   :  { %v6614_v37 = vpop.eup %5035  ;;  %5039 = vrcp.f32 %v4078_v4  ;;  %v4093_v21 = vand.u32 2147483648, %v4078_v4  ;;  %v4091_v15 = vand.u32 2147483647, %v4078_v4  ;;  %vm4087_vm9 = vweird.f32 %v4078_v4  ;;  %v3763_v20 = vpop.f32.mrf.mxu0 }
0x1e1e   :  { %v5038_v1 = vpop.eup %5037  ;;  %v4079_v13 = vsel %vm1528_vm13, %v6614_v37, 0.0 }
0x1e1f   :  { %v3895_v10 = vmul.f32 %v5038_v1, %v3878_v38  ;;  %4080 = vadd.xlane.f32.xlu0 %v4079_v13  ;;  %v4856_v9 = vpop.permute.xlu2 %4855  ;;  %vm3900_vm4 = vweird.f32 %v5038_v1  ;;  %v4094_v31 = vor.u32 1.1754944e-38, %v4093_v21  ;;  %vm4092_vm11 = vcmp.eq.f32.partialorder %v4091_v15, 8.507059e+37 }
0x1e20   :  { %v4857_v59 = vunpack.i.l.bf16 %v4856_v9  ;;  %v4858_v56 = vunpack.i.h.bf16 %v4856_v9  ;;  %vm3901_vm6 = vmor %vm3899_vm5, %vm3900_vm4 }
0x1e21   :  { %v3896_v48 = vsub.f32 1.0, %v3895_v10  ;;  %v4888_v10 = vld [vmem:[#allocation6 + $0x1] ss:$0 sm:$0xff] }
0x1e22   :  { %3961 = vmatpush.msrb.mxu3 %v4857_v59 }
0x1e23   :  { %v5040_v63 = vpop.eup %5039  ;;  %v3897_v8 = vmul.f32 %v5038_v1, %v3896_v48 }
0x1e24   :  { %v4083_v7 = vmul.f32 %v5040_v63, %v4078_v4  ;;  %3962 = vmatpush.msrb.mxu3 %v4858_v56  ;;  %vm4088_vm8 = vweird.f32 %v5040_v63  ;;  %v3790_v4 = vadd.f32 %v6598_v53, %v3760_v0  ;;  %v3793_v56 = vadd.f32 %v6602_v3, %v3763_v20 }
0x1e25   :  { %v3898_v17 = vadd.f32 %v5038_v1, %v3897_v8  ;;  %vm4089_vm10 = vmor %vm4087_vm9, %vm4088_vm8  ;;  %v3990_v38 = vpop.f32.mrf.mxu0 }
0x1e26   :  { %v4084_v19 = vsub.f32 1.0, %v4083_v7 }
0x1e27   :  { %v3902_v22 = vsel %vm3901_vm6, %v5038_v1, %v3898_v17 }
0x1e28   :  { %v3907_v5 = vsel %vm3904_vm7, %v3906_v62, %v3902_v22  ;;  %v4085_v28 = vmul.f32 %v5040_v63, %v4084_v19 }
0x1e29   :  { %v3908_v61 = vmul.f32 %v5032_v26, %v3907_v5 }
0x1e2a   :  { %v4086_v36 = vadd.f32 %v5040_v63, %v4085_v28 }
0x1e2b   :  { %v3999_v18 = vadd.f32 %v3908_v61, %v3796_v29  ;;  %4694 = vmatmul.msk.f32.vlgmr.msrb.gmra.mxu3 %vm1528_vm13, %v3908_v61  ;;  %v4279_v29 = vld [vmem:[#allocation21 + $0x38] sm:$0xff]  ;;  %v4278_v61 = vld [vmem:[#allocation21 + $0x30] sm:$0xff] }
0x1e2c   :  { %v4090_v33 = vsel %vm4089_vm10, %v5040_v63, %v4086_v36  ;;  %v4277_v36 = vld [vmem:[#allocation21 + $0x28] sm:$0xff] }
0x1e2d   :  { %v4095_v34 = vsel %vm4092_vm11, %v4094_v31, %v4090_v33 }
0x1e2e   :  { %v4096_v42 = vmul.f32 %v5034_v25, %v4095_v34 }
0x1e30   :  { %v4201_v41 = vadd.f32 %v4096_v42, %v6595_v55  ;;  %v3394_v55 = vld [vmem:[#allocation4 + $0x38] sm:$0xff] }
0x1e31   :  { %4191 = vmatpush.msrb.mxu2 %v3394_v55 }
0x1e32   :  { %v4203_v24 = vmul.f32 0.25, %v4201_v41 }
0x1e33   :  { %4865 = vrot.lane.b32.xlu0 %v6192_v11, %s5540_s0 }
0x1e34   :  { %4707 = vst.msk [vmem:[%s5708_s21 + $0x10] sm:$0xff] %vm1528_vm13, %v4203_v24  ;;  %v4861_v44 = vpop.permute.xlu1 %4860 }
0x1e35   :  { %v4862_v12 = vunpack.i.l.bf16 %v4861_v44  ;;  %v4863_v49 = vunpack.i.h.bf16 %v4861_v44 }
0x1e37   :  { %4135 = vmatpush.msra.mxu3 %v4862_v12 }
0x1e39   :  { %4136 = vmatpush.msra.mxu3 %v4863_v49 }
0x1e3a   :  { %4703 = vmatmul.msk.f32.vlgmr.msra.gmra.mxu3 %vm1528_vm13, %v4096_v42 }
0x1e3b   :  { %4303 = vmatpush.msrb.mxu3 %v4279_v29 }
0x1e3d   :  { %4304 = vmatpush.msrb.mxu3 %v4278_v61 }
0x1e3f   :  { %4305 = vmatpush.msrb.mxu3 %v4277_v36 }
0x1e92   :  { %v4081_v57 = vpop.xlane.xlu0 %4080 }
0x1e93   :  { %5041 = vrcp.f32 %v4081_v57  ;;  %v4108_v40 = vand.u32 2147483648, %v4081_v57  ;;  %v4106_v50 = vand.u32 2147483647, %v4081_v57  ;;  %vm4102_vm15 = vweird.f32 %v4081_v57 }
0x1e95   :  { %v4109_v54 = vor.u32 1.1754944e-38, %v4108_v40  ;;  %vm4107_vm3 = vcmp.eq.f32.partialorder %v4106_v50, 8.507059e+37  ;;  %v4717_v50 = vld [vmem:[%s6719_s4 + $0x70] sm:$0xff] }
0x1e99   :  { %v5042_v35 = vpop.eup %5041 }
0x1e9a   :  { %v4098_v32 = vmul.f32 %v5042_v35, %v4081_v57  ;;  %vm4103_vm14 = vweird.f32 %v5042_v35  ;;  %v4889_v57 = vld [vmem:[#allocation15 + $0x1] ss:$0 sm:$0xff] }
0x1e9b   :  { %vm4104_vm2 = vmor %vm4102_vm15, %vm4103_vm14 }
0x1e9c   :  { %v4099_v16 = vsub.f32 1.0, %v4098_v32  ;;  %v4890_v32 = vld [vmem:[#allocation16 + $0x1] ss:$0 sm:$0xff] }
0x1e9e   :  { %v4100_v46 = vmul.f32 %v5042_v35, %v4099_v16 }
0x1ea0   :  { %v4101_v11 = vadd.f32 %v5042_v35, %v4100_v46  ;;  %v4718_v46 = vld [vmem:[%s6719_s4 + $0x78] sm:$0xff] }
0x1ea1   :  { %4344 = vmatpush.msrb.mxu0 %v4718_v46 }
0x1ea2   :  { %v4105_v51 = vsel %vm4104_vm2, %v5042_v35, %v4101_v11  ;;  %v4716_v11 = vld [vmem:[%s6719_s4 + $0x68] sm:$0xff] }
0x1ea3   :  { %v4110_v27 = vsel %vm4107_vm3, %v4109_v54, %v4105_v51  ;;  %4345 = vmatpush.msrb.mxu0 %v4717_v50 }
0x1ea4   :  { %v4111_v52 = vmul.f32 %v6614_v37, %v4110_v27  ;;  %v3996_v37 = vadd.f32 %v3990_v38, %v3790_v4  ;;  %v4715_v27 = vld [vmem:[%s6719_s4 + $0x60] sm:$0xff]  ;;  %v4712_v38 = vld [vmem:[%s6719_s4 + $0x48] sm:$0xff] }
0x1ea5   :  { %v4866_v23 = vpop.permute.xlu0 %4865  ;;  %4346 = vmatpush.msrb.mxu0 %v4716_v11  ;;  %v4711_v4 = vld [vmem:[%s6719_s4 + $0x40] sm:$0xff] }
0x1ea6   :  { %v4202_v39 = vadd.f32 %v4111_v52, %v3999_v18  ;;  %v4867_v58 = vunpack.i.l.bf16 %v4866_v23  ;;  %v4868_v43 = vunpack.i.h.bf16 %v4866_v23  ;;  %v4276_v18 = vld [vmem:[#allocation21 + $0x20] sm:$0xff] }
0x1ea7   :  { %4306 = vmatpush.msrb.mxu3 %v4276_v18  ;;  %v4714_v23 = vld [vmem:[%s6719_s4 + $0x58] sm:$0xff]  ;;  %4347 = vmatpush.msrb.mxu0 %v4715_v27 }
0x1ea8   :  { %v4204_v26 = vmul.f32 0.25, %v4202_v39  ;;  %4164 = vmatpush.msra.mxu1 %v4867_v58 }
0x1ea9   :  { %4348 = vmatpush.msrb.mxu0 %v4714_v23 }
0x1eaa   :  { %4708 = vst.msk [vmem:[%s5708_s21 + $0x18] sm:$0xff] %vm1528_vm13, %v4204_v26  ;;  %4165 = vmatpush.msra.mxu1 %v4868_v43 }
0x1eab   :  { %4704 = vmatmul.msk.f32.vlgmr.msra.gmra.mxu1 %vm1528_vm13, %v4111_v52 }
0x1eae   :  { %v3964_v25 = vpop.f32.mrf.mxu3 }
0x1eaf   :  { %4696 = vmatmul.msk.f32.gmra.mxu0 %vm610_vm1, %v3964_v25 }
0x1ebd   :  { %v4138_v30 = vpop.f32.mrf.mxu3 }
0x1ebe   :  { %4705 = vmatmul.msk.f32.vlgmr.msrb.gmra.mxu2 %vm610_vm1, %v4138_v30 }
0x1f28   :  { %v4167_v2 = vpop.f32.mrf.mxu1 }
0x1f29   :  { %4706 = vmatmul.msk.f32.gmra.mxu2 %vm610_vm1, %v4167_v2  ;;  %v4713_v2 = vld [vmem:[%s6719_s4 + $0x50] sm:$0xff] }
0x1f2a   :  { %4349 = vmatpush.msrb.mxu0 %v4713_v2 }
0x1f2c   :  { %v3993_v60 = vpop.f32.mrf.mxu0  ;;  %4350 = vmatpush.msrb.mxu0 %v4712_v38 }
0x1f2d   :  { %v3997_v63 = vadd.f32 %v3993_v60, %v3793_v56 }
0x1f2e   :  { %4351 = vmatpush.msrb.mxu0 %v4711_v4 }
0x1f41   :  { %v4193_v1 = vpop.f32.mrf.mxu2 }
0x1f42   :  { %v4199_v13 = vadd.f32 %v4193_v1, %v3996_v37 }
0x1f44   :  { %v4205_v9 = vadd.f32 %v4199_v13, %v6475_v45  ;;  %v4891_v13 = vld [vmem:[#allocation22 + $0x1] ss:$0 sm:$0xff] }
0x1f46   :  { %v4212_v59 = vadd.f32 %v4888_v10, %v4205_v9 }
0x1f48   :  { %v4218_v48 = vsel %vm407_vm0, %v4212_v59, 0.0 }
0x1f49   :  { %4219 = vadd.xlane.f32.xlu2 %v4218_v48 }
0x1fac   :  { %v4196_v8 = vpop.f32.mrf.mxu2 }
0x1fad   :  { %v4200_v14 = vadd.f32 %v4196_v8, %v3997_v63  ;;  %v4892_v63 = vld [vmem:[#allocation24 + $0x1] ss:$0 sm:$0xff] }
0x1faf   :  { %v4206_v7 = vadd.f32 %v4200_v14, %v6504_v47 }
0x1fb1   :  { %v4213_v17 = vadd.f32 %v4888_v10, %v4206_v7 }
0x1fb3   :  { %v4221_v53 = vsel %vm407_vm0, %v4213_v17, 0.0 }
0x1fb4   :  { %4222 = vadd.xlane.f32.xlu0 %v4221_v53 }
0x1fbc   :  { %v4220_v62 = vpop.xlane.xlu2 %4219 }
0x1fbd   :  { %v4224_v19 = vmul.f32 %v4220_v62, %v6110_v6 }
0x1fbf   :  { %v4226_v45 = vsub.f32 %v4212_v59, %v4224_v19 }
0x1fc1   :  { %v4228_v22 = vmul.f32 %v4226_v45, %v4226_v45 }
0x1fc3   :  { %v4230_v21 = vsel %vm407_vm0, %v4228_v22, 0.0 }
0x1fc4   :  { %4231 = vadd.xlane.f32.xlu1 %v4230_v21 }
0x2027   :  { %v4223_v5 = vpop.xlane.xlu0 %4222 }
0x2028   :  { %v4225_v3 = vmul.f32 %v4223_v5, %v6110_v6 }
0x202a   :  { %v4227_v28 = vsub.f32 %v4213_v17, %v4225_v3 }
0x202c   :  { %v4229_v15 = vmul.f32 %v4227_v28, %v4227_v28 }
0x202e   :  { %v4233_v47 = vsel %vm407_vm0, %v4229_v15, 0.0 }
0x202f   :  { %4234 = vadd.xlane.f32.xlu2 %v4233_v47 }
0x2037   :  { %v4232_v31 = vpop.xlane.xlu1 %4231 }
0x2038   :  { %v4236_v33 = vmul.f32 %v4232_v31, %v6110_v6 }
0x203a   :  { %v4238_v34 = vadd.f32 1e-05, %v4236_v33 }
0x203c   :  { %5043 = vrsqrt.f32 %v4238_v34  ;;  %vm4246_vm13 = vweird.f32 %v4238_v34 }
0x2042   :  { %v5044_v42 = vpop.eup %5043 }
0x2043   :  { %v4241_v41 = vmul.f32 %v5044_v42, %v4238_v34  ;;  %vm4247_vm1 = vweird.f32 %v5044_v42 }
0x2044   :  { %vm4248_vm4 = vmor %vm4246_vm13, %vm4247_vm1 }
0x2045   :  { %v4242_v24 = vmul.f32 %v5044_v42, %v4241_v41 }
0x2047   :  { %v4243_v44 = vmul.f32 0.5, %v4242_v24 }
0x2049   :  { %v4244_v12 = vsub.f32 1.5, %v4243_v44 }
0x204b   :  { %v4245_v49 = vmul.f32 %v5044_v42, %v4244_v12 }
0x204d   :  { %v4249_v35 = vsel %vm4248_vm4, %v5044_v42, %v4245_v49  ;;  %v4893_v49 = vld [vmem:[#allocation18 + $0x1] ss:$0 sm:$0xff] }
0x204e   :  { %v4260_v16 = vmul.f32 %v4249_v35, %v4226_v45 }
0x2050   :  { %v4265_v40 = vmul.f32 %v4889_v57, %v4260_v16 }
0x2052   :  { %v4270_v55 = vadd.f32 %v4890_v32, %v4265_v40 }
0x2054   :  { %4709 = vmatmul.msk.f32.vlgmr.msrb.gmra.mxu3 %vm407_vm0, %v4270_v55 }
0x20a2   :  { %v4235_v54 = vpop.xlane.xlu2 %4234 }
0x20a3   :  { %v4237_v51 = vmul.f32 %v4235_v54, %v6110_v6 }
0x20a5   :  { %v4239_v52 = vadd.f32 1e-05, %v4237_v51 }
0x20a7   :  { %5045 = vrsqrt.f32 %v4239_v52  ;;  %vm4256_vm6 = vweird.f32 %v4239_v52 }
0x20ad   :  { %v5046_v39 = vpop.eup %5045 }
0x20ae   :  { %v4251_v58 = vmul.f32 %v5046_v39, %v4239_v52  ;;  %vm4257_vm5 = vweird.f32 %v5046_v39 }
0x20af   :  { %vm4258_vm7 = vmor %vm4256_vm6, %vm4257_vm5 }
0x20b0   :  { %v4252_v26 = vmul.f32 %v5046_v39, %v4251_v58 }
0x20b2   :  { %v4253_v43 = vmul.f32 0.5, %v4252_v26 }
0x20b4   :  { %v4254_v25 = vsub.f32 1.5, %v4253_v43 }
0x20b6   :  { %v4255_v30 = vmul.f32 %v5046_v39, %v4254_v25 }
0x20b8   :  { %v4259_v0 = vsel %vm4258_vm7, %v5046_v39, %v4255_v30 }
0x20b9   :  { %v4261_v20 = vmul.f32 %v4259_v0, %v4227_v28 }
0x20bb   :  { %v4266_v37 = vmul.f32 %v4889_v57, %v4261_v20 }
0x20bd   :  { %v4271_v1 = vadd.f32 %v4890_v32, %v4266_v37  ;;  %v4894_v32 = vld [vmem:[#allocation19 + $0x1] ss:$0 sm:$0xff] }
0x20bf   :  { %4710 = vmatmul.msk.f32.gmra.mxu3 %vm407_vm0, %v4271_v1 }
0x20d7   :  { %v4308_v10 = vpop.f32.mrf.mxu3 }
0x20d8   :  { %v4309_v9 = vadd.f32 %v4891_v13, %v4308_v10 }
0x20da   :  { %v4314_v59 = vmax.f32 %v4309_v9, 0.0 }
0x20dc   :  { %4719 = vmatmul.msk.f32.vlgmr.msrb.gmra.mxu0 %vm2384_vm12, %v4314_v59 }
0x2142   :  { %v4311_v48 = vpop.f32.mrf.mxu3 }
0x2143   :  { %v4312_v60 = vadd.f32 %v4891_v13, %v4311_v48 }
0x2145   :  { %v4315_v56 = vmax.f32 %v4312_v60, 0.0 }
0x2147   :  { %4720 = vmatmul.msk.f32.gmra.mxu0 %vm2384_vm12, %v4315_v56 }
0x2159   :  { %v4353_v8 = vpop.f32.mrf.mxu0 }
0x215a   :  { %v4354_v14 = vadd.f32 %v4892_v63, %v4353_v8 }
0x215c   :  { %v4359_v7 = vadd.f32 %v4354_v14, %v4270_v55 }
0x215e   :  { %v4365_v17 = vsel %vm407_vm0, %v4359_v7, 0.0 }
0x215f   :  { %4366 = vadd.xlane.f32.xlu0 %v4365_v17 }
0x21c4   :  { %v4356_v53 = vpop.f32.mrf.mxu0 }
0x21c5   :  { %v4357_v62 = vadd.f32 %v4892_v63, %v4356_v53  ;;  %v4895_v53 = vld [vmem:[#allocation25] ss:$0 sm:$0xff] }
0x21c7   :  { %v4360_v19 = vadd.f32 %v4357_v62, %v4271_v1 }
0x21c9   :  { %v4368_v45 = vsel %vm407_vm0, %v4360_v19, 0.0 }
0x21ca   :  { %4369 = vadd.xlane.f32.xlu2 %v4368_v45 }
0x21d2   :  { %v4367_v22 = vpop.xlane.xlu0 %4366 }
0x21d3   :  { %v4371_v21 = vmul.f32 %v4367_v22, %v6110_v6 }
0x21d5   :  { %v4373_v5 = vsub.f32 %v4359_v7, %v4371_v21 }
0x21d7   :  { %v4375_v3 = vmul.f32 %v4373_v5, %v4373_v5 }
0x21d9   :  { %v4377_v28 = vsel %vm407_vm0, %v4375_v3, 0.0 }
0x21da   :  { %4378 = vadd.xlane.f32.xlu1 %v4377_v28 }
0x223d   :  { %v4370_v15 = vpop.xlane.xlu2 %4369 }
0x223e   :  { %v4372_v29 = vmul.f32 %v4370_v15, %v6110_v6 }
0x2240   :  { %v4374_v47 = vsub.f32 %v4360_v19, %v4372_v29  ;;  %v4896_v19 = vld [vmem:[#allocation27] ss:$0 sm:$0xff] }
0x2242   :  { %v4376_v61 = vmul.f32 %v4374_v47, %v4374_v47 }
0x2244   :  { %v4380_v36 = vsel %vm407_vm0, %v4376_v61, 0.0 }
0x2245   :  { %4381 = vadd.xlane.f32.xlu0 %v4380_v36 }
0x224d   :  { %v4379_v18 = vpop.xlane.xlu1 %4378 }
0x224e   :  { %v4383_v31 = vmul.f32 %v4379_v18, %v6110_v6 }
0x2250   :  { %v4385_v33 = vadd.f32 1e-05, %v4383_v31 }
0x2252   :  { %5047 = vrsqrt.f32 %v4385_v33  ;;  %vm4393_vm8 = vweird.f32 %v4385_v33 }
0x2258   :  { %v5048_v34 = vpop.eup %5047 }
0x2259   :  { %v4388_v42 = vmul.f32 %v5048_v34, %v4385_v33  ;;  %vm4394_vm12 = vweird.f32 %v5048_v34 }
0x225a   :  { %vm4395_vm9 = vmor %vm4393_vm8, %vm4394_vm12 }
0x225b   :  { %v4389_v41 = vmul.f32 %v5048_v34, %v4388_v42 }
0x225d   :  { %v4390_v24 = vmul.f32 0.5, %v4389_v41 }
0x225f   :  { %v4391_v44 = vsub.f32 1.5, %v4390_v24 }
0x2261   :  { %v4392_v12 = vmul.f32 %v5048_v34, %v4391_v44 }
0x2263   :  { %v4396_v57 = vsel %vm4395_vm9, %v5048_v34, %v4392_v12 }
0x2264   :  { %v4407_v35 = vmul.f32 %v4396_v57, %v4373_v5 }
0x2266   :  { %v4412_v16 = vmul.f32 %v4893_v49, %v4407_v35 }
0x2268   :  { %v4417_v40 = vadd.f32 %v4894_v32, %v4412_v16 }
0x226a   :  { %v4421_v55 = vsel %vm407_vm0, %v4417_v40, 0.0 }
0x226b   :  { %4422 = vadd.xlane.f32.xlu2 %v4421_v55 }
0x22b8   :  { %v4382_v46 = vpop.xlane.xlu0 %4381 }
0x22b9   :  { %v4384_v50 = vmul.f32 %v4382_v46, %v6110_v6 }
0x22bb   :  { %v4386_v11 = vadd.f32 1e-05, %v4384_v50 }
0x22bd   :  { %5049 = vrsqrt.f32 %v4386_v11  ;;  %vm4403_vm11 = vweird.f32 %v4386_v11 }
0x22c3   :  { %v5050_v54 = vpop.eup %5049 }
0x22c4   :  { %v4398_v51 = vmul.f32 %v5050_v54, %v4386_v11  ;;  %vm4404_vm10 = vweird.f32 %v5050_v54 }
0x22c5   :  { %vm4405_vm14 = vmor %vm4403_vm11, %vm4404_vm10 }
0x22c6   :  { %v4399_v27 = vmul.f32 %v5050_v54, %v4398_v51 }
0x22c8   :  { %v4400_v52 = vmul.f32 0.5, %v4399_v27 }
0x22ca   :  { %v4401_v23 = vsub.f32 1.5, %v4400_v52 }
0x22cc   :  { %v4402_v39 = vmul.f32 %v5050_v54, %v4401_v23 }
0x22ce   :  { %v4406_v58 = vsel %vm4405_vm14, %v5050_v54, %v4402_v39 }
0x22cf   :  { %v4408_v26 = vmul.f32 %v4406_v58, %v4374_v47 }
0x22d1   :  { %v4413_v43 = vmul.f32 %v4893_v49, %v4408_v26 }
0x22d3   :  { %v4418_v25 = vadd.f32 %v4894_v32, %v4413_v43 }
0x22d5   :  { %v4424_v30 = vsel %vm407_vm0, %v4418_v25, 0.0 }
0x22d6   :  { %4425 = vadd.xlane.f32.xlu1 %v4424_v30 }
0x22de   :  { %v4423_v2 = vpop.xlane.xlu2 %4422 }
0x22df   :  { %v4427_v0 = vmul.f32 %v4423_v2, %v6110_v6 }
0x22e1   :  { %v4429_v20 = vsub.f32 %v4417_v40, %v4427_v0 }
0x22e3   :  { %v4431_v38 = vmul.f32 %v4429_v20, %v4429_v20 }
0x22e5   :  { %v4433_v4 = vsel %vm407_vm0, %v4431_v38, 0.0 }
0x22e6   :  { %4434 = vadd.xlane.f32.xlu0 %v4433_v4 }
0x2349   :  { %v4426_v37 = vpop.xlane.xlu1 %4425 }
0x234a   :  { %v4428_v1 = vmul.f32 %v4426_v37, %v6110_v6 }
0x234c   :  { %v4430_v13 = vsub.f32 %v4418_v25, %v4428_v1 }
0x234e   :  { %v4432_v10 = vmul.f32 %v4430_v13, %v4430_v13 }
0x2350   :  { %v4436_v9 = vsel %vm407_vm0, %v4432_v10, 0.0 }
0x2351   :  { %4437 = vadd.xlane.f32.xlu2 %v4436_v9 }
0x2359   :  { %v4435_v59 = vpop.xlane.xlu0 %4434 }
0x235a   :  { %v4439_v48 = vmul.f32 %v4435_v59, %v6110_v6 }
0x235c   :  { %v4441_v60 = vadd.f32 1e-05, %v4439_v48 }
0x235e   :  { %5051 = vrsqrt.f32 %v4441_v60  ;;  %vm4449_vm2 = vweird.f32 %v4441_v60 }
0x2364   :  { %v5052_v56 = vpop.eup %5051 }
0x2365   :  { %v4444_v63 = vmul.f32 %v5052_v56, %v4441_v60  ;;  %vm4450_vm15 = vweird.f32 %v5052_v56 }
0x2366   :  { %vm4451_vm3 = vmor %vm4449_vm2, %vm4450_vm15 }
0x2367   :  { %v4445_v8 = vmul.f32 %v5052_v56, %v4444_v63 }
0x2369   :  { %v4446_v14 = vmul.f32 0.5, %v4445_v8 }
0x236b   :  { %v4447_v7 = vsub.f32 1.5, %v4446_v14 }
0x236d   :  { %v4448_v17 = vmul.f32 %v5052_v56, %v4447_v7 }
0x236f   :  { %v4452_v62 = vsel %vm4451_vm3, %v5052_v56, %v4448_v17 }
0x2370   :  { %v4463_v45 = vmul.f32 %v4452_v62, %v4429_v20 }
0x2372   :  { %v4468_v22 = vmul.f32 %v4895_v53, %v4463_v45 }
0x2374   :  { %v4473_v21 = vadd.f32 %v4896_v19, %v4468_v22 }
0x2376   :  { %4475 = vst.msk [vmem:[%s5703_s5] sm:$0xff] %vm407_vm0, %v4473_v21 }
0x23c4   :  { %v4438_v5 = vpop.xlane.xlu2 %4437 }
0x23c5   :  { %v4440_v3 = vmul.f32 %v4438_v5, %v6110_v6 }
0x23c7   :  { %v4442_v28 = vadd.f32 1e-05, %v4440_v3 }
0x23c9   :  { %5053 = vrsqrt.f32 %v4442_v28  ;;  %vm4459_vm13 = vweird.f32 %v4442_v28 }
0x23cf   :  { %v5054_v15 = vpop.eup %5053 }
0x23d0   :  { %v4454_v29 = vmul.f32 %v5054_v15, %v4442_v28  ;;  %vm4460_vm1 = vweird.f32 %v5054_v15 }
0x23d1   :  { %vm4461_vm4 = vmor %vm4459_vm13, %vm4460_vm1 }
0x23d2   :  { %v4455_v47 = vmul.f32 %v5054_v15, %v4454_v29 }
0x23d4   :  { %v4456_v61 = vmul.f32 0.5, %v4455_v47 }
0x23d6   :  { %v4457_v36 = vsub.f32 1.5, %v4456_v61 }
0x23d8   :  { %v4458_v18 = vmul.f32 %v5054_v15, %v4457_v36 }
0x23da   :  { %v4462_v31 = vsel %vm4461_vm4, %v5054_v15, %v4458_v18 }
0x23db   :  { %v4464_v33 = vmul.f32 %v4462_v31, %v4430_v13 }
0x23dd   :  { %v4469_v34 = vmul.f32 %v4895_v53, %v4464_v33 }
0x23df   :  { %v4474_v42 = vadd.f32 %v4896_v19, %v4469_v34 }
0x23e1   :  { %4476 = vst.msk [vmem:[%s5703_s5 + $0x8] sm:$0xff] %vm407_vm0, %v4474_v42 }
0x23e2   :  { %4485 = vsyncpa [#allocation3], 1 }
0x23e3   :  { %4486 = vsyncpa [#allocation5], 1 }
0x23e4   :  { %4487 = vsyncpa [#allocation8], 1 }
0x23e5   :  { %4488 = vsyncpa [#allocation11], 1 }
0x23e6   :  { %4489 = vsyncpa [#allocation14], 1 }
0x23e7   :  { %4490 = vsyncpa [#allocation17], 1 }
0x23e8   :  { %4491 = vsyncpa [#allocation20], 1 }
0x23e9   :  { %4492 = vsyncpa [#allocation23], 1 }
0x23ea   :  { %4493 = vsyncpa [#allocation26], 1 }

</bundles_post_ra>
